<compile_context>
chip_gen: v7x
topology: tpu7x:2x2x1
jax: 0.10.0
libtpu: 0.0.40
codegen_flags: <defaults>
</compile_context>

<pallas_src>
import math
from functools import partial

import jax
import jax.numpy as jnp
from jax.experimental import pallas as pl
from jax.experimental.pallas import tpu as pltpu

NEG_INF = -1e9  # additive mask value standing in for -inf


# ----------------------------------------------------------------------------
# In-kernel helpers
# ----------------------------------------------------------------------------
def _layernorm(x, g, b, eps=1e-5):
    mu = jnp.mean(x, axis=-1, keepdims=True)
    var = jnp.mean((x - mu) ** 2, axis=-1, keepdims=True)
    return (x - mu) * jax.lax.rsqrt(var + eps) * g + b


def _head_attention(q, k, v, bias, scale):
    """One head: q (TB,S,dh) bf16, k/v (TB,Skv,dh) bf16, bias (TB,S,Skv)|(TB,1,Skv)."""
    s = jnp.einsum("bqe,bke->bqk", q, k,
                   preferred_element_type=jnp.float32) * scale
    s = s + bias
    s = s - jnp.max(s, axis=-1, keepdims=True)
    p = jnp.exp(s)
    p = p * pl.reciprocal(jnp.sum(p, axis=-1, keepdims=True), approx=True)
    return jnp.einsum("bqk,bke->bqe", p.astype(jnp.bfloat16), v,
                      preferred_element_type=jnp.float32)


# ----------------------------------------------------------------------------
# Pallas kernel: whole decoder stack + final linear (one batch block / step)
# ----------------------------------------------------------------------------
def decoder_stack_kernel(nhead, n_layers,
                         x0_ref, mem_ref, tpad_ref, mpad_ref,
                         attnw_ref, attnb_ref, w1_ref, b1_ref, w2_ref, vec_ref,
                         fw_ref, fb_ref,
                         o_ref, x_scr, bias_scr):
    layer = pl.program_id(1)
    TB, S, D = x0_ref.shape
    T = mem_ref.shape[1]
    M = TB * S
    dh = D // nhead
    scale = 1.0 / math.sqrt(dh)

    # -- per-batch-block init (layer 0): resident hidden state + tgt bias -----
    @pl.when(layer == 0)
    def _init():
        x_scr[...] = x0_ref[...].astype(jnp.float32).reshape(M, D)
        row = jax.lax.broadcasted_iota(jnp.int32, (S, S), 0)
        col = jax.lax.broadcasted_iota(jnp.int32, (S, S), 1)
        causal = jnp.where(col > row, NEG_INF, 0.0).astype(jnp.float32)
        bias_scr[...] = causal[None] + tpad_ref[...]      # (TB, S, S)

    x = x_scr[...]                        # (M, D) f32, resident across layers
    tgt_bias = bias_scr[...]              # (TB, S, S)
    mem_bias = mpad_ref[...]              # (TB, 1, T)
    mem = mem_ref[...].reshape(TB * T, D)  # bf16, folded for projections

    def vec(i):   # packed (D,) vectors: ln1g, ln1b, ln2g, ln2b, ln3g, ln3b, b2
        return vec_ref[0, i:i + 1]

    def heads_attn(q_all, k_all, v_all, bias):
        """Split heads only for the small score/context matmuls."""
        ctx = []
        for h in range(nhead):
            sl = slice(h * dh, (h + 1) * dh)
            ctx.append(_head_attention(q_all[:, :, sl].astype(jnp.bfloat16),
                                       k_all[:, :, sl].astype(jnp.bfloat16),
                                       v_all[:, :, sl].astype(jnp.bfloat16),
                                       bias, scale))
        return jnp.concatenate(ctx, axis=-1).reshape(M, D)   # (M, D) f32

    # --- self-attention: fused (M,D)@(D,3D) qkv projection -------------------
    x_bf = x.astype(jnp.bfloat16)
    qkv = (jnp.dot(x_bf, attnw_ref[0, :, 0:3 * D],
                   preferred_element_type=jnp.float32)
           + attnb_ref[0, :, 0:3 * D]).reshape(TB, S, 3 * D)
    ctx = heads_attn(qkv[:, :, 0:D], qkv[:, :, D:2 * D], qkv[:, :, 2 * D:3 * D],
                     tgt_bias)
    sa = (jnp.dot(ctx.astype(jnp.bfloat16), attnw_ref[0, :, 3 * D:4 * D],
                  preferred_element_type=jnp.float32)
          + attnb_ref[0, :, 3 * D:4 * D])
    x = _layernorm(x + sa, vec(0), vec(1))

    # --- cross-attention: q from x, fused (D,2D) kv projection of memory -----
    x_bf = x.astype(jnp.bfloat16)
    q = (jnp.dot(x_bf, attnw_ref[0, :, 4 * D:5 * D],
                 preferred_element_type=jnp.float32)
         + attnb_ref[0, :, 4 * D:5 * D]).reshape(TB, S, D)
    kv = (jnp.dot(mem, attnw_ref[0, :, 5 * D:7 * D],
                  preferred_element_type=jnp.float32)
          + attnb_ref[0, :, 5 * D:7 * D]).reshape(TB, T, 2 * D)
    ctx = heads_attn(q, kv[:, :, 0:D], kv[:, :, D:2 * D], mem_bias)
    ca = (jnp.dot(ctx.astype(jnp.bfloat16), attnw_ref[0, :, 7 * D:8 * D],
                  preferred_element_type=jnp.float32)
          + attnb_ref[0, :, 7 * D:8 * D])
    x = _layernorm(x + ca, vec(2), vec(3))

    # --- feed-forward (folded (M,D) activations) ------------------------------
    h_ff = jnp.maximum(
        jnp.dot(x.astype(jnp.bfloat16), w1_ref[0],
                preferred_element_type=jnp.float32) + b1_ref[0], 0.0)
    ff = jnp.dot(h_ff.astype(jnp.bfloat16), w2_ref[0],
                 preferred_element_type=jnp.float32) + vec(6)
    x = _layernorm(x + ff, vec(4), vec(5))

    x_scr[...] = x

    # --- final scoring linear, fused into the last layer's epilogue ----------
    @pl.when(layer == n_layers - 1)
    def _finalize():
        Vpad = fw_ref.shape[1]
        o_ref[...] = (jnp.dot(x.astype(jnp.bfloat16), fw_ref[...],
                              preferred_element_type=jnp.float32)
                      + fb_ref[...]).reshape(TB, S, Vpad)


# ----------------------------------------------------------------------------
# pallas_call wrapper
# ----------------------------------------------------------------------------
def run_decoder_stack(x0, memory, tgt_pad_bias, mem_pad_bias, packed, *,
                      nhead, tb):
    Bp, Spad, D = x0.shape
    T = memory.shape[1]
    n_layers = packed["attn_w"].shape[0]
    F = packed["w1"].shape[-1]
    Vpad = packed["final_w"].shape[1]
    assert Bp % tb == 0

    def bspec(shape):   # batch-block indexed, constant across the layer axis
        nd = len(shape)
        return pl.BlockSpec(shape, lambda b, l, nd=nd: (b,) + (0,) * (nd - 1))

    def lspec(shape):   # layer indexed
        nd = len(shape)
        return pl.BlockSpec(shape, lambda b, l, nd=nd: (l,) + (0,) * (nd - 1))

    def cspec(shape):   # constant
        nd = len(shape)
        return pl.BlockSpec(shape, lambda b, l, nd=nd: (0,) * nd)

    # Explicit VMEM budget: double-buffered inputs + output + scratch + slack.
    def nbytes(shape, dt):
        n = 1
        for s in shape:
            n *= s
        return n * jnp.dtype(dt).itemsize

    in_blocks = [
        ((tb, Spad, D), jnp.bfloat16), ((tb, T, D), jnp.bfloat16),
        ((tb, 1, Spad), jnp.float32), ((tb, 1, T), jnp.float32),
        ((1, D, 8 * D), jnp.bfloat16), ((1, 1, 8 * D), jnp.float32),
        ((1, D, F), jnp.bfloat16), ((1, 1, F), jnp.float32),
        ((1, F, D), jnp.bfloat16), ((1, 7, D), jnp.float32),
        ((D, Vpad), jnp.bfloat16), ((1, Vpad), jnp.float32),
    ]
    scratch_bytes = (nbytes((tb * Spad, D), jnp.float32)
                     + nbytes((tb, Spad, Spad), jnp.float32))
    est = (2 * sum(nbytes(s, d) for s, d in in_blocks)
           + 2 * nbytes((tb, Spad, Vpad), jnp.float32)
           + scratch_bytes + (4 << 20))
    vmem_limit = int(min(max(est, 16 << 20), 100 << 20))

    return pl.pallas_call(
        partial(decoder_stack_kernel, nhead, n_layers),
        out_shape=jax.ShapeDtypeStruct((Bp, Spad, Vpad), jnp.float32),
        grid=(Bp // tb, n_layers),
        in_specs=[
            bspec((tb, Spad, D)),          # x0 (bf16, post positional encoding)
            bspec((tb, T, D)),             # memory (bf16)
            bspec((tb, 1, Spad)),          # tgt key-padding additive bias
            bspec((tb, 1, T)),             # memory key-padding additive bias
            lspec((1, D, 8 * D)),          # packed attention weight slab (bf16)
            lspec((1, 1, 8 * D)),          # packed attention biases (f32)
            lspec((1, D, F)),              # FFN w1
            lspec((1, 1, F)),              # FFN b1
            lspec((1, F, D)),              # FFN w2
            lspec((1, 7, D)),              # LayerNorm params + b2
            # TODO(synk): for a very large vocab on v7x (64 MiB VMEM), tile the
            # final linear over Vpad / run it in a separate pallas_call instead
            # of keeping final_w resident via cspec.
            cspec((D, Vpad)),              # final linear W (padded, bf16)
            cspec((1, Vpad)),              # final linear b (padded)
        ],
        out_specs=bspec((tb, Spad, Vpad)),
        scratch_shapes=[pltpu.VMEM((tb * Spad, D), jnp.float32),
                        pltpu.VMEM((tb, Spad, Spad), jnp.float32)],
        compiler_params=pltpu.CompilerParams(
            dimension_semantics=("parallel", "arbitrary"),
            vmem_limit_bytes=vmem_limit),
    )(x0, memory, tgt_pad_bias, mem_pad_bias,
      packed["attn_w"], packed["attn_b"], packed["w1"], packed["b1"],
      packed["w2"], packed["vecs"], packed["final_w"], packed["final_b"])


# ----------------------------------------------------------------------------
# JAX glue: positional encoder, params, packing, full forward
# ----------------------------------------------------------------------------
def positional_encoding(seq_len, d_model, min_wavelength=1.0,
                        max_wavelength=1e5):
    """depthcharge PositionalEncoder (sinusoidal, added to the input)."""
    n_sin = d_model // 2
    n_cos = d_model - n_sin
    base = min_wavelength / (2.0 * math.pi)
    scale = max_wavelength / min_wavelength
    sin_term = base * scale ** (jnp.arange(n_sin, dtype=jnp.float32) / (n_sin - 1))
    cos_term = base * scale ** (jnp.arange(n_cos, dtype=jnp.float32) / (n_cos - 1))
    pos = jnp.arange(seq_len, dtype=jnp.float32)[:, None]
    sin_pos = jnp.sin(pos / sin_term[None, :])
    cos_pos = jnp.cos(pos / cos_term[None, :])
    return jnp.concatenate([sin_pos, cos_pos], axis=1)  # (S, D)


def init_params(key, n_tokens, d_model, nhead, dim_feedforward, n_layers,
                padding_int):
    """Random params in x @ W (in, out) convention; biases are 1-D."""
    del nhead
    keys = iter(jax.random.split(key, 8 + 32 * n_layers))

    def mat(shape, s=0.1):
        return jax.random.normal(next(keys), shape, jnp.float32) * s

    emb = mat((n_tokens + 1, d_model)).at[padding_int].set(0.0)

    layers = []
    for _ in range(n_layers):
        lp = {}
        for p in ("s", "c"):  # self-attn / cross-attn
            lp[p + "wq"] = mat((d_model, d_model)); lp[p + "bq"] = mat((d_model,))
            lp[p + "wk"] = mat((d_model, d_model)); lp[p + "bk"] = mat((d_model,))
            lp[p + "wv"] = mat((d_model, d_model)); lp[p + "bv"] = mat((d_model,))
            lp[p + "wo"] = mat((d_model, d_model)); lp[p + "bo"] = mat((d_model,))
        for i in ("1", "2", "3"):  # LayerNorms (PyTorch default init)
            lp["ln" + i + "g"] = jnp.ones((d_model,), jnp.float32)
            lp["ln" + i + "b"] = jnp.zeros((d_model,), jnp.float32)
        lp["w1"] = mat((d_model, dim_feedforward)); lp["b1"] = mat((dim_feedforward,))
        lp["w2"] = mat((dim_feedforward, d_model)); lp["b2"] = mat((d_model,))
        layers.append(lp)

    final_w = mat((d_model, n_tokens))
    final_b = mat((n_tokens,))
    return {"embedding": emb, "layers": layers,
            "final_w": final_w, "final_b": final_b}


def pack_params(params, nhead):
    """Stack per-layer weights into a few fused, lane-dense slabs (bf16)."""
    del nhead
    layers = params["layers"]
    D = params["embedding"].shape[1]
    n_tokens = params["final_w"].shape[1]

    attn_w, attn_b, vecs, w1, b1, w2 = [], [], [], [], [], []
    for lp in layers:
        # Columns: [Wq|Wk|Wv self | Wo self | Wq cross | Wk|Wv cross | Wo cross]
        attn_w.append(jnp.concatenate(
            [lp["swq"], lp["swk"], lp["swv"], lp["swo"],
             lp["cwq"], lp["cwk"], lp["cwv"], lp["cwo"]], axis=1))   # (D, 8D)
        attn_b.append(jnp.concatenate(
            [lp["sbq"], lp["sbk"], lp["sbv"], lp["sbo"],
             lp["cbq"], lp["cbk"], lp["cbv"], lp["cbo"]], axis=0)[None, :])
        vecs.append(jnp.stack(
            [lp["ln1g"], lp["ln1b"], lp["ln2g"], lp["ln2b"],
             lp["ln3g"], lp["ln3b"], lp["b2"]], axis=0))             # (7, D)
        w1.append(lp["w1"])
        b1.append(lp["b1"][None, :])
        w2.append(lp["w2"])

    # Lane-dense vocab dim for the final linear (pad to multiple of 128).
    Vpad = ((n_tokens + 127) // 128) * 128
    fw = jnp.zeros((D, Vpad), jnp.float32).at[:, :n_tokens].set(params["final_w"])
    fb = jnp.zeros((1, Vpad), jnp.float32).at[0, :n_tokens].set(params["final_b"])

    return {
        "attn_w": jnp.stack(attn_w).astype(jnp.bfloat16),   # (L, D, 8D)
        "attn_b": jnp.stack(attn_b).astype(jnp.float32),    # (L, 1, 8D)
        "vecs":   jnp.stack(vecs).astype(jnp.float32),      # (L, 7, D)
        "w1":     jnp.stack(w1).astype(jnp.bfloat16),       # (L, D, F)
        "b1":     jnp.stack(b1).astype(jnp.float32),        # (L, 1, F)
        "w2":     jnp.stack(w2).astype(jnp.bfloat16),       # (L, F, D)
        "final_w": fw.astype(jnp.bfloat16),                 # (D, Vpad)
        "final_b": fb,                                      # (1, Vpad)
        "n_tokens": n_tokens,
    }


def analyte_transformer_decoder_forward(tokens, memory, params, *, nhead,
                                        memory_key_padding_mask=None):
    """Mirror of AnalyteTransformerDecoder.forward (scores output)."""
    B, L = tokens.shape
    D = params["embedding"].shape[1]
    T = memory.shape[1]

    packed = pack_params(params, nhead)
    n_tokens = packed["n_tokens"]

    S = L + 1
    Spad = ((S + 7) // 8) * 8    # sublane-friendly sequence length

    # token_encoder + zero global token
    # TODO(synk): embedding gather + positional-encoding add stay in plain JAX
    # glue (cheap relative to the decoder stack).
    encoded = jnp.take(params["embedding"], tokens, axis=0)          # (B, L, D)
    global_token = jnp.zeros((B, 1, D), jnp.float32)                 # hook = 0
    encoded = jnp.concatenate([global_token, encoded], axis=1)       # (B, S, D)
    if Spad > S:
        encoded = jnp.pad(encoded, ((0, 0), (0, Spad - S), (0, 0)))

    # tgt key-padding mask (before positional encodings), column 0 forced off;
    # host-padded rows fold into the same key-padding bias.
    pad = jnp.sum(encoded, axis=2) == 0
    pad = pad.at[:, 0].set(False)
    tgt_pad_bias = jnp.where(pad, NEG_INF, 0.0).astype(jnp.float32)[:, None, :]

    if memory_key_padding_mask is None:
        mem_pad_bias = jnp.zeros((B, 1, T), jnp.float32)
    else:
        mem_pad_bias = jnp.where(memory_key_padding_mask, NEG_INF,
                                 0.0).astype(jnp.float32)[:, None, :]

    # positional encoder; x0 fed to the kernel as bf16 (halves its DMA)
    x0 = (encoded + positional_encoding(Spad, D)[None]).astype(jnp.bfloat16)
    mem_bf = memory.astype(jnp.bfloat16)

    # Batch blocking: TB sequences share each layer's weight DMA and fold into
    # large-M matmuls (target >= ~256 rows per grid step).
    target_rows = 256
    tb = max(1, min(B, -(-target_rows // Spad)))
    Bp = -(-B // tb) * tb
    if Bp > B:
        padb = Bp - B
        x0 = jnp.pad(x0, ((0, padb), (0, 0), (0, 0)))
        mem_bf = jnp.pad(mem_bf, ((0, padb), (0, 0), (0, 0)))
        tgt_pad_bias = jnp.pad(tgt_pad_bias, ((0, padb), (0, 0), (0, 0)))
        mem_pad_bias = jnp.pad(mem_pad_bias, ((0, padb), (0, 0), (0, 0)))

    scores_padded = run_decoder_stack(
        x0, mem_bf, tgt_pad_bias, mem_pad_bias, packed, nhead=nhead, tb=tb)
    return scores_padded[:B, :S, :n_tokens]


# ----------------------------------------------------------------------------
if __name__ == "__main__":
    # Small, TPU-friendly configuration
    n_tokens = 10
    padding_int = 0
    d_model = 32
    nhead = 4
    dim_feedforward = 64
    n_layers = 2
    B, L, T = 2, 7, 10          # seq inside the model becomes S = L + 1 = 8

    key = jax.random.PRNGKey(0)
    k_par, k_tok, k_mem = jax.random.split(key, 3)

    params = init_params(k_par, n_tokens, d_model, nhead, dim_feedforward,
                         n_layers, padding_int)

    tokens = jax.random.randint(k_tok, (B, L), 1, n_tokens + 1)
    tokens = tokens.at[0, 5:].set(padding_int).at[1, 6:].set(padding_int)
    memory = jax.random.normal(k_mem, (B, T, d_model), jnp.float32)

    scores = analyte_transformer_decoder_forward(
        tokens, memory, params, nhead=nhead)
    scores = jax.block_until_ready(scores)

    assert scores.shape == (B, L + 1, n_tokens), scores.shape
    assert bool(jnp.all(jnp.isfinite(scores)))
    print("KERNEL_OK")
</pallas_src>

<mosaic_0001>
module attributes {stable_mosaic.version = 11 : i64} {
  func.func @decoder_stack_kernel(%arg0: i32, %arg1: i32, %arg2: memref<2x8x32xbf16, #tpu.memory_space<vmem>>, %arg3: memref<2x10x32xbf16, #tpu.memory_space<vmem>>, %arg4: memref<2x1x8xf32, #tpu.memory_space<vmem>>, %arg5: memref<2x1x10xf32, #tpu.memory_space<vmem>>, %arg6: memref<1x32x256xbf16, #tpu.memory_space<vmem>>, %arg7: memref<1x1x256xf32, #tpu.memory_space<vmem>>, %arg8: memref<1x32x64xbf16, #tpu.memory_space<vmem>>, %arg9: memref<1x1x64xf32, #tpu.memory_space<vmem>>, %arg10: memref<1x64x32xbf16, #tpu.memory_space<vmem>>, %arg11: memref<1x7x32xf32, #tpu.memory_space<vmem>>, %arg12: memref<32x128xbf16, #tpu.memory_space<vmem>>, %arg13: memref<1x128xf32, #tpu.memory_space<vmem>>, %arg14: memref<2x8x128xf32, #tpu.memory_space<vmem>>, %arg15: memref<16x32xf32, #tpu.memory_space<vmem>>, %arg16: memref<2x8x8xf32, #tpu.memory_space<vmem>>) attributes {dimension_semantics = [#tpu.dimension_semantics<parallel>, #tpu.dimension_semantics<arbitrary>], iteration_bounds = array<i64: 1, 2>, scalar_prefetch = 0 : i64, scratch_operands = 2 : i64, tpu.core_type = #tpu.core_type<tc>, window_params = [{transform_indices = @transform_0, window_bounds = array<i64: 2, 8, 32>}, {transform_indices = @transform_1, window_bounds = array<i64: 2, 10, 32>}, {transform_indices = @transform_2, window_bounds = array<i64: 2, 1, 8>}, {transform_indices = @transform_3, window_bounds = array<i64: 2, 1, 10>}, {transform_indices = @transform_4, window_bounds = array<i64: 1, 32, 256>}, {transform_indices = @transform_5, window_bounds = array<i64: 1, 1, 256>}, {transform_indices = @transform_6, window_bounds = array<i64: 1, 32, 64>}, {transform_indices = @transform_7, window_bounds = array<i64: 1, 1, 64>}, {transform_indices = @transform_8, window_bounds = array<i64: 1, 64, 32>}, {transform_indices = @transform_9, window_bounds = array<i64: 1, 7, 32>}, {pipeline_mode = #tpu.pipeline_mode<synchronous>, transform_indices = @transform_10, window_bounds = array<i64: 32, 128>}, {pipeline_mode = #tpu.pipeline_mode<synchronous>, transform_indices = @transform_11, window_bounds = array<i64: 1, 128>}, {transform_indices = @transform_12, window_bounds = array<i64: 2, 8, 128>}]} {
    %c0_i32 = arith.constant 0 : i32
    %0 = arith.cmpi eq, %arg1, %c0_i32 : i32
    %1 = arith.extui %0 : i1 to i32
    %c0_i32_0 = arith.constant 0 : i32
    %2 = arith.cmpi ne, %1, %c0_i32_0 : i32
    scf.if %2 {
      %c0_126 = arith.constant 0 : index
      %c0_127 = arith.constant 0 : index
      %c0_128 = arith.constant 0 : index
      %342 = vector.load %arg2[%c0_126, %c0_127, %c0_128] : memref<2x8x32xbf16, #tpu.memory_space<vmem>>, vector<2x8x32xbf16>
      %343 = arith.extf %342 : vector<2x8x32xbf16> to vector<2x8x32xf32>
      %344 = vector.shape_cast %343 : vector<2x8x32xf32> to vector<16x32xf32>
      %c0_129 = arith.constant 0 : index
      %c0_130 = arith.constant 0 : index
      %345 = vector.load %arg15[%c0_129, %c0_130] : memref<16x32xf32, #tpu.memory_space<vmem>>, vector<16x32xf32>
      tpu.vector_store %arg15[%c0_129, %c0_130], %344 {strides = array<i32>} : memref<16x32xf32, #tpu.memory_space<vmem>>, vector<16x32xf32>,
      %346 = tpu.iota {dimensions = array<i32: 0>} : vector<8x8xi32>
      %347 = tpu.iota {dimensions = array<i32: 1>} : vector<8x8xi32>
      %348 = arith.cmpi sgt, %347, %346 : vector<8x8xi32>
      %cst_131 = arith.constant -1.000000e+09 : f32
      %cst_132 = arith.constant 0.000000e+00 : f32
      %349 = vector.broadcast %cst_131 : f32 to vector<8x8xf32>
      %350 = vector.broadcast %cst_132 : f32 to vector<8x8xf32>
      %351 = arith.select %348, %349, %350 : vector<8x8xi1>, vector<8x8xf32>
      %352 = vector.shape_cast %351 : vector<8x8xf32> to vector<1x8x8xf32>
      %c0_133 = arith.constant 0 : index
      %c0_134 = arith.constant 0 : index
      %c0_135 = arith.constant 0 : index
      %353 = vector.load %arg4[%c0_133, %c0_134, %c0_135] : memref<2x1x8xf32, #tpu.memory_space<vmem>>, vector<2x1x8xf32>
      %354 = vector.broadcast %352 : vector<1x8x8xf32> to vector<2x8x8xf32>
      %355 = vector.broadcast %353 : vector<2x1x8xf32> to vector<2x8x8xf32>
      %356 = arith.addf %354, %355 : vector<2x8x8xf32>
      %c0_136 = arith.constant 0 : index
      %c0_137 = arith.constant 0 : index
      %c0_138 = arith.constant 0 : index
      %357 = vector.load %arg16[%c0_136, %c0_137, %c0_138] : memref<2x8x8xf32, #tpu.memory_space<vmem>>, vector<2x8x8xf32>
      tpu.vector_store %arg16[%c0_136, %c0_137, %c0_138], %356 {strides = array<i32>} : memref<2x8x8xf32, #tpu.memory_space<vmem>>, vector<2x8x8xf32>,
    } else {
    }
    %c0 = arith.constant 0 : index
    %c0_1 = arith.constant 0 : index
    %3 = vector.load %arg15[%c0, %c0_1] : memref<16x32xf32, #tpu.memory_space<vmem>>, vector<16x32xf32>
    %c0_2 = arith.constant 0 : index
    %c0_3 = arith.constant 0 : index
    %c0_4 = arith.constant 0 : index
    %4 = vector.load %arg16[%c0_2, %c0_3, %c0_4] : memref<2x8x8xf32, #tpu.memory_space<vmem>>, vector<2x8x8xf32>
    %c0_5 = arith.constant 0 : index
    %c0_6 = arith.constant 0 : index
    %c0_7 = arith.constant 0 : index
    %5 = vector.load %arg5[%c0_5, %c0_6, %c0_7] : memref<2x1x10xf32, #tpu.memory_space<vmem>>, vector<2x1x10xf32>
    %c0_8 = arith.constant 0 : index
    %c0_9 = arith.constant 0 : index
    %c0_10 = arith.constant 0 : index
    %6 = vector.load %arg3[%c0_8, %c0_9, %c0_10] : memref<2x10x32xbf16, #tpu.memory_space<vmem>>, vector<2x10x32xbf16>
    %7 = vector.shape_cast %6 : vector<2x10x32xbf16> to vector<20x32xbf16>
    %8 = arith.truncf %3 : vector<16x32xf32> to vector<16x32xbf16>
    %c0_11 = arith.constant 0 : index
    %c0_12 = arith.constant 0 : index
    %c0_13 = arith.constant 0 : index
    %9 = vector.load %arg6[%c0_11, %c0_12, %c0_13] : memref<1x32x256xbf16, #tpu.memory_space<vmem>>, vector<1x32x96xbf16>
    %10 = vector.shape_cast %9 : vector<1x32x96xbf16> to vector<32x96xbf16>
    %cst = arith.constant dense<0.000000e+00> : vector<16x96xf32>
    %11 = tpu.matmul %8, %10, %cst {dimension_numbers = #tpu.dot_dimension_numbers<[1], [0], [0], [1], [0, 0, 1, 1], [], []>} : vector<16x32xbf16>, vector<32x96xbf16>, vector<16x96xf32> -> vector<16x96xf32>
    %c0_14 = arith.constant 0 : index
    %c0_15 = arith.constant 0 : index
    %c0_16 = arith.constant 0 : index
    %12 = vector.load %arg7[%c0_14, %c0_15, %c0_16] : memref<1x1x256xf32, #tpu.memory_space<vmem>>, vector<1x1x96xf32>
    %13 = vector.shape_cast %12 : vector<1x1x96xf32> to vector<1x96xf32>
    %14 = vector.broadcast %13 : vector<1x96xf32> to vector<16x96xf32>
    %15 = arith.addf %11, %14 : vector<16x96xf32>
    %16 = vector.shape_cast %15 : vector<16x96xf32> to vector<2x8x96xf32>
    %17 = vector.extract_strided_slice %16 {offsets = [0, 0, 0], sizes = [2, 8, 32], strides = [1, 1, 1]} : vector<2x8x96xf32> to vector<2x8x32xf32>
    %18 = vector.extract_strided_slice %16 {offsets = [0, 0, 32], sizes = [2, 8, 32], strides = [1, 1, 1]} : vector<2x8x96xf32> to vector<2x8x32xf32>
    %19 = vector.extract_strided_slice %16 {offsets = [0, 0, 64], sizes = [2, 8, 32], strides = [1, 1, 1]} : vector<2x8x96xf32> to vector<2x8x32xf32>
    %20 = vector.extract_strided_slice %17 {offsets = [0, 0, 0], sizes = [2, 8, 8], strides = [1, 1, 1]} : vector<2x8x32xf32> to vector<2x8x8xf32>
    %21 = arith.truncf %20 : vector<2x8x8xf32> to vector<2x8x8xbf16>
    %22 = vector.extract_strided_slice %18 {offsets = [0, 0, 0], sizes = [2, 8, 8], strides = [1, 1, 1]} : vector<2x8x32xf32> to vector<2x8x8xf32>
    %23 = arith.truncf %22 : vector<2x8x8xf32> to vector<2x8x8xbf16>
    %24 = vector.extract_strided_slice %19 {offsets = [0, 0, 0], sizes = [2, 8, 8], strides = [1, 1, 1]} : vector<2x8x32xf32> to vector<2x8x8xf32>
    %25 = arith.truncf %24 : vector<2x8x8xf32> to vector<2x8x8xbf16>
    "tpu.trace_start"() <{level = 10 : i32, message = "bqe,bke->bqk"}> : () -> ()
    %cst_17 = arith.constant dense<0.000000e+00> : vector<2x8x8xf32>
    %26 = tpu.matmul %21, %23, %cst_17 {dimension_numbers = #tpu.dot_dimension_numbers<[2], [2], [1], [1], [0, 0, 0, 1, 1, 1], [0], [0]>} : vector<2x8x8xbf16>, vector<2x8x8xbf16>, vector<2x8x8xf32> -> vector<2x8x8xf32>
    "tpu.trace_stop"() : () -> ()
    %cst_18 = arith.constant 0.353553385 : f32
    %27 = vector.broadcast %cst_18 : f32 to vector<2x8x8xf32>
    %28 = arith.mulf %26, %27 : vector<2x8x8xf32>
    %29 = arith.addf %28, %4 : vector<2x8x8xf32>
    %cst_19 = arith.constant dense<0xFF800000> : vector<2x8xf32>
    %30 = vector.multi_reduction <maximumf>, %29, %cst_19 [2] : vector<2x8x8xf32> to vector<2x8xf32>
    %31 = vector.shape_cast %30 : vector<2x8xf32> to vector<2x8x1xf32>
    %32 = vector.broadcast %31 : vector<2x8x1xf32> to vector<2x8x8xf32>
    %33 = arith.subf %29, %32 : vector<2x8x8xf32>
    %34 = math.exp %33 : vector<2x8x8xf32>
    %cst_20 = arith.constant dense<0.000000e+00> : vector<2x8xf32>
    %35 = vector.multi_reduction <add>, %34, %cst_20 [2] : vector<2x8x8xf32> to vector<2x8xf32>
    %36 = vector.shape_cast %35 : vector<2x8xf32> to vector<2x8x1xf32>
    %37 = tpu.reciprocal %36 {approx = true} : vector<2x8x1xf32> -> vector<2x8x1xf32>
    %38 = vector.broadcast %37 : vector<2x8x1xf32> to vector<2x8x8xf32>
    %39 = arith.mulf %34, %38 : vector<2x8x8xf32>
    %40 = arith.truncf %39 : vector<2x8x8xf32> to vector<2x8x8xbf16>
    "tpu.trace_start"() <{level = 10 : i32, message = "bqk,bke->bqe"}> : () -> ()
    %cst_21 = arith.constant dense<0.000000e+00> : vector<2x8x8xf32>
    %41 = tpu.matmul %40, %25, %cst_21 {dimension_numbers = #tpu.dot_dimension_numbers<[2], [1], [1], [2], [0, 0, 0, 1, 1, 2], [0], [0]>} : vector<2x8x8xbf16>, vector<2x8x8xbf16>, vector<2x8x8xf32> -> vector<2x8x8xf32>
    "tpu.trace_stop"() : () -> ()
    %42 = vector.extract_strided_slice %17 {offsets = [0, 0, 8], sizes = [2, 8, 8], strides = [1, 1, 1]} : vector<2x8x32xf32> to vector<2x8x8xf32>
    %43 = arith.truncf %42 : vector<2x8x8xf32> to vector<2x8x8xbf16>
    %44 = vector.extract_strided_slice %18 {offsets = [0, 0, 8], sizes = [2, 8, 8], strides = [1, 1, 1]} : vector<2x8x32xf32> to vector<2x8x8xf32>
    %45 = arith.truncf %44 : vector<2x8x8xf32> to vector<2x8x8xbf16>
    %46 = vector.extract_strided_slice %19 {offsets = [0, 0, 8], sizes = [2, 8, 8], strides = [1, 1, 1]} : vector<2x8x32xf32> to vector<2x8x8xf32>
    %47 = arith.truncf %46 : vector<2x8x8xf32> to vector<2x8x8xbf16>
    "tpu.trace_start"() <{level = 10 : i32, message = "bqe,bke->bqk"}> : () -> ()
    %cst_22 = arith.constant dense<0.000000e+00> : vector<2x8x8xf32>
    %48 = tpu.matmul %43, %45, %cst_22 {dimension_numbers = #tpu.dot_dimension_numbers<[2], [2], [1], [1], [0, 0, 0, 1, 1, 1], [0], [0]>} : vector<2x8x8xbf16>, vector<2x8x8xbf16>, vector<2x8x8xf32> -> vector<2x8x8xf32>
    "tpu.trace_stop"() : () -> ()
    %cst_23 = arith.constant 0.353553385 : f32
    %49 = vector.broadcast %cst_23 : f32 to vector<2x8x8xf32>
    %50 = arith.mulf %48, %49 : vector<2x8x8xf32>
    %51 = arith.addf %50, %4 : vector<2x8x8xf32>
    %cst_24 = arith.constant dense<0xFF800000> : vector<2x8xf32>
    %52 = vector.multi_reduction <maximumf>, %51, %cst_24 [2] : vector<2x8x8xf32> to vector<2x8xf32>
    %53 = vector.shape_cast %52 : vector<2x8xf32> to vector<2x8x1xf32>
    %54 = vector.broadcast %53 : vector<2x8x1xf32> to vector<2x8x8xf32>
    %55 = arith.subf %51, %54 : vector<2x8x8xf32>
    %56 = math.exp %55 : vector<2x8x8xf32>
    %cst_25 = arith.constant dense<0.000000e+00> : vector<2x8xf32>
    %57 = vector.multi_reduction <add>, %56, %cst_25 [2] : vector<2x8x8xf32> to vector<2x8xf32>
    %58 = vector.shape_cast %57 : vector<2x8xf32> to vector<2x8x1xf32>
    %59 = tpu.reciprocal %58 {approx = true} : vector<2x8x1xf32> -> vector<2x8x1xf32>
    %60 = vector.broadcast %59 : vector<2x8x1xf32> to vector<2x8x8xf32>
    %61 = arith.mulf %56, %60 : vector<2x8x8xf32>
    %62 = arith.truncf %61 : vector<2x8x8xf32> to vector<2x8x8xbf16>
    "tpu.trace_start"() <{level = 10 : i32, message = "bqk,bke->bqe"}> : () -> ()
    %cst_26 = arith.constant dense<0.000000e+00> : vector<2x8x8xf32>
    %63 = tpu.matmul %62, %47, %cst_26 {dimension_numbers = #tpu.dot_dimension_numbers<[2], [1], [1], [2], [0, 0, 0, 1, 1, 2], [0], [0]>} : vector<2x8x8xbf16>, vector<2x8x8xbf16>, vector<2x8x8xf32> -> vector<2x8x8xf32>
    "tpu.trace_stop"() : () -> ()
    %64 = vector.extract_strided_slice %17 {offsets = [0, 0, 16], sizes = [2, 8, 8], strides = [1, 1, 1]} : vector<2x8x32xf32> to vector<2x8x8xf32>
    %65 = arith.truncf %64 : vector<2x8x8xf32> to vector<2x8x8xbf16>
    %66 = vector.extract_strided_slice %18 {offsets = [0, 0, 16], sizes = [2, 8, 8], strides = [1, 1, 1]} : vector<2x8x32xf32> to vector<2x8x8xf32>
    %67 = arith.truncf %66 : vector<2x8x8xf32> to vector<2x8x8xbf16>
    %68 = vector.extract_strided_slice %19 {offsets = [0, 0, 16], sizes = [2, 8, 8], strides = [1, 1, 1]} : vector<2x8x32xf32> to vector<2x8x8xf32>
    %69 = arith.truncf %68 : vector<2x8x8xf32> to vector<2x8x8xbf16>
    "tpu.trace_start"() <{level = 10 : i32, message = "bqe,bke->bqk"}> : () -> ()
    %cst_27 = arith.constant dense<0.000000e+00> : vector<2x8x8xf32>
    %70 = tpu.matmul %65, %67, %cst_27 {dimension_numbers = #tpu.dot_dimension_numbers<[2], [2], [1], [1], [0, 0, 0, 1, 1, 1], [0], [0]>} : vector<2x8x8xbf16>, vector<2x8x8xbf16>, vector<2x8x8xf32> -> vector<2x8x8xf32>
    "tpu.trace_stop"() : () -> ()
    %cst_28 = arith.constant 0.353553385 : f32
    %71 = vector.broadcast %cst_28 : f32 to vector<2x8x8xf32>
    %72 = arith.mulf %70, %71 : vector<2x8x8xf32>
    %73 = arith.addf %72, %4 : vector<2x8x8xf32>
    %cst_29 = arith.constant dense<0xFF800000> : vector<2x8xf32>
    %74 = vector.multi_reduction <maximumf>, %73, %cst_29 [2] : vector<2x8x8xf32> to vector<2x8xf32>
    %75 = vector.shape_cast %74 : vector<2x8xf32> to vector<2x8x1xf32>
    %76 = vector.broadcast %75 : vector<2x8x1xf32> to vector<2x8x8xf32>
    %77 = arith.subf %73, %76 : vector<2x8x8xf32>
    %78 = math.exp %77 : vector<2x8x8xf32>
    %cst_30 = arith.constant dense<0.000000e+00> : vector<2x8xf32>
    %79 = vector.multi_reduction <add>, %78, %cst_30 [2] : vector<2x8x8xf32> to vector<2x8xf32>
    %80 = vector.shape_cast %79 : vector<2x8xf32> to vector<2x8x1xf32>
    %81 = tpu.reciprocal %80 {approx = true} : vector<2x8x1xf32> -> vector<2x8x1xf32>
    %82 = vector.broadcast %81 : vector<2x8x1xf32> to vector<2x8x8xf32>
    %83 = arith.mulf %78, %82 : vector<2x8x8xf32>
    %84 = arith.truncf %83 : vector<2x8x8xf32> to vector<2x8x8xbf16>
    "tpu.trace_start"() <{level = 10 : i32, message = "bqk,bke->bqe"}> : () -> ()
    %cst_31 = arith.constant dense<0.000000e+00> : vector<2x8x8xf32>
    %85 = tpu.matmul %84, %69, %cst_31 {dimension_numbers = #tpu.dot_dimension_numbers<[2], [1], [1], [2], [0, 0, 0, 1, 1, 2], [0], [0]>} : vector<2x8x8xbf16>, vector<2x8x8xbf16>, vector<2x8x8xf32> -> vector<2x8x8xf32>
    "tpu.trace_stop"() : () -> ()
    %86 = vector.extract_strided_slice %17 {offsets = [0, 0, 24], sizes = [2, 8, 8], strides = [1, 1, 1]} : vector<2x8x32xf32> to vector<2x8x8xf32>
    %87 = arith.truncf %86 : vector<2x8x8xf32> to vector<2x8x8xbf16>
    %88 = vector.extract_strided_slice %18 {offsets = [0, 0, 24], sizes = [2, 8, 8], strides = [1, 1, 1]} : vector<2x8x32xf32> to vector<2x8x8xf32>
    %89 = arith.truncf %88 : vector<2x8x8xf32> to vector<2x8x8xbf16>
    %90 = vector.extract_strided_slice %19 {offsets = [0, 0, 24], sizes = [2, 8, 8], strides = [1, 1, 1]} : vector<2x8x32xf32> to vector<2x8x8xf32>
    %91 = arith.truncf %90 : vector<2x8x8xf32> to vector<2x8x8xbf16>
    "tpu.trace_start"() <{level = 10 : i32, message = "bqe,bke->bqk"}> : () -> ()
    %cst_32 = arith.constant dense<0.000000e+00> : vector<2x8x8xf32>
    %92 = tpu.matmul %87, %89, %cst_32 {dimension_numbers = #tpu.dot_dimension_numbers<[2], [2], [1], [1], [0, 0, 0, 1, 1, 1], [0], [0]>} : vector<2x8x8xbf16>, vector<2x8x8xbf16>, vector<2x8x8xf32> -> vector<2x8x8xf32>
    "tpu.trace_stop"() : () -> ()
    %cst_33 = arith.constant 0.353553385 : f32
    %93 = vector.broadcast %cst_33 : f32 to vector<2x8x8xf32>
    %94 = arith.mulf %92, %93 : vector<2x8x8xf32>
    %95 = arith.addf %94, %4 : vector<2x8x8xf32>
    %cst_34 = arith.constant dense<0xFF800000> : vector<2x8xf32>
    %96 = vector.multi_reduction <maximumf>, %95, %cst_34 [2] : vector<2x8x8xf32> to vector<2x8xf32>
    %97 = vector.shape_cast %96 : vector<2x8xf32> to vector<2x8x1xf32>
    %98 = vector.broadcast %97 : vector<2x8x1xf32> to vector<2x8x8xf32>
    %99 = arith.subf %95, %98 : vector<2x8x8xf32>
    %100 = math.exp %99 : vector<2x8x8xf32>
    %cst_35 = arith.constant dense<0.000000e+00> : vector<2x8xf32>
    %101 = vector.multi_reduction <add>, %100, %cst_35 [2] : vector<2x8x8xf32> to vector<2x8xf32>
    %102 = vector.shape_cast %101 : vector<2x8xf32> to vector<2x8x1xf32>
    %103 = tpu.reciprocal %102 {approx = true} : vector<2x8x1xf32> -> vector<2x8x1xf32>
    %104 = vector.broadcast %103 : vector<2x8x1xf32> to vector<2x8x8xf32>
    %105 = arith.mulf %100, %104 : vector<2x8x8xf32>
    %106 = arith.truncf %105 : vector<2x8x8xf32> to vector<2x8x8xbf16>
    "tpu.trace_start"() <{level = 10 : i32, message = "bqk,bke->bqe"}> : () -> ()
    %cst_36 = arith.constant dense<0.000000e+00> : vector<2x8x8xf32>
    %107 = tpu.matmul %106, %91, %cst_36 {dimension_numbers = #tpu.dot_dimension_numbers<[2], [1], [1], [2], [0, 0, 0, 1, 1, 2], [0], [0]>} : vector<2x8x8xbf16>, vector<2x8x8xbf16>, vector<2x8x8xf32> -> vector<2x8x8xf32>
    "tpu.trace_stop"() : () -> ()
    %108 = tpu.concatenate %41, %63, %85, %107 in 2 : vector<2x8x8xf32>, vector<2x8x8xf32>, vector<2x8x8xf32>, vector<2x8x8xf32> -> vector<2x8x32xf32>
    %109 = vector.shape_cast %108 : vector<2x8x32xf32> to vector<16x32xf32>
    %110 = arith.truncf %109 : vector<16x32xf32> to vector<16x32xbf16>
    %c0_37 = arith.constant 0 : index
    %c0_38 = arith.constant 0 : index
    %c96 = arith.constant 96 : index
    %111 = vector.load %arg6[%c0_37, %c0_38, %c96] : memref<1x32x256xbf16, #tpu.memory_space<vmem>>, vector<1x32x32xbf16>
    %112 = vector.shape_cast %111 : vector<1x32x32xbf16> to vector<32x32xbf16>
    %cst_39 = arith.constant dense<0.000000e+00> : vector<16x32xf32>
    %113 = tpu.matmul %110, %112, %cst_39 {dimension_numbers = #tpu.dot_dimension_numbers<[1], [0], [0], [1], [0, 0, 1, 1], [], []>} : vector<16x32xbf16>, vector<32x32xbf16>, vector<16x32xf32> -> vector<16x32xf32>
    %c0_40 = arith.constant 0 : index
    %c0_41 = arith.constant 0 : index
    %c96_42 = arith.constant 96 : index
    %114 = vector.load %arg7[%c0_40, %c0_41, %c96_42] : memref<1x1x256xf32, #tpu.memory_space<vmem>>, vector<1x1x32xf32>
    %115 = vector.shape_cast %114 : vector<1x1x32xf32> to vector<1x32xf32>
    %116 = vector.broadcast %115 : vector<1x32xf32> to vector<16x32xf32>
    %117 = arith.addf %113, %116 : vector<16x32xf32>
    %118 = arith.addf %3, %117 : vector<16x32xf32>
    %c0_43 = arith.constant 0 : index
    %c0_44 = arith.constant 0 : index
    %c0_45 = arith.constant 0 : index
    %119 = vector.load %arg11[%c0_43, %c0_44, %c0_45] : memref<1x7x32xf32, #tpu.memory_space<vmem>>, vector<1x1x32xf32>
    %120 = vector.shape_cast %119 : vector<1x1x32xf32> to vector<1x32xf32>
    %c0_46 = arith.constant 0 : index
    %c1 = arith.constant 1 : index
    %c0_47 = arith.constant 0 : index
    %121 = vector.load %arg11[%c0_46, %c1, %c0_47] : memref<1x7x32xf32, #tpu.memory_space<vmem>>, vector<1x1x32xf32>
    %122 = vector.shape_cast %121 : vector<1x1x32xf32> to vector<1x32xf32>
    %cst_48 = arith.constant dense<0.000000e+00> : vector<16xf32>
    %123 = vector.multi_reduction <add>, %118, %cst_48 [1] : vector<16x32xf32> to vector<16xf32>
    %124 = vector.shape_cast %123 : vector<16xf32> to vector<16x1xf32>
    %cst_49 = arith.constant 3.200000e+01 : f32
    %125 = vector.broadcast %cst_49 : f32 to vector<16x1xf32>
    %126 = arith.divf %124, %125 : vector<16x1xf32>
    %127 = vector.broadcast %126 : vector<16x1xf32> to vector<16x32xf32>
    %128 = arith.subf %118, %127 : vector<16x32xf32>
    %129 = arith.mulf %128, %128 : vector<16x32xf32>
    %cst_50 = arith.constant dense<0.000000e+00> : vector<16xf32>
    %130 = vector.multi_reduction <add>, %129, %cst_50 [1] : vector<16x32xf32> to vector<16xf32>
    %131 = vector.shape_cast %130 : vector<16xf32> to vector<16x1xf32>
    %cst_51 = arith.constant 3.200000e+01 : f32
    %132 = vector.broadcast %cst_51 : f32 to vector<16x1xf32>
    %133 = arith.divf %131, %132 : vector<16x1xf32>
    %134 = vector.broadcast %126 : vector<16x1xf32> to vector<16x32xf32>
    %135 = arith.subf %118, %134 : vector<16x32xf32>
    %cst_52 = arith.constant 9.99999974E-6 : f32
    %136 = vector.broadcast %cst_52 : f32 to vector<16x1xf32>
    %137 = arith.addf %133, %136 : vector<16x1xf32>
    %138 = math.rsqrt %137 : vector<16x1xf32>
    %139 = vector.broadcast %138 : vector<16x1xf32> to vector<16x32xf32>
    %140 = arith.mulf %135, %139 : vector<16x32xf32>
    %141 = vector.broadcast %120 : vector<1x32xf32> to vector<16x32xf32>
    %142 = arith.mulf %140, %141 : vector<16x32xf32>
    %143 = vector.broadcast %122 : vector<1x32xf32> to vector<16x32xf32>
    %144 = arith.addf %142, %143 : vector<16x32xf32>
    %145 = arith.truncf %144 : vector<16x32xf32> to vector<16x32xbf16>
    %c0_53 = arith.constant 0 : index
    %c0_54 = arith.constant 0 : index
    %c128 = arith.constant 128 : index
    %146 = vector.load %arg6[%c0_53, %c0_54, %c128] : memref<1x32x256xbf16, #tpu.memory_space<vmem>>, vector<1x32x32xbf16>
    %147 = vector.shape_cast %146 : vector<1x32x32xbf16> to vector<32x32xbf16>
    %cst_55 = arith.constant dense<0.000000e+00> : vector<16x32xf32>
    %148 = tpu.matmul %145, %147, %cst_55 {dimension_numbers = #tpu.dot_dimension_numbers<[1], [0], [0], [1], [0, 0, 1, 1], [], []>} : vector<16x32xbf16>, vector<32x32xbf16>, vector<16x32xf32> -> vector<16x32xf32>
    %c0_56 = arith.constant 0 : index
    %c0_57 = arith.constant 0 : index
    %c128_58 = arith.constant 128 : index
    %149 = vector.load %arg7[%c0_56, %c0_57, %c128_58] : memref<1x1x256xf32, #tpu.memory_space<vmem>>, vector<1x1x32xf32>
    %150 = vector.shape_cast %149 : vector<1x1x32xf32> to vector<1x32xf32>
    %151 = vector.broadcast %150 : vector<1x32xf32> to vector<16x32xf32>
    %152 = arith.addf %148, %151 : vector<16x32xf32>
    %153 = vector.shape_cast %152 : vector<16x32xf32> to vector<2x8x32xf32>
    %c0_59 = arith.constant 0 : index
    %c0_60 = arith.constant 0 : index
    %c160 = arith.constant 160 : index
    %154 = vector.load %arg6[%c0_59, %c0_60, %c160] : memref<1x32x256xbf16, #tpu.memory_space<vmem>>, vector<1x32x64xbf16>
    %155 = vector.shape_cast %154 : vector<1x32x64xbf16> to vector<32x64xbf16>
    %cst_61 = arith.constant dense<0.000000e+00> : vector<20x64xf32>
    %156 = tpu.matmul %7, %155, %cst_61 {dimension_numbers = #tpu.dot_dimension_numbers<[1], [0], [0], [1], [0, 0, 1, 1], [], []>} : vector<20x32xbf16>, vector<32x64xbf16>, vector<20x64xf32> -> vector<20x64xf32>
    %c0_62 = arith.constant 0 : index
    %c0_63 = arith.constant 0 : index
    %c160_64 = arith.constant 160 : index
    %157 = vector.load %arg7[%c0_62, %c0_63, %c160_64] : memref<1x1x256xf32, #tpu.memory_space<vmem>>, vector<1x1x64xf32>
    %158 = vector.shape_cast %157 : vector<1x1x64xf32> to vector<1x64xf32>
    %159 = vector.broadcast %158 : vector<1x64xf32> to vector<20x64xf32>
    %160 = arith.addf %156, %159 : vector<20x64xf32>
    %161 = vector.shape_cast %160 : vector<20x64xf32> to vector<2x10x64xf32>
    %162 = vector.extract_strided_slice %161 {offsets = [0, 0, 0], sizes = [2, 10, 32], strides = [1, 1, 1]} : vector<2x10x64xf32> to vector<2x10x32xf32>
    %163 = vector.extract_strided_slice %161 {offsets = [0, 0, 32], sizes = [2, 10, 32], strides = [1, 1, 1]} : vector<2x10x64xf32> to vector<2x10x32xf32>
    %164 = vector.extract_strided_slice %153 {offsets = [0, 0, 0], sizes = [2, 8, 8], strides = [1, 1, 1]} : vector<2x8x32xf32> to vector<2x8x8xf32>
    %165 = arith.truncf %164 : vector<2x8x8xf32> to vector<2x8x8xbf16>
    %166 = vector.extract_strided_slice %162 {offsets = [0, 0, 0], sizes = [2, 10, 8], strides = [1, 1, 1]} : vector<2x10x32xf32> to vector<2x10x8xf32>
    %167 = arith.truncf %166 : vector<2x10x8xf32> to vector<2x10x8xbf16>
    %168 = vector.extract_strided_slice %163 {offsets = [0, 0, 0], sizes = [2, 10, 8], strides = [1, 1, 1]} : vector<2x10x32xf32> to vector<2x10x8xf32>
    %169 = arith.truncf %168 : vector<2x10x8xf32> to vector<2x10x8xbf16>
    "tpu.trace_start"() <{level = 10 : i32, message = "bqe,bke->bqk"}> : () -> ()
    %cst_65 = arith.constant dense<0.000000e+00> : vector<2x8x10xf32>
    %170 = tpu.matmul %165, %167, %cst_65 {dimension_numbers = #tpu.dot_dimension_numbers<[2], [2], [1], [1], [0, 0, 0, 1, 1, 1], [0], [0]>} : vector<2x8x8xbf16>, vector<2x10x8xbf16>, vector<2x8x10xf32> -> vector<2x8x10xf32>
    "tpu.trace_stop"() : () -> ()
    %cst_66 = arith.constant 0.353553385 : f32
    %171 = vector.broadcast %cst_66 : f32 to vector<2x8x10xf32>
    %172 = arith.mulf %170, %171 : vector<2x8x10xf32>
    %173 = vector.broadcast %5 : vector<2x1x10xf32> to vector<2x8x10xf32>
    %174 = arith.addf %172, %173 : vector<2x8x10xf32>
    %cst_67 = arith.constant dense<0xFF800000> : vector<2x8xf32>
    %175 = vector.multi_reduction <maximumf>, %174, %cst_67 [2] : vector<2x8x10xf32> to vector<2x8xf32>
    %176 = vector.shape_cast %175 : vector<2x8xf32> to vector<2x8x1xf32>
    %177 = vector.broadcast %176 : vector<2x8x1xf32> to vector<2x8x10xf32>
    %178 = arith.subf %174, %177 : vector<2x8x10xf32>
    %179 = math.exp %178 : vector<2x8x10xf32>
    %cst_68 = arith.constant dense<0.000000e+00> : vector<2x8xf32>
    %180 = vector.multi_reduction <add>, %179, %cst_68 [2] : vector<2x8x10xf32> to vector<2x8xf32>
    %181 = vector.shape_cast %180 : vector<2x8xf32> to vector<2x8x1xf32>
    %182 = tpu.reciprocal %181 {approx = true} : vector<2x8x1xf32> -> vector<2x8x1xf32>
    %183 = vector.broadcast %182 : vector<2x8x1xf32> to vector<2x8x10xf32>
    %184 = arith.mulf %179, %183 : vector<2x8x10xf32>
    %185 = arith.truncf %184 : vector<2x8x10xf32> to vector<2x8x10xbf16>
    "tpu.trace_start"() <{level = 10 : i32, message = "bqk,bke->bqe"}> : () -> ()
    %cst_69 = arith.constant dense<0.000000e+00> : vector<2x8x8xf32>
    %186 = tpu.matmul %185, %169, %cst_69 {dimension_numbers = #tpu.dot_dimension_numbers<[2], [1], [1], [2], [0, 0, 0, 1, 1, 2], [0], [0]>} : vector<2x8x10xbf16>, vector<2x10x8xbf16>, vector<2x8x8xf32> -> vector<2x8x8xf32>
    "tpu.trace_stop"() : () -> ()
    %187 = vector.extract_strided_slice %153 {offsets = [0, 0, 8], sizes = [2, 8, 8], strides = [1, 1, 1]} : vector<2x8x32xf32> to vector<2x8x8xf32>
    %188 = arith.truncf %187 : vector<2x8x8xf32> to vector<2x8x8xbf16>
    %189 = vector.extract_strided_slice %162 {offsets = [0, 0, 8], sizes = [2, 10, 8], strides = [1, 1, 1]} : vector<2x10x32xf32> to vector<2x10x8xf32>
    %190 = arith.truncf %189 : vector<2x10x8xf32> to vector<2x10x8xbf16>
    %191 = vector.extract_strided_slice %163 {offsets = [0, 0, 8], sizes = [2, 10, 8], strides = [1, 1, 1]} : vector<2x10x32xf32> to vector<2x10x8xf32>
    %192 = arith.truncf %191 : vector<2x10x8xf32> to vector<2x10x8xbf16>
    "tpu.trace_start"() <{level = 10 : i32, message = "bqe,bke->bqk"}> : () -> ()
    %cst_70 = arith.constant dense<0.000000e+00> : vector<2x8x10xf32>
    %193 = tpu.matmul %188, %190, %cst_70 {dimension_numbers = #tpu.dot_dimension_numbers<[2], [2], [1], [1], [0, 0, 0, 1, 1, 1], [0], [0]>} : vector<2x8x8xbf16>, vector<2x10x8xbf16>, vector<2x8x10xf32> -> vector<2x8x10xf32>
    "tpu.trace_stop"() : () -> ()
    %cst_71 = arith.constant 0.353553385 : f32
    %194 = vector.broadcast %cst_71 : f32 to vector<2x8x10xf32>
    %195 = arith.mulf %193, %194 : vector<2x8x10xf32>
    %196 = vector.broadcast %5 : vector<2x1x10xf32> to vector<2x8x10xf32>
    %197 = arith.addf %195, %196 : vector<2x8x10xf32>
    %cst_72 = arith.constant dense<0xFF800000> : vector<2x8xf32>
    %198 = vector.multi_reduction <maximumf>, %197, %cst_72 [2] : vector<2x8x10xf32> to vector<2x8xf32>
    %199 = vector.shape_cast %198 : vector<2x8xf32> to vector<2x8x1xf32>
    %200 = vector.broadcast %199 : vector<2x8x1xf32> to vector<2x8x10xf32>
    %201 = arith.subf %197, %200 : vector<2x8x10xf32>
    %202 = math.exp %201 : vector<2x8x10xf32>
    %cst_73 = arith.constant dense<0.000000e+00> : vector<2x8xf32>
    %203 = vector.multi_reduction <add>, %202, %cst_73 [2] : vector<2x8x10xf32> to vector<2x8xf32>
    %204 = vector.shape_cast %203 : vector<2x8xf32> to vector<2x8x1xf32>
    %205 = tpu.reciprocal %204 {approx = true} : vector<2x8x1xf32> -> vector<2x8x1xf32>
    %206 = vector.broadcast %205 : vector<2x8x1xf32> to vector<2x8x10xf32>
    %207 = arith.mulf %202, %206 : vector<2x8x10xf32>
    %208 = arith.truncf %207 : vector<2x8x10xf32> to vector<2x8x10xbf16>
    "tpu.trace_start"() <{level = 10 : i32, message = "bqk,bke->bqe"}> : () -> ()
    %cst_74 = arith.constant dense<0.000000e+00> : vector<2x8x8xf32>
    %209 = tpu.matmul %208, %192, %cst_74 {dimension_numbers = #tpu.dot_dimension_numbers<[2], [1], [1], [2], [0, 0, 0, 1, 1, 2], [0], [0]>} : vector<2x8x10xbf16>, vector<2x10x8xbf16>, vector<2x8x8xf32> -> vector<2x8x8xf32>
    "tpu.trace_stop"() : () -> ()
    %210 = vector.extract_strided_slice %153 {offsets = [0, 0, 16], sizes = [2, 8, 8], strides = [1, 1, 1]} : vector<2x8x32xf32> to vector<2x8x8xf32>
    %211 = arith.truncf %210 : vector<2x8x8xf32> to vector<2x8x8xbf16>
    %212 = vector.extract_strided_slice %162 {offsets = [0, 0, 16], sizes = [2, 10, 8], strides = [1, 1, 1]} : vector<2x10x32xf32> to vector<2x10x8xf32>
    %213 = arith.truncf %212 : vector<2x10x8xf32> to vector<2x10x8xbf16>
    %214 = vector.extract_strided_slice %163 {offsets = [0, 0, 16], sizes = [2, 10, 8], strides = [1, 1, 1]} : vector<2x10x32xf32> to vector<2x10x8xf32>
    %215 = arith.truncf %214 : vector<2x10x8xf32> to vector<2x10x8xbf16>
    "tpu.trace_start"() <{level = 10 : i32, message = "bqe,bke->bqk"}> : () -> ()
    %cst_75 = arith.constant dense<0.000000e+00> : vector<2x8x10xf32>
    %216 = tpu.matmul %211, %213, %cst_75 {dimension_numbers = #tpu.dot_dimension_numbers<[2], [2], [1], [1], [0, 0, 0, 1, 1, 1], [0], [0]>} : vector<2x8x8xbf16>, vector<2x10x8xbf16>, vector<2x8x10xf32> -> vector<2x8x10xf32>
    "tpu.trace_stop"() : () -> ()
    %cst_76 = arith.constant 0.353553385 : f32
    %217 = vector.broadcast %cst_76 : f32 to vector<2x8x10xf32>
    %218 = arith.mulf %216, %217 : vector<2x8x10xf32>
    %219 = vector.broadcast %5 : vector<2x1x10xf32> to vector<2x8x10xf32>
    %220 = arith.addf %218, %219 : vector<2x8x10xf32>
    %cst_77 = arith.constant dense<0xFF800000> : vector<2x8xf32>
    %221 = vector.multi_reduction <maximumf>, %220, %cst_77 [2] : vector<2x8x10xf32> to vector<2x8xf32>
    %222 = vector.shape_cast %221 : vector<2x8xf32> to vector<2x8x1xf32>
    %223 = vector.broadcast %222 : vector<2x8x1xf32> to vector<2x8x10xf32>
    %224 = arith.subf %220, %223 : vector<2x8x10xf32>
    %225 = math.exp %224 : vector<2x8x10xf32>
    %cst_78 = arith.constant dense<0.000000e+00> : vector<2x8xf32>
    %226 = vector.multi_reduction <add>, %225, %cst_78 [2] : vector<2x8x10xf32> to vector<2x8xf32>
    %227 = vector.shape_cast %226 : vector<2x8xf32> to vector<2x8x1xf32>
    %228 = tpu.reciprocal %227 {approx = true} : vector<2x8x1xf32> -> vector<2x8x1xf32>
    %229 = vector.broadcast %228 : vector<2x8x1xf32> to vector<2x8x10xf32>
    %230 = arith.mulf %225, %229 : vector<2x8x10xf32>
    %231 = arith.truncf %230 : vector<2x8x10xf32> to vector<2x8x10xbf16>
    "tpu.trace_start"() <{level = 10 : i32, message = "bqk,bke->bqe"}> : () -> ()
    %cst_79 = arith.constant dense<0.000000e+00> : vector<2x8x8xf32>
    %232 = tpu.matmul %231, %215, %cst_79 {dimension_numbers = #tpu.dot_dimension_numbers<[2], [1], [1], [2], [0, 0, 0, 1, 1, 2], [0], [0]>} : vector<2x8x10xbf16>, vector<2x10x8xbf16>, vector<2x8x8xf32> -> vector<2x8x8xf32>
    "tpu.trace_stop"() : () -> ()
    %233 = vector.extract_strided_slice %153 {offsets = [0, 0, 24], sizes = [2, 8, 8], strides = [1, 1, 1]} : vector<2x8x32xf32> to vector<2x8x8xf32>
    %234 = arith.truncf %233 : vector<2x8x8xf32> to vector<2x8x8xbf16>
    %235 = vector.extract_strided_slice %162 {offsets = [0, 0, 24], sizes = [2, 10, 8], strides = [1, 1, 1]} : vector<2x10x32xf32> to vector<2x10x8xf32>
    %236 = arith.truncf %235 : vector<2x10x8xf32> to vector<2x10x8xbf16>
    %237 = vector.extract_strided_slice %163 {offsets = [0, 0, 24], sizes = [2, 10, 8], strides = [1, 1, 1]} : vector<2x10x32xf32> to vector<2x10x8xf32>
    %238 = arith.truncf %237 : vector<2x10x8xf32> to vector<2x10x8xbf16>
    "tpu.trace_start"() <{level = 10 : i32, message = "bqe,bke->bqk"}> : () -> ()
    %cst_80 = arith.constant dense<0.000000e+00> : vector<2x8x10xf32>
    %239 = tpu.matmul %234, %236, %cst_80 {dimension_numbers = #tpu.dot_dimension_numbers<[2], [2], [1], [1], [0, 0, 0, 1, 1, 1], [0], [0]>} : vector<2x8x8xbf16>, vector<2x10x8xbf16>, vector<2x8x10xf32> -> vector<2x8x10xf32>
    "tpu.trace_stop"() : () -> ()
    %cst_81 = arith.constant 0.353553385 : f32
    %240 = vector.broadcast %cst_81 : f32 to vector<2x8x10xf32>
    %241 = arith.mulf %239, %240 : vector<2x8x10xf32>
    %242 = vector.broadcast %5 : vector<2x1x10xf32> to vector<2x8x10xf32>
    %243 = arith.addf %241, %242 : vector<2x8x10xf32>
    %cst_82 = arith.constant dense<0xFF800000> : vector<2x8xf32>
    %244 = vector.multi_reduction <maximumf>, %243, %cst_82 [2] : vector<2x8x10xf32> to vector<2x8xf32>
    %245 = vector.shape_cast %244 : vector<2x8xf32> to vector<2x8x1xf32>
    %246 = vector.broadcast %245 : vector<2x8x1xf32> to vector<2x8x10xf32>
    %247 = arith.subf %243, %246 : vector<2x8x10xf32>
    %248 = math.exp %247 : vector<2x8x10xf32>
    %cst_83 = arith.constant dense<0.000000e+00> : vector<2x8xf32>
    %249 = vector.multi_reduction <add>, %248, %cst_83 [2] : vector<2x8x10xf32> to vector<2x8xf32>
    %250 = vector.shape_cast %249 : vector<2x8xf32> to vector<2x8x1xf32>
    %251 = tpu.reciprocal %250 {approx = true} : vector<2x8x1xf32> -> vector<2x8x1xf32>
    %252 = vector.broadcast %251 : vector<2x8x1xf32> to vector<2x8x10xf32>
    %253 = arith.mulf %248, %252 : vector<2x8x10xf32>
    %254 = arith.truncf %253 : vector<2x8x10xf32> to vector<2x8x10xbf16>
    "tpu.trace_start"() <{level = 10 : i32, message = "bqk,bke->bqe"}> : () -> ()
    %cst_84 = arith.constant dense<0.000000e+00> : vector<2x8x8xf32>
    %255 = tpu.matmul %254, %238, %cst_84 {dimension_numbers = #tpu.dot_dimension_numbers<[2], [1], [1], [2], [0, 0, 0, 1, 1, 2], [0], [0]>} : vector<2x8x10xbf16>, vector<2x10x8xbf16>, vector<2x8x8xf32> -> vector<2x8x8xf32>
    "tpu.trace_stop"() : () -> ()
    %256 = tpu.concatenate %186, %209, %232, %255 in 2 : vector<2x8x8xf32>, vector<2x8x8xf32>, vector<2x8x8xf32>, vector<2x8x8xf32> -> vector<2x8x32xf32>
    %257 = vector.shape_cast %256 : vector<2x8x32xf32> to vector<16x32xf32>
    %258 = arith.truncf %257 : vector<16x32xf32> to vector<16x32xbf16>
    %c0_85 = arith.constant 0 : index
    %c0_86 = arith.constant 0 : index
    %c224 = arith.constant 224 : index
    %259 = vector.load %arg6[%c0_85, %c0_86, %c224] : memref<1x32x256xbf16, #tpu.memory_space<vmem>>, vector<1x32x32xbf16>
    %260 = vector.shape_cast %259 : vector<1x32x32xbf16> to vector<32x32xbf16>
    %cst_87 = arith.constant dense<0.000000e+00> : vector<16x32xf32>
    %261 = tpu.matmul %258, %260, %cst_87 {dimension_numbers = #tpu.dot_dimension_numbers<[1], [0], [0], [1], [0, 0, 1, 1], [], []>} : vector<16x32xbf16>, vector<32x32xbf16>, vector<16x32xf32> -> vector<16x32xf32>
    %c0_88 = arith.constant 0 : index
    %c0_89 = arith.constant 0 : index
    %c224_90 = arith.constant 224 : index
    %262 = vector.load %arg7[%c0_88, %c0_89, %c224_90] : memref<1x1x256xf32, #tpu.memory_space<vmem>>, vector<1x1x32xf32>
    %263 = vector.shape_cast %262 : vector<1x1x32xf32> to vector<1x32xf32>
    %264 = vector.broadcast %263 : vector<1x32xf32> to vector<16x32xf32>
    %265 = arith.addf %261, %264 : vector<16x32xf32>
    %266 = arith.addf %144, %265 : vector<16x32xf32>
    %c0_91 = arith.constant 0 : index
    %c2 = arith.constant 2 : index
    %c0_92 = arith.constant 0 : index
    %267 = vector.load %arg11[%c0_91, %c2, %c0_92] : memref<1x7x32xf32, #tpu.memory_space<vmem>>, vector<1x1x32xf32>
    %268 = vector.shape_cast %267 : vector<1x1x32xf32> to vector<1x32xf32>
    %c0_93 = arith.constant 0 : index
    %c3 = arith.constant 3 : index
    %c0_94 = arith.constant 0 : index
    %269 = vector.load %arg11[%c0_93, %c3, %c0_94] : memref<1x7x32xf32, #tpu.memory_space<vmem>>, vector<1x1x32xf32>
    %270 = vector.shape_cast %269 : vector<1x1x32xf32> to vector<1x32xf32>
    %cst_95 = arith.constant dense<0.000000e+00> : vector<16xf32>
    %271 = vector.multi_reduction <add>, %266, %cst_95 [1] : vector<16x32xf32> to vector<16xf32>
    %272 = vector.shape_cast %271 : vector<16xf32> to vector<16x1xf32>
    %cst_96 = arith.constant 3.200000e+01 : f32
    %273 = vector.broadcast %cst_96 : f32 to vector<16x1xf32>
    %274 = arith.divf %272, %273 : vector<16x1xf32>
    %275 = vector.broadcast %274 : vector<16x1xf32> to vector<16x32xf32>
    %276 = arith.subf %266, %275 : vector<16x32xf32>
    %277 = arith.mulf %276, %276 : vector<16x32xf32>
    %cst_97 = arith.constant dense<0.000000e+00> : vector<16xf32>
    %278 = vector.multi_reduction <add>, %277, %cst_97 [1] : vector<16x32xf32> to vector<16xf32>
    %279 = vector.shape_cast %278 : vector<16xf32> to vector<16x1xf32>
    %cst_98 = arith.constant 3.200000e+01 : f32
    %280 = vector.broadcast %cst_98 : f32 to vector<16x1xf32>
    %281 = arith.divf %279, %280 : vector<16x1xf32>
    %282 = vector.broadcast %274 : vector<16x1xf32> to vector<16x32xf32>
    %283 = arith.subf %266, %282 : vector<16x32xf32>
    %cst_99 = arith.constant 9.99999974E-6 : f32
    %284 = vector.broadcast %cst_99 : f32 to vector<16x1xf32>
    %285 = arith.addf %281, %284 : vector<16x1xf32>
    %286 = math.rsqrt %285 : vector<16x1xf32>
    %287 = vector.broadcast %286 : vector<16x1xf32> to vector<16x32xf32>
    %288 = arith.mulf %283, %287 : vector<16x32xf32>
    %289 = vector.broadcast %268 : vector<1x32xf32> to vector<16x32xf32>
    %290 = arith.mulf %288, %289 : vector<16x32xf32>
    %291 = vector.broadcast %270 : vector<1x32xf32> to vector<16x32xf32>
    %292 = arith.addf %290, %291 : vector<16x32xf32>
    %293 = arith.truncf %292 : vector<16x32xf32> to vector<16x32xbf16>
    %c0_100 = arith.constant 0 : index
    %c0_101 = arith.constant 0 : index
    %c0_102 = arith.constant 0 : index
    %294 = vector.load %arg8[%c0_100, %c0_101, %c0_102] : memref<1x32x64xbf16, #tpu.memory_space<vmem>>, vector<1x32x64xbf16>
    %295 = vector.shape_cast %294 : vector<1x32x64xbf16> to vector<32x64xbf16>
    %cst_103 = arith.constant dense<0.000000e+00> : vector<16x64xf32>
    %296 = tpu.matmul %293, %295, %cst_103 {dimension_numbers = #tpu.dot_dimension_numbers<[1], [0], [0], [1], [0, 0, 1, 1], [], []>} : vector<16x32xbf16>, vector<32x64xbf16>, vector<16x64xf32> -> vector<16x64xf32>
    %c0_104 = arith.constant 0 : index
    %c0_105 = arith.constant 0 : index
    %c0_106 = arith.constant 0 : index
    %297 = vector.load %arg9[%c0_104, %c0_105, %c0_106] : memref<1x1x64xf32, #tpu.memory_space<vmem>>, vector<1x1x64xf32>
    %298 = vector.shape_cast %297 : vector<1x1x64xf32> to vector<1x64xf32>
    %299 = vector.broadcast %298 : vector<1x64xf32> to vector<16x64xf32>
    %300 = arith.addf %296, %299 : vector<16x64xf32>
    %cst_107 = arith.constant 0.000000e+00 : f32
    %301 = vector.broadcast %cst_107 : f32 to vector<16x64xf32>
    %302 = arith.maximumf %300, %301 : vector<16x64xf32>
    %303 = arith.truncf %302 : vector<16x64xf32> to vector<16x64xbf16>
    %c0_108 = arith.constant 0 : index
    %c0_109 = arith.constant 0 : index
    %c0_110 = arith.constant 0 : index
    %304 = vector.load %arg10[%c0_108, %c0_109, %c0_110] : memref<1x64x32xbf16, #tpu.memory_space<vmem>>, vector<1x64x32xbf16>
    %305 = vector.shape_cast %304 : vector<1x64x32xbf16> to vector<64x32xbf16>
    %cst_111 = arith.constant dense<0.000000e+00> : vector<16x32xf32>
    %306 = tpu.matmul %303, %305, %cst_111 {dimension_numbers = #tpu.dot_dimension_numbers<[1], [0], [0], [1], [0, 0, 1, 1], [], []>} : vector<16x64xbf16>, vector<64x32xbf16>, vector<16x32xf32> -> vector<16x32xf32>
    %c0_112 = arith.constant 0 : index
    %c6 = arith.constant 6 : index
    %c0_113 = arith.constant 0 : index
    %307 = vector.load %arg11[%c0_112, %c6, %c0_113] : memref<1x7x32xf32, #tpu.memory_space<vmem>>, vector<1x1x32xf32>
    %308 = vector.shape_cast %307 : vector<1x1x32xf32> to vector<1x32xf32>
    %309 = vector.broadcast %308 : vector<1x32xf32> to vector<16x32xf32>
    %310 = arith.addf %306, %309 : vector<16x32xf32>
    %311 = arith.addf %292, %310 : vector<16x32xf32>
    %c0_114 = arith.constant 0 : index
    %c4 = arith.constant 4 : index
    %c0_115 = arith.constant 0 : index
    %312 = vector.load %arg11[%c0_114, %c4, %c0_115] : memref<1x7x32xf32, #tpu.memory_space<vmem>>, vector<1x1x32xf32>
    %313 = vector.shape_cast %312 : vector<1x1x32xf32> to vector<1x32xf32>
    %c0_116 = arith.constant 0 : index
    %c5 = arith.constant 5 : index
    %c0_117 = arith.constant 0 : index
    %314 = vector.load %arg11[%c0_116, %c5, %c0_117] : memref<1x7x32xf32, #tpu.memory_space<vmem>>, vector<1x1x32xf32>
    %315 = vector.shape_cast %314 : vector<1x1x32xf32> to vector<1x32xf32>
    %cst_118 = arith.constant dense<0.000000e+00> : vector<16xf32>
    %316 = vector.multi_reduction <add>, %311, %cst_118 [1] : vector<16x32xf32> to vector<16xf32>
    %317 = vector.shape_cast %316 : vector<16xf32> to vector<16x1xf32>
    %cst_119 = arith.constant 3.200000e+01 : f32
    %318 = vector.broadcast %cst_119 : f32 to vector<16x1xf32>
    %319 = arith.divf %317, %318 : vector<16x1xf32>
    %320 = vector.broadcast %319 : vector<16x1xf32> to vector<16x32xf32>
    %321 = arith.subf %311, %320 : vector<16x32xf32>
    %322 = arith.mulf %321, %321 : vector<16x32xf32>
    %cst_120 = arith.constant dense<0.000000e+00> : vector<16xf32>
    %323 = vector.multi_reduction <add>, %322, %cst_120 [1] : vector<16x32xf32> to vector<16xf32>
    %324 = vector.shape_cast %323 : vector<16xf32> to vector<16x1xf32>
    %cst_121 = arith.constant 3.200000e+01 : f32
    %325 = vector.broadcast %cst_121 : f32 to vector<16x1xf32>
    %326 = arith.divf %324, %325 : vector<16x1xf32>
    %327 = vector.broadcast %319 : vector<16x1xf32> to vector<16x32xf32>
    %328 = arith.subf %311, %327 : vector<16x32xf32>
    %cst_122 = arith.constant 9.99999974E-6 : f32
    %329 = vector.broadcast %cst_122 : f32 to vector<16x1xf32>
    %330 = arith.addf %326, %329 : vector<16x1xf32>
    %331 = math.rsqrt %330 : vector<16x1xf32>
    %332 = vector.broadcast %331 : vector<16x1xf32> to vector<16x32xf32>
    %333 = arith.mulf %328, %332 : vector<16x32xf32>
    %334 = vector.broadcast %313 : vector<1x32xf32> to vector<16x32xf32>
    %335 = arith.mulf %333, %334 : vector<16x32xf32>
    %336 = vector.broadcast %315 : vector<1x32xf32> to vector<16x32xf32>
    %337 = arith.addf %335, %336 : vector<16x32xf32>
    %c0_123 = arith.constant 0 : index
    %c0_124 = arith.constant 0 : index
    %338 = vector.load %arg15[%c0_123, %c0_124] : memref<16x32xf32, #tpu.memory_space<vmem>>, vector<16x32xf32>
    tpu.vector_store %arg15[%c0_123, %c0_124], %337 {strides = array<i32>} : memref<16x32xf32, #tpu.memory_space<vmem>>, vector<16x32xf32>,
    %c1_i32 = arith.constant 1 : i32
    %339 = arith.cmpi eq, %arg1, %c1_i32 : i32
    %340 = arith.extui %339 : i1 to i32
    %c0_i32_125 = arith.constant 0 : i32
    %341 = arith.cmpi ne, %340, %c0_i32_125 : i32
    scf.if %341 {
      %342 = arith.truncf %337 : vector<16x32xf32> to vector<16x32xbf16>
      %c0_126 = arith.constant 0 : index
      %c0_127 = arith.constant 0 : index
      %343 = vector.load %arg12[%c0_126, %c0_127] : memref<32x128xbf16, #tpu.memory_space<vmem>>, vector<32x128xbf16>
      %cst_128 = arith.constant dense<0.000000e+00> : vector<16x128xf32>
      %344 = tpu.matmul %342, %343, %cst_128 {dimension_numbers = #tpu.dot_dimension_numbers<[1], [0], [0], [1], [0, 0, 1, 1], [], []>} : vector<16x32xbf16>, vector<32x128xbf16>, vector<16x128xf32> -> vector<16x128xf32>
      %c0_129 = arith.constant 0 : index
      %c0_130 = arith.constant 0 : index
      %345 = vector.load %arg13[%c0_129, %c0_130] : memref<1x128xf32, #tpu.memory_space<vmem>>, vector<1x128xf32>
      %346 = vector.broadcast %345 : vector<1x128xf32> to vector<16x128xf32>
      %347 = arith.addf %344, %346 : vector<16x128xf32>
      %348 = vector.shape_cast %347 : vector<16x128xf32> to vector<2x8x128xf32>
      %c0_131 = arith.constant 0 : index
      %c0_132 = arith.constant 0 : index
      %c0_133 = arith.constant 0 : index
      %349 = vector.load %arg14[%c0_131, %c0_132, %c0_133] : memref<2x8x128xf32, #tpu.memory_space<vmem>>, vector<2x8x128xf32>
      tpu.vector_store %arg14[%c0_131, %c0_132, %c0_133], %348 {strides = array<i32>} : memref<2x8x128xf32, #tpu.memory_space<vmem>>, vector<2x8x128xf32>,
    } else {
    }
    return
  }
  func.func @transform_0(%arg0: i32, %arg1: i32) -> (i32, i32, i32) {
    %c0_i32 = arith.constant 0 : i32
    %c0_i32_0 = arith.constant 0 : i32
    %c0_i32_1 = arith.constant 0 : i32
    return %arg0, %c0_i32, %c0_i32_0 : i32, i32, i32
  }
  func.func @transform_1(%arg0: i32, %arg1: i32) -> (i32, i32, i32) {
    %c0_i32 = arith.constant 0 : i32
    %c0_i32_0 = arith.constant 0 : i32
    %c0_i32_1 = arith.constant 0 : i32
    return %arg0, %c0_i32, %c0_i32_0 : i32, i32, i32
  }
  func.func @transform_2(%arg0: i32, %arg1: i32) -> (i32, i32, i32) {
    %c0_i32 = arith.constant 0 : i32
    %c0_i32_0 = arith.constant 0 : i32
    %c0_i32_1 = arith.constant 0 : i32
    return %arg0, %c0_i32, %c0_i32_0 : i32, i32, i32
  }
  func.func @transform_3(%arg0: i32, %arg1: i32) -> (i32, i32, i32) {
    %c0_i32 = arith.constant 0 : i32
    %c0_i32_0 = arith.constant 0 : i32
    %c0_i32_1 = arith.constant 0 : i32
    return %arg0, %c0_i32, %c0_i32_0 : i32, i32, i32
  }
  func.func @transform_4(%arg0: i32, %arg1: i32) -> (i32, i32, i32) {
    %c0_i32 = arith.constant 0 : i32
    %c0_i32_0 = arith.constant 0 : i32
    %c0_i32_1 = arith.constant 0 : i32
    return %arg1, %c0_i32, %c0_i32_0 : i32, i32, i32
  }
  func.func @transform_5(%arg0: i32, %arg1: i32) -> (i32, i32, i32) {
    %c0_i32 = arith.constant 0 : i32
    %c0_i32_0 = arith.constant 0 : i32
    %c0_i32_1 = arith.constant 0 : i32
    return %arg1, %c0_i32, %c0_i32_0 : i32, i32, i32
  }
  func.func @transform_6(%arg0: i32, %arg1: i32) -> (i32, i32, i32) {
    %c0_i32 = arith.constant 0 : i32
    %c0_i32_0 = arith.constant 0 : i32
    %c0_i32_1 = arith.constant 0 : i32
    return %arg1, %c0_i32, %c0_i32_0 : i32, i32, i32
  }
  func.func @transform_7(%arg0: i32, %arg1: i32) -> (i32, i32, i32) {
    %c0_i32 = arith.constant 0 : i32
    %c0_i32_0 = arith.constant 0 : i32
    %c0_i32_1 = arith.constant 0 : i32
    return %arg1, %c0_i32, %c0_i32_0 : i32, i32, i32
  }
  func.func @transform_8(%arg0: i32, %arg1: i32) -> (i32, i32, i32) {
    %c0_i32 = arith.constant 0 : i32
    %c0_i32_0 = arith.constant 0 : i32
    %c0_i32_1 = arith.constant 0 : i32
    return %arg1, %c0_i32, %c0_i32_0 : i32, i32, i32
  }
  func.func @transform_9(%arg0: i32, %arg1: i32) -> (i32, i32, i32) {
    %c0_i32 = arith.constant 0 : i32
    %c0_i32_0 = arith.constant 0 : i32
    %c0_i32_1 = arith.constant 0 : i32
    return %arg1, %c0_i32, %c0_i32_0 : i32, i32, i32
  }
  func.func @transform_10(%arg0: i32, %arg1: i32) -> (i32, i32) {
    %c0_i32 = arith.constant 0 : i32
    %c0_i32_0 = arith.constant 0 : i32
    %c0_i32_1 = arith.constant 0 : i32
    return %c0_i32, %c0_i32_0 : i32, i32
  }
  func.func @transform_11(%arg0: i32, %arg1: i32) -> (i32, i32) {
    %c0_i32 = arith.constant 0 : i32
    %c0_i32_0 = arith.constant 0 : i32
    %c0_i32_1 = arith.constant 0 : i32
    return %c0_i32, %c0_i32_0 : i32, i32
  }
  func.func @transform_12(%arg0: i32, %arg1: i32) -> (i32, i32, i32) {
    %c0_i32 = arith.constant 0 : i32
    %c0_i32_0 = arith.constant 0 : i32
    %c0_i32_1 = arith.constant 0 : i32
    return %arg0, %c0_i32, %c0_i32_0 : i32, i32, i32
  }
}

</mosaic_0001>

<bundles_post_ra>
// kernel: tpu_custom_call.1
= control target key start
LH: loop header
LB: loop body
LE: loop exit
PB: predicated region body
PF: predicated region fallthrough
CT: control target
= control target key end

     0   :  { %s5260_s0 = inlined_call_operand.hbm [shape: bf16[2,8,32], index: 0, kind: input, shape index: {}]   ;;  %s5261_s1 = inlined_call_operand.vmem [shape: bf16[2,10,32], index: 1, kind: input, shape index: {}]   ;;  %s5262_s2 = inlined_call_operand.hbm [shape: f32[2,1,8], index: 2, kind: input, shape index: {}]   ;;  %s5263_s3 = inlined_call_operand.hbm [shape: f32[2,1,10], index: 3, kind: input, shape index: {}]   ;;  %s5264_s4 = inlined_call_operand.vmem [shape: bf16[2,32,256], index: 4, kind: input, shape index: {}]   ;;  %s5265_s5 = inlined_call_operand.vmem [shape: f32[2,1,256], index: 5, kind: input, shape index: {}]   ;;  %s5266_s6 = inlined_call_operand.vmem [shape: bf16[2,32,64], index: 6, kind: input, shape index: {}]   ;;  %s5267_s7 = inlined_call_operand.vmem [shape: f32[2,1,64], index: 7, kind: input, shape index: {}]   ;;  %s5268_s8 = inlined_call_operand.vmem [shape: bf16[2,64,32], index: 8, kind: input, shape index: {}]   ;;  %s5269_s9 = inlined_call_operand.vmem [shape: f32[2,7,32], index: 9, kind: input, shape index: {}]   ;;  %s5270_s10 = inlined_call_operand.vmem [shape: bf16[32,128], index: 10, kind: input, shape index: {}]   ;;  %s5271_s11 = inlined_call_operand.vmem [shape: f32[1,128], index: 11, kind: input, shape index: {}]   ;;  %s5272_s12 = inlined_call_operand.hbm [shape: f32[2,8,128], index: 12, kind: output, shape index: {}]  }
   0x1   :  { %5287 = sst [smem:[#allocation16_spill]] %s5260_s0 }
   0x2   :  { %5288 = sst [smem:[#allocation17_spill]] %s5271_s11 }
   0x3   :  { %5289 = sst [smem:[#allocation18_spill]] %s5272_s12 }
   0x4   :  { %17 = vsyncpa [#allocation5], 0 }
   0x5   :  { %18 = vsyncpa [#allocation8], 0 }
   0x6   :  { %19 = vsyncpa [#allocation6], 0  ;;  %s4550_s21 = smov 0   ;;  %s4552_s22 = smov 0  }
   0x7   :  { %s4554_s23 = smov 0  }
   0x8 LB: > { %5290 = sst [smem:[#allocation14_spill]] %s4448_s22  ;;  %s4454_s24 = smov [#allocation7]   ;;  %s4452_s23 = sphi %s4554_s23, %s25_s23   ;;  %s4448_s22 = sphi %s4552_s22, %s5315_s22   ;;  %s4444_s21 = sphi %s4550_s21, %s5314_s21  }
   0x9   : > { %5291 = sst [smem:[#allocation15_spill]] %s4452_s23  ;;  %s411_s25 = sshll.u32 %s4454_s24, 4  ;;  %s4574_s25 = int_to_ptr.vmem [resolvable:$true] %s411_s25 }
   0xa   : > { %s5273_s26 = sadd.s32 4294967295, %s4452_s23   ;;  %p3636_p0 = scmp.ge.s32.totalorder %s4452_s23, 1 }
   0xb   : > { %p370_p1 = scmp.lt.s32.totalorder %s4452_s23, 3  ;;  %p4570_p2 = scmp.eq.s32.totalorder %s5273_s26, 0 }
   0xc   : > { %s34_s30 = sadd.s32 1, %s4448_s22  ;;  %s4455_s14 = smov [#allocation4]  }
   0xd   : > { %s5292_s27 = scalar_select %p4570_p2, 1, 0 }
   0xe   : > { %p4576_p3 = pnand %p3636_p0, %p370_p1  ;;  %p4589_p6 = scmp.ge.s32.totalorder %s34_s30, 2 }
   0xf   : > { %s385_s15 = sshll.u32 %s4455_s14, 4  ;;  %s4308_s18 = scalar_lea.hbm %s5262_s2, 32  ;;  %s386_s15 = int_to_ptr.vmem [resolvable:$true] %s385_s15 }
  0x10   : > { %s5293_s28 = scalar_select %p4576_p3, 1, 0 }
  0x11   : > { %p4113_p4 = pneg %p4576_p3  ;;  %p4309_p7 = scmp.ne.s32.totalorder %s5262_s2, %s4308_s18 }
  0x12   : > { %p4315_p11 = scmp.lt.u32.totalorder %s4308_s18, %s5262_s2 }
  0x13   : > { %p4584_p5 = pnand %p4570_p2, %p4113_p4 }
  0x15   : > { %p4601_p8 = pneg %p4584_p5 }
  0x17   : > { %p4311_p9 = pnand %p4601_p8, %p4309_p7 }
  0x19   : > { %p4312_p10 = pneg %p4311_p9 }
  0x1b   : > { %p4317_p12 = pnand %p4315_p11, %p4312_p10 }
  0x1d   : > { %4320 = shalt.err (!%p4317_p12)
}
  0x1e   : > { %s4321_s14 = scalar_lea.vmem %s4574_s25, 32  ;;  %p4329_p4 = scmp.lt.s32.totalorder %s4574_s25, %s4574_s25 }
  0x1f   : > { %p4322_p13 = scmp.ne.s32.totalorder %s4574_s25, %s4321_s14  ;;  %p4330_p2 = scmp.lt.s32.totalorder %s4321_s14, %s4321_s14 }
  0x21   : > { %p4324_p0 = pnand %p4322_p13, %p4601_p8  ;;  %p4331_p7 = por %p4330_p2, %p4329_p4 }
  0x23   : > { %p4325_p1 = pneg %p4324_p0 }
  0x25   : > { %p4332_p9 = pnand %p4331_p7, %p4325_p1 }
  0x27   : > { %4335 = shalt.err (!%p4332_p9)
}
  0x28   : > { %s5280_s16 = smov 16   ;;  %s5281_s22 = smov 1  }
  0x29   : > { %4119 = dma.hbm_to_vmem [thread:$0]  (!%p4584_p5), %s5262_s2, 32, %s4574_s25, [#allocation8], %s5280_s16, %s5280_s16, %s5281_s22  }
  0x2a   : > { %s5317_s30 = smov (%p4589_p6, %s34_s30), 0  ;;  %s5297_s0 = sld [smem:[#allocation16_spill]] }
  0x30   : > { %s4336_s20 = scalar_lea.hbm %s5297_s0, 128 }
  0x31   : > { %p4337_p2 = scmp.ne.s32.totalorder %s5297_s0, %s4336_s20  ;;  %p4343_p12 = scmp.lt.u32.totalorder %s4336_s20, %s5297_s0 }
  0x33   : > { %p4339_p10 = pnand %p4337_p2, %p4601_p8 }
  0x35   : > { %p4340_p11 = pneg %p4339_p10 }
  0x37   : > { %p4345_p13 = pnand %p4343_p12, %p4340_p11 }
  0x39   : > { %4348 = shalt.err (!%p4345_p13)
}
  0x3a   : > { %s4349_s25 = scalar_lea.vmem %s386_s15, 128  ;;  %p4357_p4 = scmp.lt.s32.totalorder %s386_s15, %s386_s15 }
  0x3b   : > { %p4350_p6 = scmp.ne.s32.totalorder %s386_s15, %s4349_s25  ;;  %p4358_p7 = scmp.lt.s32.totalorder %s4349_s25, %s4349_s25 }
  0x3d   : > { %p4352_p0 = pnand %p4350_p6, %p4601_p8  ;;  %p4359_p9 = por %p4358_p7, %p4357_p4 }
  0x3f   : > { %p4353_p1 = pneg %p4352_p0 }
  0x41   : > { %p4360_p3 = pnand %p4359_p9, %p4353_p1 }
  0x43   : > { %4363 = shalt.err (!%p4360_p3)
}
  0x44   : > { %s4458_s12 = smov 64   ;;  %s4459_s13 = smov 4  }
  0x45   : > { %4116 = dma.hbm_to_vmem [thread:$0]  (!%p4584_p5), %s5297_s0, 128, %s386_s15, [#allocation5], %s4458_s12, %s4458_s12, %s4459_s13  }
  0x46   : > { %s4460_s26 = smov [#allocation9]   ;;  %s4364_s20 = scalar_lea.hbm %s5263_s3, 32 }
  0x47   : > { %s427_s17 = sshll.u32 %s4460_s26, 4  ;;  %p4365_p3 = scmp.ne.s32.totalorder %s5263_s3, %s4364_s20  ;;  %s428_s17 = int_to_ptr.vmem [resolvable:$true] %s427_s17 }
  0x48   : > { %p4371_p11 = scmp.lt.u32.totalorder %s4364_s20, %s5263_s3 }
  0x49   : > { %p4367_p2 = pnand %p4365_p3, %p4601_p8 }
  0x4b   : > { %p4368_p10 = pneg %p4367_p2 }
  0x4d   : > { %p4373_p12 = pnand %p4371_p11, %p4368_p10 }
  0x4f   : > { %4376 = shalt.err (!%p4373_p12)
}
  0x50   : > { %s4377_s15 = scalar_lea.vmem %s428_s17, 32  ;;  %p4385_p1 = scmp.lt.s32.totalorder %s428_s17, %s428_s17 }
  0x51   : > { %p4378_p13 = scmp.ne.s32.totalorder %s428_s17, %s4377_s15  ;;  %p4386_p4 = scmp.lt.s32.totalorder %s4377_s15, %s4377_s15 }
  0x53   : > { %p4380_p6 = pnand %p4378_p13, %p4601_p8  ;;  %p4387_p7 = por %p4386_p4, %p4385_p1 }
  0x55   : > { %p4381_p0 = pneg %p4380_p6 }
  0x57   : > { %p4388_p9 = pnand %p4387_p7, %p4381_p0 }
  0x59   : > { %4391 = shalt.err (!%p4388_p9)
}
  0x5a   : > { %s5298_s12 = smov 1   ;;  %s5299_s13 = smov 16  }
  0x5b   : > { %4122 = dma.hbm_to_vmem [thread:$0]  (!%p4584_p5), %s5263_s3, 32, %s428_s17, [#allocation8], %s5299_s13, %s5299_s13, %s5298_s12  }
  0x5c   : > { %p5300_p3 = scmp.ne.s32.totalorder %s5293_s28, 0 }
  0x5d   : > { %p5301_p8 = scmp.ne.s32.totalorder (!%p5300_p3), %s5292_s27, 0 }
  0x5e   : > { %493 = sbr.rel (%p5300_p3) target bundleno = 7737 (0x1e39), region = 68 }
  0x65   : > { %4431 = dma.done.wait (%p5301_p8), [#allocation5], 128  }
  0x66   : > { %4433 = vsyncadd (%p5301_p8), [#allocation5], 4294967168 }
  0x67   : > { %4435 = dma.done.wait (%p5301_p8), [#allocation8], 64  }
  0x68   : > { %4437 = vsyncadd (%p5301_p8), [#allocation8], 4294967232  ;;  %p575_p2 = scmp.lt.s32.totalorder %s4444_s21, 1  ;;  %p3654_p5 = scmp.ne.s32.totalorder %s4444_s21, 0 }
  0x69   : > { %v3743_v0 = vld [vmem:[#allocation4] sm:$0xff] (!%p3654_p5)   ;;  %vm611_vm0 = vcmask (!%p3654_p5), 261120   ;;  %v614_v1 = vlaneseq (!%p3654_p5)  ;;  %v3655_v6 = vld [vmem:[#allocation7] ss:$0 sm:$0xff] (!%p3654_p5)  ;;  %v3656_v7 = vld [vmem:[#allocation7 + $0x1] ss:$0 sm:$0xff] (!%p3654_p5) }
  0x6a   : > { %s4680_s29 = scalar_select %p575_p2, %s4444_s21, 1 }
  0x6b   : > { %606 = sbr.rel (%p3654_p5) target bundleno = 114 (0x72), region = 84  ;;  %v3744_v2 = vunpack.c.l.bf16 (!%p3654_p5), %v3743_v0  ;;  %v3745_v3 = vunpack.c.h.bf16 (!%p3654_p5), %v3743_v0  ;;  %v615_v4 = vshrl.u32 (!%p3654_p5), %v614_v1, 7  ;;  %v617_v5 = vand.u32 (!%p3654_p5), 127, %v614_v1 }
  0x6c   : > { %s3739_s28 = sshll.u32 %s4680_s29, 5  ;;  %s3648_s24 = sshll.u32 %s4680_s29, 1  ;;  %v4461_v8 = vmov (!%p3654_p5), 0.0   ;;  %vm636_vm2 = vcmask (!%p3654_p5), 64512  }
  0x6d   : > { %s4687_s26 = scalar_lea.vmem %s5264_s4, %s3739_s28  ;;  %s4692_s18 = scalar_lea.vmem %s5265_s5, %s3648_s24  ;;  %612 = vst.msk [vmem:[#allocation2] sm:$0xff] (!%p3654_p5), %vm611_vm0, %v3744_v2  ;;  %613 = vst.msk [vmem:[#allocation2 + $0x8] sm:$0xff] (!%p3654_p5), %vm611_vm0, %v3745_v3  ;;  %vm618_vm1 = vcmp.gt.s32.totalorder (!%p3654_p5), %v617_v5, %v615_v4 }
  0x6e   : > { %s3740_s19 = sshll.u32 %s4680_s29, 4  ;;  %s4707_s11 = scalar_lea.vmem %s5268_s8, %s3739_s28  ;;  %v619_v9 = vsel (!%p3654_p5), %vm618_vm1, -1e+09, %v4461_v8 }
  0x6f   : > { %s4702_s13 = scalar_lea.vmem %s5266_s6, %s3740_s19  ;;  %s3653_s23 = sshll.u32 %s4680_s29, 3  ;;  %v634_v10 = vadd.f32 (!%p3654_p5), %v3655_v6, %v619_v9  ;;  %v635_v11 = vadd.f32 (!%p3654_p5), %v3656_v7, %v619_v9 }
  0x70   : > { %s4713_s24 = scalar_lea.vmem %s5269_s9, %s3653_s23 }
  0x71   : > { %637 = vst.msk [vmem:[#allocation3] sm:$0xff] (!%p3654_p5), %vm636_vm2, %v634_v10  ;;  %638 = vst.msk [vmem:[#allocation3 + $0x8] sm:$0xff] (!%p3654_p5), %vm636_vm2, %v635_v11 }
  0x72 PF: > { %v4462_v12 = vmov 0.0   ;;  %v4216_v13 = vld [vmem:[%s4687_s26] ss:$8 sps:$4 sm:$0xff]   ;;  %vm4463_vm3 = vmmov 0   ;;  %v4217_v14 = vld [vmem:[%s4687_s26 + $0x10] ss:$8 sps:$4 sm:$0xff]  }
  0x73   : > { %3837 = vmatprep.subr.bf16.mxu1 %v4462_v12  ;;  %3841 = vmatprep.mubr.msk.bf16.mxu1 %vm4463_vm3, %v4462_v12  ;;  %vm753_vm4 = vcmask 261120   ;;  %v4736_v18 = vld [vmem:[%s4692_s18] ss:$0 sm:$0xff]  ;;  %s4464_s0 = smov 96   ;;  %vm803_vm5 = vcmask 64512   ;;  %s4465_s28 = smov 64  }
  0x74   : > { %v4721_v15 = vld [vmem:[#allocation2] sm:$0xff]  ;;  %3851 = vmatprep.subr.bf16.mxu0 %v4462_v12  ;;  %3853 = vmatprep.mubr.msk.bf16.mxu0 %vm4463_vm3, %v4462_v12  ;;  %v4726_v16 = vld [vmem:[#allocation2 + $0x8] sm:$0xff]  ;;  %s4466_s27 = smov 88   ;;  %vm932_vm6 = vcmask 1043456   ;;  %s4467_s19 = smov 120   ;;  %vm1722_vm7 = vcmask 130048  }
  0x75   : > { %3838 = vmatpush3.bf16.msra.mxu1 %v4216_v13  ;;  %v729_v17 = vpack.c.bf16 %v4726_v16, %v4721_v15  ;;  %s4468_s20 = smov 56   ;;  %s4469_s14 = smov 80   ;;  %vm1725_vm8 = vcmask 195584   ;;  %vm2249_vm9 = vcmask 80896   ;;  %vm2280_vm10 = vcmask 1044480  }
  0x76   : > { %3839 = vmatprep.subr.bf16.mxu1 %v4462_v12  ;;  %s4470_s15 = smov 112   ;;  %s4471_s12 = smov 48   ;;  %vm3301_vm11 = vcmask 523264  }
  0x77   : > { %s4472_s16 = smov 72   ;;  %s4473_s22 = smov 104  }
  0x78   : > { %v4760_v32 = vld [vmem:[#allocation3] sm:$0xff]  ;;  %v4763_v39 = vld [vmem:[#allocation3 + $0x8] sm:$0xff]  ;;  %s4474_s23 = smov 40   ;;  %s5285_s17 = smov 32  }
  0x79   : > { %3840 = vmatpush3.bf16.msra.mxu1 %v4217_v14  ;;  %p3730_p10 = scmp.ne.s32.totalorder %s4444_s21, 1 }
  0x7a   : > { %3845 = vmatprep.subr.bf16.mxu1 %v4462_v12  ;;  %vm4482_vm12 = vmmov (!%p3730_p10), 0  }
  0x7c   : > { %3842 = vmatmul.mubr.msk.bf16.vlgmr.msra.gmra.mrb[0].mxu1 %vm753_vm4, %v729_v17 }
  0x7d   : > { %3847 = vmatprep.mubr.msk.bf16.mxu1 %vm4463_vm3, %v4462_v12 }
 0x14f   : > { %v791_v19 = vpop.f32.mrb[0].mxu1 }
 0x150   : > { %v792_v20 = vadd.f32 %v4736_v18, %v791_v19  ;;  %v3843_v21 = vpop.f32.mrb[1].mxu1 }
 0x151   : > { %v794_v22 = vpop.f32.mrb[2].mxu1 }
 0x152   : > { %v4739_v23 = vpack.c.bf16 %v792_v20, %v792_v20  ;;  %v795_v24 = vadd.f32 %v4736_v18, %v794_v22  ;;  %v3844_v25 = vpop.f32.mrb[3].mxu1 }
 0x154   : > { %801 = vrot.lane.b32.xlu0 %v4739_v23, %s4464_s0  ;;  %v4744_v26 = vpack.c.bf16 %v795_v24, %v795_v24 }
 0x158   : > { %851 = vrot.lane.b32.xlu0 %v4744_v26, %s4464_s0 }
 0x1c6   : > { %v802_v27 = vpop.permute.xlu0 %801 }
 0x1c7   : > { %v808_v28 = vsel %vm803_vm5, %v802_v27, 0 }
 0x1c8   : > { %3846 = vmatpush3.bf16.xpose.msra.mxu1 %v808_v28 }
 0x1c9   : > { %3857 = vmatprep.subr.bf16.mxu1 %v4462_v12 }
 0x1ca   : > { %v852_v29 = vpop.permute.xlu0 %851 }
 0x1cb   : > { %v857_v30 = vsel %vm803_vm5, %v852_v29, 0 }
 0x1cc   : > { %3852 = vmatpush3.bf16.xpose.msra.mxu0 %v857_v30 }
 0x1cd   : > { %3863 = vmatprep.subr.bf16.mxu0 %v4462_v12 }
 0x1cf   : > { %3848 = vmatmul.mubr.msk.bf16.vlgmr.msra.gmra.mrb[4].mxu1 %vm803_vm5, %v4739_v23 }
 0x1d0   : > { %3859 = vmatprep.mubr.msk.bf16.mxu1 %vm4463_vm3, %v4462_v12 }
 0x1d3   : > { %3854 = vmatmul.mubr.msk.bf16.vlgmr.msra.gmra.mrb[0].mxu0 %vm803_vm5, %v4744_v26 }
 0x1d4   : > { %3865 = vmatprep.mubr.msk.bf16.mxu0 %vm4463_vm3, %v4462_v12 }
 0x2a2   : > { %v844_v31 = vpop.f32.mrb[4].mxu1 }
 0x2a3   : > { %v899_v33 = vmul.f32 0.35355338, %v844_v31  ;;  %v3849_v34 = vpop.f32.mrb[5].mxu1 }
 0x2a4   : > { %v847_v35 = vpop.f32.mrb[6].mxu1 }
 0x2a5   : > { %v3850_v36 = vpop.f32.mrb[7].mxu1  ;;  %v901_v37 = vadd.f32 %v899_v33, %v4760_v32 }
 0x2a6   : > { %v893_v38 = vpop.f32.mrb[0].mxu0 }
 0x2a7   : > { %v900_v40 = vmul.f32 0.35355338, %v893_v38  ;;  %v3855_v41 = vpop.f32.mrb[1].mxu0  ;;  %v903_v42 = vsel %vm803_vm5, %v901_v37, -inf }
 0x2a8   : > { %v896_v43 = vpop.f32.mrb[2].mxu0  ;;  %904 = vmax.xlane.f32.xlu1 %v903_v42 }
 0x2a9   : > { %v3856_v44 = vpop.f32.mrb[3].mxu0  ;;  %v902_v45 = vadd.f32 %v900_v40, %v4763_v39 }
 0x2ab   : > { %v906_v46 = vsel %vm803_vm5, %v902_v45, -inf }
 0x2ac   : > { %907 = vmax.xlane.f32.xlu1 %v906_v46 }
 0x2bd   : > { %927 = vrot.lane.b32.xlu1 %v4739_v23, %s4465_s28 }
 0x2c1   : > { %976 = vrot.lane.b32.xlu1 %v4744_v26, %s4465_s28  ;;  %s5284_s28 = smov 8  }
 0x2c5   : > { %1026 = vrot.lane.b32.xlu1 %v4739_v23, %s4466_s27 }
 0x335   : > { %v905_v47 = vpop.xlane.xlu1 %904 }
 0x336   : > { %v909_v48 = vsub.f32 %v901_v37, %v905_v47 }
 0x338   : > { %v911_v49 = vmul.f32 1.442695, %v909_v48 }
 0x339   : > { %v908_v50 = vpop.xlane.xlu1 %907 }
 0x33a   : > { %4230 = vpow2.f32 %v911_v49  ;;  %v910_v51 = vsub.f32 %v902_v45, %v908_v50 }
 0x33c   : > { %v913_v52 = vmul.f32 1.442695, %v910_v51 }
 0x33d   : > { %v928_v53 = vpop.permute.xlu1 %927 }
 0x33e   : > { %4232 = vpow2.f32 %v913_v52  ;;  %v934_v54 = vsel %vm932_vm6, %v928_v53, 0 }
 0x33f   : > { %3858 = vmatpush3.bf16.msra.mxu1 %v934_v54 }
 0x340   : > { %3869 = vmatprep.subr.bf16.mxu1 %v4462_v12 }
 0x341   : > { %v977_v55 = vpop.permute.xlu1 %976 }
 0x342   : > { %v982_v56 = vsel %vm932_vm6, %v977_v55, 0 }
 0x343   : > { %3864 = vmatpush3.bf16.msra.mxu0 %v982_v56 }
 0x344   : > { %v4231_v57 = vpop.eup %4230  ;;  %3875 = vmatprep.subr.bf16.mxu0 %v4462_v12 }
 0x345   : > { %v915_v58 = vsel %vm803_vm5, %v4231_v57, 0.0  ;;  %v1027_v61 = vpop.permute.xlu1 %1026 }
 0x346   : > { %916 = vadd.xlane.f32.xlu0 %v915_v58  ;;  %v1032_v4 = vsel %vm803_vm5, %v1027_v61, 0 }
 0x348   : > { %v4233_v59 = vpop.eup %4232 }
 0x349   : > { %v918_v60 = vsel %vm803_vm5, %v4233_v59, 0.0 }
 0x34a   : > { %919 = vadd.xlane.f32.xlu1 %v918_v60 }
 0x35b   : > { %1076 = vrot.lane.b32.xlu1 %v4744_v26, %s4466_s27 }
 0x35c   : > { %1024 = vrot.lane.b32.xlu0 %v4739_v23, %s4467_s19 }
 0x35f   : > { %1074 = vrot.lane.b32.xlu1 %v4744_v26, %s4467_s19 }
 0x3d3   : > { %v917_v62 = vpop.xlane.xlu0 %916 }
 0x3d4   : > { %4234 = vrcp.f32 %v917_v62 }
 0x3d7   : > { %v920_v63 = vpop.xlane.xlu1 %919  ;;  %v1025_v9 = vpop.permute.xlu0 %1024 }
 0x3d8   : > { %4236 = vrcp.f32 %v920_v63 }
 0x3db   : > { %v1077_v6 = vpop.permute.xlu1 %1076 }
 0x3dc   : > { %v1082_v8 = vsel %vm803_vm5, %v1077_v6, 0 }
 0x3de   : > { %v4235_v0 = vpop.eup %4234 }
 0x3df   : > { %v923_v1 = vmul.f32 %v4235_v0, %v4231_v57  ;;  %v1075_v10 = vpop.permute.xlu1 %1074 }
 0x3e1   : > { %v925_v2 = vpack.c.bf16 %v923_v1, %v923_v1 }
 0x3e2   : > { %v4237_v3 = vpop.eup %4236 }
 0x3e3   : > { %v924_v5 = vmul.f32 %v4237_v3, %v4233_v59  ;;  %3860 = vmatmul.mubr.msk.bf16.vlgmr.msra.gmra.mrb[8].mxu1 %vm803_vm5, %v925_v2 }
 0x3e4   : > { %3870 = vmatpush3.bf16.xpose.msra.mxu1 %v1032_v4  ;;  %3871 = vmatprep.mubr.msk.bf16.mxu1 %vm4463_vm3, %v4462_v12 }
 0x3e5   : > { %v926_v7 = vpack.c.bf16 %v924_v5, %v924_v5  ;;  %3881 = vmatprep.subr.bf16.mxu1 %v4462_v12 }
 0x3e7   : > { %3866 = vmatmul.mubr.msk.bf16.vlgmr.msra.gmra.mrb[4].mxu0 %vm803_vm5, %v926_v7 }
 0x3e8   : > { %3876 = vmatpush3.bf16.xpose.msra.mxu0 %v1082_v8  ;;  %3877 = vmatprep.mubr.msk.bf16.mxu0 %vm4463_vm3, %v4462_v12 }
 0x3e9   : > { %3887 = vmatprep.subr.bf16.mxu0 %v4462_v12 }
 0x3eb   : > { %3872 = vmatmul.mubr.msk.bf16.vlgmr.msra.gmra.mrb[12].mxu1 %vm803_vm5, %v1025_v9 }
 0x3ec   : > { %3883 = vmatprep.mubr.msk.bf16.mxu1 %vm4463_vm3, %v4462_v12 }
 0x3ef   : > { %3878 = vmatmul.mubr.msk.bf16.vlgmr.msra.gmra.mrb[8].mxu0 %vm803_vm5, %v1075_v10 }
 0x3f0   : > { %3889 = vmatprep.mubr.msk.bf16.mxu0 %vm4463_vm3, %v4462_v12 }
 0x4b6   : > { %v4800_v11 = vpop.f32.mrb[8].mxu1 }
 0x4b7   : > { %v3861_v13 = vpop.f32.mrb[9].mxu1 }
 0x4b8   : > { %v973_v14 = vpop.f32.mrb[10].mxu1 }
 0x4b9   : > { %v3862_v17 = vpop.f32.mrb[11].mxu1 }
 0x4ba   : > { %v4802_v19 = vpop.f32.mrb[4].mxu0 }
 0x4bb   : > { %v3867_v20 = vpop.f32.mrb[5].mxu0 }
 0x4bc   : > { %v1021_v21 = vpop.f32.mrb[6].mxu0 }
 0x4bd   : > { %v3868_v22 = vpop.f32.mrb[7].mxu0 }
 0x4be   : > { %v1068_v24 = vpop.f32.mrb[12].mxu1 }
 0x4bf   : > { %v1124_v25 = vmul.f32 0.35355338, %v1068_v24  ;;  %v3873_v27 = vpop.f32.mrb[13].mxu1 }
 0x4c0   : > { %v1071_v28 = vpop.f32.mrb[14].mxu1 }
 0x4c1   : > { %v3874_v29 = vpop.f32.mrb[15].mxu1  ;;  %v1126_v30 = vadd.f32 %v1124_v25, %v4760_v32 }
 0x4c2   : > { %v1118_v31 = vpop.f32.mrb[8].mxu0 }
 0x4c3   : > { %v1125_v33 = vmul.f32 0.35355338, %v1118_v31  ;;  %v3879_v34 = vpop.f32.mrb[9].mxu0  ;;  %v1128_v35 = vsel %vm803_vm5, %v1126_v30, -inf }
 0x4c4   : > { %v1121_v36 = vpop.f32.mrb[10].mxu0  ;;  %1129 = vmax.xlane.f32.xlu1 %v1128_v35 }
 0x4c5   : > { %v3880_v37 = vpop.f32.mrb[11].mxu0  ;;  %v1127_v38 = vadd.f32 %v1125_v33, %v4763_v39 }
 0x4c7   : > { %v1131_v40 = vsel %vm803_vm5, %v1127_v38, -inf }
 0x4c8   : > { %1132 = vmax.xlane.f32.xlu0 %v1131_v40 }
 0x4d5   : > { %1152 = vrot.lane.b32.xlu1 %v4739_v23, %s4468_s20 }
 0x4d9   : > { %1250 = vrot.lane.b32.xlu1 %v4739_v23, %s4469_s14 }
 0x4de   : > { %1200 = vrot.lane.b32.xlu0 %v4744_v26, %s4468_s20  ;;  %s5283_s20 = smov 16  }
 0x4e2   : > { %1248 = vrot.lane.b32.xlu0 %v4739_v23, %s4470_s15 }
 0x551   : > { %v1130_v41 = vpop.xlane.xlu1 %1129 }
 0x552   : > { %v1134_v42 = vsub.f32 %v1126_v30, %v1130_v41 }
 0x554   : > { %v1136_v43 = vmul.f32 1.442695, %v1134_v42 }
 0x555   : > { %v1133_v44 = vpop.xlane.xlu0 %1132  ;;  %v1153_v45 = vpop.permute.xlu1 %1152 }
 0x556   : > { %4238 = vpow2.f32 %v1136_v43  ;;  %v1135_v46 = vsub.f32 %v1127_v38, %v1133_v44  ;;  %v1158_v47 = vsel %vm932_vm6, %v1153_v45, 0 }
 0x557   : > { %3882 = vmatpush3.bf16.msra.mxu1 %v1158_v47 }
 0x558   : > { %v1138_v48 = vmul.f32 1.442695, %v1135_v46  ;;  %3893 = vmatprep.subr.bf16.mxu1 %v4462_v12 }
 0x559   : > { %v1201_v49 = vpop.permute.xlu0 %1200  ;;  %v1251_v55 = vpop.permute.xlu1 %1250 }
 0x55a   : > { %4240 = vpow2.f32 %v1138_v48  ;;  %v1206_v50 = vsel %vm932_vm6, %v1201_v49, 0  ;;  %v1256_v62 = vsel %vm803_vm5, %v1251_v55, 0 }
 0x55b   : > { %3888 = vmatpush3.bf16.msra.mxu0 %v1206_v50 }
 0x55c   : > { %3899 = vmatprep.subr.bf16.mxu0 %v4462_v12 }
 0x55d   : > { %v1249_v3 = vpop.permute.xlu0 %1248 }
 0x560   : > { %v4239_v51 = vpop.eup %4238 }
 0x561   : > { %v1140_v52 = vsel %vm803_vm5, %v4239_v51, 0.0 }
 0x562   : > { %1141 = vadd.xlane.f32.xlu1 %v1140_v52 }
 0x564   : > { %v4241_v53 = vpop.eup %4240 }
 0x565   : > { %v1143_v54 = vsel %vm803_vm5, %v4241_v53, 0.0 }
 0x566   : > { %1144 = vadd.xlane.f32.xlu1 %v1143_v54 }
 0x577   : > { %1300 = vrot.lane.b32.xlu1 %v4744_v26, %s4469_s14 }
 0x57b   : > { %1298 = vrot.lane.b32.xlu1 %v4744_v26, %s4470_s15 }
 0x5ef   : > { %v1142_v56 = vpop.xlane.xlu1 %1141 }
 0x5f0   : > { %4242 = vrcp.f32 %v1142_v56 }
 0x5f3   : > { %v1145_v57 = vpop.xlane.xlu1 %1144 }
 0x5f4   : > { %4244 = vrcp.f32 %v1145_v57 }
 0x5f7   : > { %v1301_v0 = vpop.permute.xlu1 %1300 }
 0x5f8   : > { %v1306_v2 = vsel %vm803_vm5, %v1301_v0, 0 }
 0x5fa   : > { %v4243_v58 = vpop.eup %4242 }
 0x5fb   : > { %v1148_v59 = vmul.f32 %v4243_v58, %v4239_v51  ;;  %v1299_v4 = vpop.permute.xlu1 %1298 }
 0x5fd   : > { %v1150_v60 = vpack.c.bf16 %v1148_v59, %v1148_v59 }
 0x5fe   : > { %v4245_v61 = vpop.eup %4244 }
 0x5ff   : > { %v1149_v63 = vmul.f32 %v4245_v61, %v4241_v53  ;;  %3884 = vmatmul.mubr.msk.bf16.vlgmr.msra.gmra.mrb[16].mxu1 %vm803_vm5, %v1150_v60 }
 0x600   : > { %3894 = vmatpush3.bf16.xpose.msra.mxu1 %v1256_v62  ;;  %3895 = vmatprep.mubr.msk.bf16.mxu1 %vm4463_vm3, %v4462_v12 }
 0x601   : > { %v1151_v1 = vpack.c.bf16 %v1149_v63, %v1149_v63  ;;  %3905 = vmatprep.subr.bf16.mxu1 %v4462_v12 }
 0x603   : > { %3890 = vmatmul.mubr.msk.bf16.vlgmr.msra.gmra.mrb[12].mxu0 %vm803_vm5, %v1151_v1 }
 0x604   : > { %3900 = vmatpush3.bf16.xpose.msra.mxu0 %v1306_v2  ;;  %3901 = vmatprep.mubr.msk.bf16.mxu0 %vm4463_vm3, %v4462_v12 }
 0x605   : > { %3911 = vmatprep.subr.bf16.mxu0 %v4462_v12 }
 0x607   : > { %3896 = vmatmul.mubr.msk.bf16.vlgmr.msra.gmra.mrb[20].mxu1 %vm803_vm5, %v1249_v3 }
 0x608   : > { %3907 = vmatprep.mubr.msk.bf16.mxu1 %vm4463_vm3, %v4462_v12 }
 0x60b   : > { %3902 = vmatmul.mubr.msk.bf16.vlgmr.msra.gmra.mrb[16].mxu0 %vm803_vm5, %v1299_v4 }
 0x60c   : > { %3913 = vmatprep.mubr.msk.bf16.mxu0 %vm4463_vm3, %v4462_v12 }
 0x6d2   : > { %v4840_v5 = vpop.f32.mrb[16].mxu1 }
 0x6d3   : > { %v3885_v6 = vpop.f32.mrb[17].mxu1 }
 0x6d4   : > { %v1197_v7 = vpop.f32.mrb[18].mxu1 }
 0x6d5   : > { %v3886_v8 = vpop.f32.mrb[19].mxu1 }
 0x6d6   : > { %v4842_v9 = vpop.f32.mrb[12].mxu0 }
 0x6d7   : > { %v4186_v10 = vpack.i.bf16 %v4842_v9, %v4840_v5  ;;  %v3891_v13 = vpop.f32.mrb[13].mxu0 }
 0x6d8   : > { %v1245_v14 = vpop.f32.mrb[14].mxu0 }
 0x6d9   : > { %v3892_v17 = vpop.f32.mrb[15].mxu0 }
 0x6da   : > { %v1292_v20 = vpop.f32.mrb[20].mxu1 }
 0x6db   : > { %v1348_v21 = vmul.f32 0.35355338, %v1292_v20  ;;  %v3897_v22 = vpop.f32.mrb[21].mxu1 }
 0x6dc   : > { %v1295_v24 = vpop.f32.mrb[22].mxu1 }
 0x6dd   : > { %v3898_v25 = vpop.f32.mrb[23].mxu1  ;;  %v1350_v27 = vadd.f32 %v1348_v21, %v4760_v32 }
 0x6de   : > { %v1342_v28 = vpop.f32.mrb[16].mxu0 }
 0x6df   : > { %v1349_v29 = vmul.f32 0.35355338, %v1342_v28  ;;  %v3903_v30 = vpop.f32.mrb[17].mxu0  ;;  %v1352_v31 = vsel %vm803_vm5, %v1350_v27, -inf }
 0x6e0   : > { %v1345_v33 = vpop.f32.mrb[18].mxu0  ;;  %1353 = vmax.xlane.f32.xlu0 %v1352_v31 }
 0x6e1   : > { %v3904_v34 = vpop.f32.mrb[19].mxu0  ;;  %v1351_v35 = vadd.f32 %v1349_v29, %v4763_v39 }
 0x6e3   : > { %v1355_v36 = vsel %vm803_vm5, %v1351_v35, -inf }
 0x6e4   : > { %1356 = vmax.xlane.f32.xlu1 %v1355_v36 }
 0x6f5   : > { %1376 = vrot.lane.b32.xlu1 %v4739_v23, %s4471_s12 }
 0x6f9   : > { %1474 = vrot.lane.b32.xlu1 %v4739_v23, %s4472_s16 }
 0x6fd   : > { %1524 = vrot.lane.b32.xlu1 %v4744_v26, %s4472_s16 }
 0x701   : > { %1522 = vrot.lane.b32.xlu1 %v4744_v26, %s4473_s22 }
 0x76d   : > { %v1354_v37 = vpop.xlane.xlu0 %1353 }
 0x76e   : > { %v1358_v38 = vsub.f32 %v1350_v27, %v1354_v37  ;;  %v4218_v37 = vld [vmem:[%s4687_s26] ss:$8 sps:$4 sm:$0xff]  }
 0x770   : > { %v1360_v40 = vmul.f32 1.442695, %v1358_v38 }
 0x771   : > { %v1357_v41 = vpop.xlane.xlu1 %1356 }
 0x772   : > { %4246 = vpow2.f32 %v1360_v40  ;;  %v1359_v42 = vsub.f32 %v1351_v35, %v1357_v41 }
 0x774   : > { %v1362_v43 = vmul.f32 1.442695, %v1359_v42 }
 0x775   : > { %v1377_v44 = vpop.permute.xlu1 %1376 }
 0x776   : > { %4248 = vpow2.f32 %v1362_v43  ;;  %v1382_v45 = vsel %vm932_vm6, %v1377_v44, 0 }
 0x777   : > { %3906 = vmatpush3.bf16.msra.mxu1 %v1382_v45 }
 0x778   : > { %3917 = vmatprep.subr.bf16.mxu1 %v4462_v12 }
 0x779   : > { %v1475_v55 = vpop.permute.xlu1 %1474 }
 0x77a   : > { %v1480_v59 = vsel %vm803_vm5, %v1475_v55, 0  ;;  %v4219_v55 = vld [vmem:[%s4687_s26 + $0x10] ss:$8 sps:$4 sm:$0xff]  }
 0x77c   : > { %v4247_v46 = vpop.eup %4246 }
 0x77d   : > { %v1364_v47 = vsel %vm803_vm5, %v4247_v46, 0.0  ;;  %v1525_v61 = vpop.permute.xlu1 %1524 }
 0x77e   : > { %1365 = vadd.xlane.f32.xlu0 %v1364_v47  ;;  %v1530_v63 = vsel %vm803_vm5, %v1525_v61, 0 }
 0x780   : > { %v4249_v48 = vpop.eup %4248 }
 0x781   : > { %v1367_v49 = vsel %vm803_vm5, %v4249_v48, 0.0  ;;  %v1523_v1 = vpop.permute.xlu1 %1522 }
 0x782   : > { %1368 = vadd.xlane.f32.xlu0 %v1367_v49 }
 0x798   : > { %1424 = vrot.lane.b32.xlu0 %v4744_v26, %s4471_s12  ;;  %s5282_s12 = smov 24  }
 0x79c   : > { %1472 = vrot.lane.b32.xlu0 %v4739_v23, %s4473_s22 }
 0x80b   : > { %v1366_v50 = vpop.xlane.xlu0 %1365 }
 0x80c   : > { %4250 = vrcp.f32 %v1366_v50 }
 0x80f   : > { %v1369_v51 = vpop.xlane.xlu0 %1368 }
 0x810   : > { %4252 = vrcp.f32 %v1369_v51 }
 0x813   : > { %v1425_v52 = vpop.permute.xlu0 %1424 }
 0x814   : > { %v1430_v53 = vsel %vm932_vm6, %v1425_v52, 0 }
 0x815   : > { %3912 = vmatpush3.bf16.msra.mxu0 %v1430_v53 }
 0x816   : > { %v4251_v54 = vpop.eup %4250  ;;  %3923 = vmatprep.subr.bf16.mxu0 %v4462_v12 }
 0x817   : > { %v1372_v56 = vmul.f32 %v4251_v54, %v4247_v46  ;;  %v1473_v0 = vpop.permute.xlu0 %1472 }
 0x819   : > { %v1374_v57 = vpack.c.bf16 %v1372_v56, %v1372_v56 }
 0x81a   : > { %v4253_v58 = vpop.eup %4252 }
 0x81b   : > { %v1373_v60 = vmul.f32 %v4253_v58, %v4249_v48  ;;  %3908 = vmatmul.mubr.msk.bf16.vlgmr.msra.gmra.mrb[24].mxu1 %vm803_vm5, %v1374_v57 }
 0x81c   : > { %3918 = vmatpush3.bf16.xpose.msra.mxu1 %v1480_v59  ;;  %3919 = vmatprep.mubr.msk.bf16.mxu1 %vm4463_vm3, %v4462_v12 }
 0x81d   : > { %v1375_v62 = vpack.c.bf16 %v1373_v60, %v1373_v60  ;;  %3929 = vmatprep.subr.bf16.mxu1 %v4462_v12 }
 0x81f   : > { %3914 = vmatmul.mubr.msk.bf16.vlgmr.msra.gmra.mrb[20].mxu0 %vm803_vm5, %v1375_v62 }
 0x820   : > { %3924 = vmatpush3.bf16.xpose.msra.mxu0 %v1530_v63  ;;  %3925 = vmatprep.mubr.msk.bf16.mxu0 %vm4463_vm3, %v4462_v12 }
 0x821   : > { %3935 = vmatprep.subr.bf16.mxu0 %v4462_v12 }
 0x823   : > { %3920 = vmatmul.mubr.msk.bf16.vlgmr.msra.gmra.mrb[28].mxu1 %vm803_vm5, %v1473_v0 }
 0x824   : > { %3931 = vmatprep.mubr.msk.bf16.mxu1 %vm4463_vm3, %v4462_v12 }
 0x827   : > { %3926 = vmatmul.mubr.msk.bf16.vlgmr.msra.gmra.mrb[24].mxu0 %vm803_vm5, %v1523_v1 }
 0x828   : > { %3937 = vmatprep.mubr.msk.bf16.mxu0 %vm4463_vm3, %v4462_v12 }
 0x8ee   : > { %v1418_v2 = vpop.f32.mrb[24].mxu1 }
 0x8ef   : > { %v3909_v3 = vpop.f32.mrb[25].mxu1 }
 0x8f0   : > { %v1421_v4 = vpop.f32.mrb[26].mxu1 }
 0x8f1   : > { %v3910_v6 = vpop.f32.mrb[27].mxu1 }
 0x8f2   : > { %v1466_v7 = vpop.f32.mrb[20].mxu0 }
 0x8f3   : > { %v4191_v8 = vpack.i.bf16 %v1466_v7, %v1418_v2  ;;  %v3915_v13 = vpop.f32.mrb[21].mxu0 }
 0x8f4   : > { %v1469_v14 = vpop.f32.mrb[22].mxu0 }
 0x8f5   : > { %v3916_v17 = vpop.f32.mrb[23].mxu0 }
 0x8f6   : > { %v1516_v20 = vpop.f32.mrb[28].mxu1 }
 0x8f7   : > { %v1572_v21 = vmul.f32 0.35355338, %v1516_v20  ;;  %v3921_v22 = vpop.f32.mrb[29].mxu1 }
 0x8f8   : > { %v1519_v24 = vpop.f32.mrb[30].mxu1 }
 0x8f9   : > { %v3922_v25 = vpop.f32.mrb[31].mxu1  ;;  %v1574_v27 = vadd.f32 %v1572_v21, %v4760_v32 }
 0x8fa   : > { %v1566_v28 = vpop.f32.mrb[24].mxu0 }
 0x8fb   : > { %v1573_v29 = vmul.f32 0.35355338, %v1566_v28  ;;  %v3927_v30 = vpop.f32.mrb[25].mxu0  ;;  %v1576_v31 = vsel %vm803_vm5, %v1574_v27, -inf }
 0x8fc   : > { %v1569_v33 = vpop.f32.mrb[26].mxu0  ;;  %1577 = vmax.xlane.f32.xlu0 %v1576_v31 }
 0x8fd   : > { %v3928_v34 = vpop.f32.mrb[27].mxu0  ;;  %v1575_v35 = vadd.f32 %v1573_v29, %v4763_v39 }
 0x8ff   : > { %v1579_v36 = vsel %vm803_vm5, %v1575_v35, -inf }
 0x900   : > { %1580 = vmax.xlane.f32.xlu1 %v1579_v36 }
 0x911   : > { %1600 = vrot.lane.b32.xlu1 %v4739_v23, %s4474_s23 }
 0x915   : > { %1749 = vrot.lane.b32.xlu1 %v4218_v37, %s5285_s17 }
 0x919   : > { %4187 = vrot.lane.b32.xlu1 %v4186_v10, %s5284_s28 }
 0x989   : > { %v1578_v32 = vpop.xlane.xlu0 %1577 }
 0x98a   : > { %v1582_v38 = vsub.f32 %v1574_v27, %v1578_v32  ;;  %v4220_v32 = vld [vmem:[%s4687_s26 + $0x4] ss:$8 sps:$4 sm:$0xff]  }
 0x98c   : > { %v1584_v40 = vmul.f32 1.442695, %v1582_v38  ;;  %v4221_v38 = vld [vmem:[%s4687_s26 + $0x14] ss:$8 sps:$4 sm:$0xff]  }
 0x98d   : > { %v1581_v39 = vpop.xlane.xlu1 %1580 }
 0x98e   : > { %4254 = vpow2.f32 %v1584_v40  ;;  %v1583_v41 = vsub.f32 %v1575_v35, %v1581_v39 }
 0x990   : > { %v1586_v42 = vmul.f32 1.442695, %v1583_v41 }
 0x991   : > { %v1601_v43 = vpop.permute.xlu1 %1600 }
 0x992   : > { %4256 = vpow2.f32 %v1586_v42  ;;  %v1606_v23 = vsel %vm932_vm6, %v1601_v43, 0 }
 0x993   : > { %3930 = vmatpush3.bf16.msra.mxu1 %v1606_v23 }
 0x994   : > { %3941 = vmatprep.subr.bf16.mxu1 %v4462_v12 }
 0x995   : > { %v1750_v53 = vpop.permute.xlu1 %1749 }
 0x998   : > { %v4255_v44 = vpop.eup %4254 }
 0x999   : > { %v1588_v45 = vsel %vm803_vm5, %v4255_v44, 0.0  ;;  %v4188_v3 = vpop.permute.xlu1 %4187 }
 0x99a   : > { %1589 = vadd.xlane.f32.xlu0 %v1588_v45  ;;  %v4190_v4 = vunpack.i.h.bf16 %v4188_v3  ;;  %v4189_v6 = vunpack.i.l.bf16 %v4188_v3  ;;  %v3660_v3 = vld.sshfl [vmem:[%s5261_s1 + $0xc] sm:$0x1 pattern:$0x75316420] }
 0x99c   : > { %v4257_v5 = vpop.eup %4256  ;;  %v1721_v14 = vsel %vm803_vm5, %v4802_v19, %v4190_v4  ;;  %v1720_v17 = vsel %vm803_vm5, %v4800_v11, %v4189_v6 }
 0x99d   : > { %v1591_v9 = vsel %vm803_vm5, %v4257_v5, 0.0 }
 0x99e   : > { %1592 = vadd.xlane.f32.xlu0 %v1591_v9 }
 0x9b4   : > { %1648 = vrot.lane.b32.xlu0 %v4744_v26, %s4474_s23 }
 0x9b8   : > { %4192 = vrot.lane.b32.xlu0 %v4191_v8, %s5283_s20 }
 0x9bc   : > { %1751 = vrot.lane.b32.xlu0 %v4219_v55, %s5285_s17 }
 0xa27   : > { %v1590_v10 = vpop.xlane.xlu0 %1589 }
 0xa28   : > { %4258 = vrcp.f32 %v1590_v10  ;;  %v664_v10 = vlaneseq }
 0xa2b   : > { %v1593_v46 = vpop.xlane.xlu0 %1592 }
 0xa2c   : > { %4260 = vrcp.f32 %v1593_v46 }
 0xa2f   : > { %v1649_v47 = vpop.permute.xlu0 %1648 }
 0xa30   : > { %v1654_v48 = vsel %vm932_vm6, %v1649_v47, 0  ;;  %v4941_v47 = vshrl.u32 %v664_v10, 7 }
 0xa31   : > { %3936 = vmatpush3.bf16.msra.mxu0 %v1654_v48 }
 0xa32   : > { %v4259_v49 = vpop.eup %4258  ;;  %3949 = vmatprep.subr.bf16.mxu0 %v4462_v12 }
 0xa33   : > { %v1596_v50 = vmul.f32 %v4259_v49, %v4255_v44  ;;  %v4193_v56 = vpop.permute.xlu0 %4192  ;;  %v3657_v49 = vld.sshfl [vmem:[%s5261_s1] sm:$0x33 pattern:$0x75316420] }
 0xa34   : > { %v4195_v7 = vunpack.i.h.bf16 %v4193_v56  ;;  %v4194_v8 = vunpack.i.l.bf16 %v4193_v56 }
 0xa35   : > { %v1598_v51 = vpack.c.bf16 %v1596_v50, %v1596_v50  ;;  %v3659_v50 = vld.sshfl [vmem:[%s5261_s1 + $0x8] sm:$0x33 pattern:$0x75316420] }
 0xa36   : > { %v4261_v52 = vpop.eup %4260  ;;  %v1724_v22 = vsel %vm1722_vm7, %v1721_v14, %v4195_v7 }
 0xa37   : > { %v1597_v26 = vmul.f32 %v4261_v52, %v4257_v5  ;;  %3932 = vmatmul.mubr.msk.bf16.vlgmr.msra.gmra.mrb[32].mxu1 %vm803_vm5, %v1598_v51  ;;  %v1752_v57 = vpop.permute.xlu0 %1751  ;;  %v4479_v5 = vmov 1966171168   ;;  %v660_v51 = vcombine.high %v3657_v49, %v3657_v49  ;;  %v3658_v52 = vld.sshfl [vmem:[%s5261_s1 + $0x4] sm:$0x1 pattern:$0x75316420] }
 0xa38   : > { %3942 = vmatpush3.bf16.msra.mxu1 %v1750_v53  ;;  %3945 = vmatprep.mubr.msk.bf16.mxu1 %vm4463_vm3, %v4462_v12  ;;  %v662_v9 = vunpack.c.l.s4 %v4479_v5  ;;  %v698_v53 = vcombine.high %v3659_v50, %v3659_v50 }
 0xa39   : > { %v1599_v54 = vpack.c.bf16 %v1597_v26, %v1597_v26  ;;  %3943 = vmatprep.subr.bf16.mxu1 %v4462_v12 }
 0xa3a   : > { %v663_v46 = vunpack.c.0.s8 %v662_v9 }
 0xa3b   : > { %3938 = vmatmul.mubr.msk.bf16.vlgmr.msra.gmra.mrb[28].mxu0 %vm803_vm5, %v1599_v54 }
 0xa3c   : > { %3953 = vmatprep.mubr.msk.bf16.mxu0 %vm4463_vm3, %v4462_v12  ;;  %3944 = vmatpush3.bf16.msra.mxu1 %v1752_v57  ;;  %v666_v48 = vsub.s32 %v663_v46, %v4941_v47 }
 0xa3d   : > { %3950 = vmatpush3.bf16.msra.mxu0 %v4220_v32 }
 0xa3e   : > { %3951 = vmatprep.subr.bf16.mxu0 %v4462_v12  ;;  %v705_v26 = vrot.slane %v3659_v50, %v666_v48  ;;  %v667_v54 = vrot.slane %v3657_v49, %v666_v48  ;;  %v674_v55 = vrot.slane %v660_v51, %v666_v48  ;;  %v690_v56 = vrot.slane %v3658_v52, %v666_v48 }
 0xa3f   : > { %v712_v57 = vrot.slane %v698_v53, %v666_v48  ;;  %v728_v7 = vrot.slane %v3660_v3, %v666_v48 }
 0xa41   : > { %3952 = vmatpush3.bf16.msra.mxu0 %v4221_v38  ;;  %v714_v6 = vcombine.high %v712_v57, %v712_v57 }
 0xa42   : > { %3965 = vmatprep.subr.bf16.mxu0 %v4462_v12 }
 0xa43   : > { %v1962_v14 = vcombine.low %v714_v6, %v728_v7 }
 0xb0a   : > { %v1642_v58 = vpop.f32.mrb[32].mxu1 }
 0xb0b   : > { %v3933_v59 = vpop.f32.mrb[33].mxu1 }
 0xb0c   : > { %v1645_v60 = vpop.f32.mrb[34].mxu1  ;;  %v1913_v59 = vcombine.low %v667_v54, %v674_v55 }
 0xb0d   : > { %v3934_v61 = vpop.f32.mrb[35].mxu1  ;;  %v3691_v60 = vcombine.high %v667_v54, %v674_v55 }
 0xb0e   : > { %v1690_v62 = vpop.f32.mrb[28].mxu0  ;;  %v1915_v61 = vcombine.low %v690_v56, %v705_v26 }
 0xb0f   : > { %v4196_v63 = vpack.i.bf16 %v1690_v62, %v1642_v58  ;;  %v3939_v0 = vpop.f32.mrb[29].mxu0  ;;  %v713_v58 = vcombine.high %v705_v26, %v705_v26 }
 0xb10   : > { %v1693_v1 = vpop.f32.mrb[30].mxu0  ;;  %v1923_v0 = vrot.slane %v1913_v59, %v666_v48 }
 0xb11   : > { %v3940_v2 = vpop.f32.mrb[31].mxu0  ;;  %4197 = vrot.lane.b32.xlu1 %v4196_v63, %s5282_s12  ;;  %v1916_v63 = vcombine.low %v712_v57, %v713_v58  ;;  %v1930_v1 = vrot.slane %v3691_v60, %v666_v48 }
 0xb12   : > { %v1937_v2 = vrot.slane %v1915_v61, %v666_v48 }
 0xb13   : > { %v1944_v4 = vrot.slane %v1916_v63, %v666_v48 }
 0xb15   : > { %1755 = vrot.lane.b32.xlu1 %v4736_v18, %s5285_s17  ;;  %v1723_v18 = vsel %vm1722_vm7, %v1720_v17, %v4194_v8  ;;  %v1945_v8 = vcombine.low %v1923_v0, %v1930_v1 }
 0xb17   : > { %v1953_v17 = vrot.slane %v1945_v8, %v666_v48 }
 0xb83   : > { %v4198_v13 = vpop.permute.xlu1 %4197 }
 0xb84   : > { %v4200_v20 = vunpack.i.h.bf16 %v4198_v13  ;;  %v4199_v21 = vunpack.i.l.bf16 %v4198_v13  ;;  %v1946_v13 = vcombine.low %v1937_v2, %v1944_v4 }
 0xb86   : > { %v1727_v24 = vsel %vm1725_vm8, %v1724_v22, %v4200_v20  ;;  %v1726_v25 = vsel %vm1725_vm8, %v1723_v18, %v4199_v21  ;;  %v1960_v20 = vrot.slane %v1946_v13, %v666_v48  ;;  %v1969_v21 = vrot.slane %v1962_v14, %v666_v48 }
 0xb87   : > { %v1728_v27 = vpack.c.bf16 %v1727_v24, %v1726_v25  ;;  %v1756_v28 = vpop.permute.xlu1 %1755  ;;  %v4959_v24 = vld [vmem:[%s4692_s18 + $0x1] ss:$0 sm:$0xff]  ;;  %s5302_s18 = smov 32  }
 0xb88   : > { %v1961_v22 = vcombine.low %v1953_v17, %v1960_v20  ;;  %v1976_v18 = vrot.slane %v1969_v21, %v666_v48 }
 0xb89   : > { %3946 = vmatmul.mubr.msk.bf16.vlgmr.msra.gmra.mrb[36].mxu1 %vm753_vm4, %v1728_v27 }
 0xb8a   : > { %3961 = vmatprep.mubr.msk.bf16.mxu1 %vm753_vm4, %v1961_v22 }
 0xc5c   : > { %v1795_v29 = vpop.f32.mrb[36].mxu1 }
 0xc5d   : > { %v1796_v19 = vadd.f32 %v1795_v29, %v1756_v28  ;;  %v3947_v30 = vpop.f32.mrb[37].mxu1 }
 0xc5e   : > { %v1798_v11 = vpop.f32.mrb[38].mxu1 }
 0xc5f   : > { %v1799_v31 = vadd.f32 %v1798_v11, %v1756_v28  ;;  %v3948_v33 = vpop.f32.mrb[39].mxu1  ;;  %v1802_v34 = vadd.f32 %v1796_v19, %v4721_v15 }
 0xc61   : > { %v1806_v35 = vsel %vm753_vm4, %v1802_v34, 0.0  ;;  %v1803_v36 = vadd.f32 %v1799_v31, %v4726_v16 }
 0xc62   : > { %1807 = vadd.xlane.f32.xlu0 %v1806_v35 }
 0xc63   : > { %v1809_v37 = vsel %vm753_vm4, %v1803_v36, 0.0 }
 0xc64   : > { %1810 = vadd.xlane.f32.xlu1 %v1809_v37 }
 0xc75   : > { %1977 = vrot.lane.b32.xlu1 %v4220_v32, %s4464_s0  ;;  %v3686_v32 = vld [vmem:[%s4713_s24 + $0x1] ss:$0 sm:$0xff] }
 0xc79   : > { %1983 = vrot.lane.b32.xlu1 %v4959_v24, %s4464_s0 }
 0xcef   : > { %v1808_v40 = vpop.xlane.xlu0 %1807 }
 0xcf0   : > { %v1813_v15 = vmul.f32 0.03125, %v1808_v40 }
 0xcf1   : > { %v1811_v39 = vpop.xlane.xlu1 %1810 }
 0xcf2   : > { %v4931_v41 = vsub.f32 %v1802_v34, %v1813_v15  ;;  %v1814_v16 = vmul.f32 0.03125, %v1811_v39  ;;  %v3685_v34 = vld [vmem:[%s4713_s24] ss:$0 sm:$0xff] }
 0xcf4   : > { %v4933_v42 = vsub.f32 %v1803_v36, %v1814_v16  ;;  %v1817_v43 = vmul.f32 %v4931_v41, %v4931_v41 }
 0xcf5   : > { %v1978_v62 = vpop.permute.xlu1 %1977 }
 0xcf6   : > { %v1819_v23 = vsel %vm753_vm4, %v1817_v43, 0.0  ;;  %v1818_v44 = vmul.f32 %v4933_v42, %v4933_v42  ;;  %3957 = vmatprep.subr.bf16.mxu1 %v1978_v62 }
 0xcf7   : > { %1820 = vadd.xlane.f32.xlu0 %v1819_v23  ;;  %3958 = vmatpush3.bf16.msra.mxu1 %v1978_v62 }
 0xcf8   : > { %v1822_v45 = vsel %vm753_vm4, %v1818_v44, 0.0 }
 0xcf9   : > { %v1984_v23 = vpop.permute.xlu1 %1983 }
 0xcfb   : > { %1823 = vadd.xlane.f32.xlu0 %v1822_v45 }
 0xd11   : > { %1979 = vrot.lane.b32.xlu0 %v4221_v38, %s4464_s0 }
 0xd84   : > { %v1821_v25 = vpop.xlane.xlu0 %1820 }
 0xd85   : > { %v1825_v27 = vmul.f32 0.03125, %v1821_v25 }
 0xd87   : > { %v1827_v28 = vadd.f32 1e-05, %v1825_v27 }
 0xd88   : > { %v1824_v29 = vpop.xlane.xlu0 %1823 }
 0xd89   : > { %4262 = vrsqrt.f32 %v1827_v28  ;;  %v1826_v19 = vmul.f32 0.03125, %v1824_v29 }
 0xd8b   : > { %v1828_v30 = vadd.f32 1e-05, %v1826_v19 }
 0xd8c   : > { %v1980_v11 = vpop.permute.xlu0 %1979 }
 0xd8d   : > { %4264 = vrsqrt.f32 %v1828_v30  ;;  %3959 = vmatprep.subr.bf16.mxu1 %v1980_v11  ;;  %v5005_v30 = vld [vmem:[#allocation9] ss:$0 sm:$0xff] }
 0xd8e   : > { %3960 = vmatpush3.bf16.msra.mxu1 %v1980_v11 }
 0xd8f   : > { %3971 = vmatprep.subr.bf16.mxu1 %v4462_v12 }
 0xd91   : > { %3962 = vmatmul.mubr.msk.bf16.vlgmr.msra.gmra.mrb[40].mxu1 %vm753_vm4, %v1976_v18 }
 0xd92   : > { %3973 = vmatprep.mubr.msk.bf16.mxu1 %vm4463_vm3, %v4462_v12 }
 0xd93   : > { %v4263_v31 = vpop.eup %4262 }
 0xd94   : > { %v1831_v33 = vmul.f32 %v4263_v31, %v4931_v41  ;;  %v4480_v41 = vmov 1983009808  }
 0xd95   : > { %v2045_v16 = vunpack.c.l.s4 %v4480_v41 }
 0xd96   : > { %v1837_v36 = vmul.f32 %v3685_v34, %v1831_v33 }
 0xd97   : > { %v4265_v35 = vpop.eup %4264  ;;  %v2046_v43 = vunpack.c.0.s8 %v2045_v16 }
 0xd98   : > { %v1832_v37 = vmul.f32 %v4265_v35, %v4933_v42  ;;  %v4971_v40 = vadd.f32 %v3686_v32, %v1837_v36  ;;  %v5007_v35 = vld [vmem:[#allocation9 + $0x1] ss:$0 sm:$0xff] }
 0xd99   : > { %v2049_v42 = vsub.s32 %v2046_v43, %v4941_v47 }
 0xd9a   : > { %v1838_v38 = vmul.f32 %v3685_v34, %v1832_v37 }
 0xd9c   : > { %v4973_v15 = vadd.f32 %v3686_v32, %v1838_v38 }
 0xd9e   : > { %v1845_v39 = vpack.c.bf16 %v4973_v15, %v4971_v40 }
 0xda0   : > { %3954 = vmatmul.mubr.msk.bf16.vlgmr.msra.gmra.mrb[32].mxu0 %vm753_vm4, %v1845_v39 }
 0xda1   : > { %3967 = vmatprep.mubr.msk.bf16.mxu0 %vm4463_vm3, %v4462_v12 }
 0xe64   : > { %v3963_v44 = vpop.f32.mrb[40].mxu1 }
 0xe65   : > { %v2026_v45 = vpop.f32.mrb[41].mxu1  ;;  %v2035_v10 = vadd.f32 %v3963_v44, %v1984_v23 }
 0xe66   : > { %v2027_v5 = vadd.f32 %v2026_v45, %v1984_v23  ;;  %v3964_v9 = vpop.f32.mrb[42].mxu1 }
 0xe67   : > { %v2029_v46 = vpop.f32.mrb[43].mxu1  ;;  %v2083_v54 = vrot.slane %v2035_v10, %v2049_v42 }
 0xe68   : > { %v2043_v48 = vcombine.high %v2027_v5, %v2027_v5  ;;  %v2050_v49 = vrot.slane %v2027_v5, %v2049_v42  ;;  %v2030_v50 = vadd.f32 %v2029_v46, %v1984_v23 }
 0xe69   : > { %v2084_v61 = vcombine.high %v2083_v54, %v2083_v54 }
 0xe6a   : > { %v2057_v51 = vrot.slane %v2043_v48, %v2049_v42  ;;  %v2058_v52 = vcombine.high %v2050_v49, %v2050_v49  ;;  %v2060_v53 = vcombine.high %v2030_v50, %v2030_v50  ;;  %v2067_v26 = vrot.slane %v2030_v50, %v2049_v42 }
 0xe6b   : > { %v2134_v7 = vrot.slane %v2084_v61, %v2049_v42 }
 0xe6c   : > { %v2059_v55 = vcombine.high %v2057_v51, %v2057_v51  ;;  %v2087_v56 = vcombine.low %v2050_v49, %v2058_v52  ;;  %v2074_v57 = vrot.slane %v2060_v53, %v2049_v42  ;;  %v2075_v58 = vcombine.high %v2067_v26, %v2067_v26 }
 0xe6d   : > { %v2110_v2 = vrot.slane %v2067_v26, %v2049_v42 }
 0xe6e   : > { %v2088_v59 = vcombine.low %v2057_v51, %v2059_v55  ;;  %v2076_v60 = vcombine.high %v2074_v57, %v2074_v57  ;;  %v2111_v47 = vcombine.low %v2075_v58, %v2074_v57  ;;  %v2095_v62 = vrot.slane %v2087_v56, %v2049_v42 }
 0xe70   : > { %v2102_v63 = vrot.slane %v2088_v59, %v2049_v42  ;;  %v2112_v0 = vcombine.low %v2076_v60, %v2083_v54  ;;  %v2119_v3 = vrot.slane %v2111_v47, %v2049_v42 }
 0xe72   : > { %v2103_v1 = vcombine.low %v2095_v62, %v2102_v63  ;;  %v2126_v4 = vrot.slane %v2112_v0, %v2049_v42 }
 0xe73   : > { %v1906_v6 = vpop.f32.mrb[32].mxu0 }
 0xe74   : > { %v2127_v8 = vcombine.low %v2119_v3, %v2126_v4  ;;  %v4981_v13 = vpack.c.bf16 %v2110_v2, %v2103_v1  ;;  %v3955_v14 = vpop.f32.mrb[33].mxu0  ;;  %v1907_v18 = vadd.f32 %v4959_v24, %v1906_v6 }
 0xe75   : > { %v1909_v17 = vpop.f32.mrb[34].mxu0 }
 0xe76   : > { %v4983_v20 = vpack.c.bf16 %v2134_v7, %v2127_v8  ;;  %v3956_v21 = vpop.f32.mrb[35].mxu0  ;;  %v2145_v22 = vsel %vm803_vm5, %v4981_v13, 0  ;;  %v1910_v27 = vadd.f32 %v4959_v24, %v1909_v17  ;;  %v4993_v28 = vpack.c.bf16 %v1907_v18, %v1907_v18 }
 0xe77   : > { %3966 = vmatpush3.bf16.xpose.msra.mxu0 %v2145_v22 }
 0xe78   : > { %v2191_v25 = vsel %vm803_vm5, %v4983_v20, 0  ;;  %3977 = vmatprep.subr.bf16.mxu0 %v4462_v12  ;;  %v4995_v29 = vpack.c.bf16 %v1910_v27, %v1910_v27 }
 0xe79   : > { %3972 = vmatpush3.bf16.xpose.msra.mxu1 %v2191_v25 }
 0xe7a   : > { %3983 = vmatprep.subr.bf16.mxu1 %v4462_v12 }
 0xe7e   : > { %3968 = vmatmul.mubr.msk.bf16.vlgmr.msra.gmra.mrb[36].mxu0 %vm803_vm5, %v4993_v28 }
 0xe7f   : > { %3979 = vmatprep.mubr.msk.bf16.mxu0 %vm4463_vm3, %v4462_v12 }
 0xe80   : > { %3974 = vmatmul.mubr.msk.bf16.vlgmr.msra.gmra.mrb[44].mxu1 %vm803_vm5, %v4995_v29 }
 0xe81   : > { %3985 = vmatprep.mubr.msk.bf16.mxu1 %vm4463_vm3, %v4462_v12 }
 0xf51   : > { %v2181_v19 = vpop.f32.mrb[36].mxu0 }
 0xf52   : > { %v2233_v11 = vmul.f32 0.35355338, %v2181_v19  ;;  %v3969_v31 = vpop.f32.mrb[37].mxu0 }
 0xf53   : > { %v2184_v33 = vpop.f32.mrb[38].mxu0  ;;  %v2227_v34 = vpop.f32.mrb[44].mxu1 }
 0xf54   : > { %v2234_v36 = vmul.f32 0.35355338, %v2227_v34  ;;  %v3970_v37 = vpop.f32.mrb[39].mxu0  ;;  %v3975_v32 = vpop.f32.mrb[45].mxu1  ;;  %v2247_v38 = vadd.f32 %v5005_v30, %v2233_v11 }
 0xf55   : > { %v2230_v39 = vpop.f32.mrb[46].mxu1 }
 0xf56   : > { %v3976_v41 = vpop.f32.mrb[47].mxu1  ;;  %v2250_v16 = vsel %vm2249_vm9, %v2247_v38, -inf  ;;  %v2248_v43 = vadd.f32 %v5007_v35, %v2234_v36 }
 0xf57   : > { %2251 = vmax.xlane.f32.xlu1 %v2250_v16 }
 0xf58   : > { %v2253_v23 = vsel %vm2249_vm9, %v2248_v43, -inf }
 0xf59   : > { %2254 = vmax.xlane.f32.xlu0 %v2253_v23 }
 0xf68   : > { %2325 = vrot.lane.b32.xlu1 %v4983_v20, %s4464_s0 }
 0xf6f   : > { %2275 = vrot.lane.b32.xlu0 %v4981_v13, %s4464_s0  ;;  %s5303_s0 = smov 8  }
 0xfe4   : > { %v2252_v44 = vpop.xlane.xlu1 %2251 }
 0xfe5   : > { %v2256_v42 = vsub.f32 %v2247_v38, %v2252_v44 }
 0xfe6   : > { %v2255_v45 = vpop.xlane.xlu0 %2254 }
 0xfe7   : > { %v2258_v5 = vmul.f32 1.442695, %v2256_v42  ;;  %v2257_v9 = vsub.f32 %v2248_v43, %v2255_v45 }
 0xfe8   : > { %v2326_v10 = vpop.permute.xlu1 %2325 }
 0xfe9   : > { %4266 = vpow2.f32 %v2258_v5  ;;  %v2260_v46 = vmul.f32 1.442695, %v2257_v9  ;;  %v2331_v48 = vsel %vm2280_vm10, %v2326_v10, 0 }
 0xfea   : > { %v2276_v49 = vpop.permute.xlu0 %2275  ;;  %3984 = vmatpush3.bf16.msra.mxu1 %v2331_v48 }
 0xfeb   : > { %4268 = vpow2.f32 %v2260_v46  ;;  %v2282_v50 = vsel %vm2280_vm10, %v2276_v49, 0  ;;  %3995 = vmatprep.subr.bf16.mxu1 %v4462_v12 }
 0xfec   : > { %3978 = vmatpush3.bf16.msra.mxu0 %v2282_v50 }
 0xfed   : > { %3989 = vmatprep.subr.bf16.mxu0 %v4462_v12 }
 0xff3   : > { %v4267_v51 = vpop.eup %4266 }
 0xff4   : > { %v2262_v52 = vsel %vm2249_vm9, %v4267_v51, 0.0 }
 0xff5   : > { %v4269_v53 = vpop.eup %4268  ;;  %2263 = vadd.xlane.f32.xlu0 %v2262_v52 }
 0xff6   : > { %v2265_v26 = vsel %vm2249_vm9, %v4269_v53, 0.0 }
 0xff7   : > { %2266 = vadd.xlane.f32.xlu1 %v2265_v26 }
0x1008   : > { %2376 = vrot.lane.b32.xlu1 %v4981_v13, %s4467_s19 }
0x100b   : > { %2427 = vrot.lane.b32.xlu0 %v4983_v20, %s4467_s19 }
0x100c   : > { %2374 = vrot.lane.b32.xlu1 %v4993_v28, %s4467_s19 }
0x100f   : > { %2425 = vrot.lane.b32.xlu0 %v4995_v29, %s4467_s19  ;;  %s5305_s19 = smov 24  }
0x1082   : > { %v2264_v54 = vpop.xlane.xlu0 %2263 }
0x1083   : > { %4270 = vrcp.f32 %v2264_v54 }
0x1084   : > { %v2267_v55 = vpop.xlane.xlu1 %2266 }
0x1085   : > { %4272 = vrcp.f32 %v2267_v55 }
0x1086   : > { %v2428_v61 = vpop.permute.xlu0 %2427 }
0x1087   : > { %v2433_v0 = vsel %vm803_vm5, %v2428_v61, 0 }
0x1088   : > { %v2377_v59 = vpop.permute.xlu1 %2376 }
0x1089   : > { %v2382_v62 = vsel %vm803_vm5, %v2377_v59, 0 }
0x108a   : > { %v2426_v2 = vpop.permute.xlu0 %2425 }
0x108c   : > { %v2375_v1 = vpop.permute.xlu1 %2374 }
0x108d   : > { %v4271_v56 = vpop.eup %4270 }
0x108e   : > { %v2270_v57 = vmul.f32 %v4271_v56, %v4267_v51 }
0x108f   : > { %v4273_v58 = vpop.eup %4272 }
0x1090   : > { %v2271_v60 = vmul.f32 %v4273_v58, %v4269_v53  ;;  %v2272_v47 = vpack.c.bf16 %v2270_v57, %v2270_v57 }
0x1092   : > { %3980 = vmatmul.mubr.msk.bf16.vlgmr.msra.gmra.mrb[40].mxu0 %vm2249_vm9, %v2272_v47  ;;  %v2273_v63 = vpack.c.bf16 %v2271_v60, %v2271_v60 }
0x1093   : > { %3990 = vmatpush3.bf16.xpose.msra.mxu0 %v2382_v62  ;;  %3991 = vmatprep.mubr.msk.bf16.mxu0 %vm4463_vm3, %v4462_v12 }
0x1094   : > { %3986 = vmatmul.mubr.msk.bf16.vlgmr.msra.gmra.mrb[48].mxu1 %vm2249_vm9, %v2273_v63  ;;  %4001 = vmatprep.subr.bf16.mxu0 %v4462_v12 }
0x1095   : > { %3996 = vmatpush3.bf16.xpose.msra.mxu1 %v2433_v0  ;;  %3997 = vmatprep.mubr.msk.bf16.mxu1 %vm4463_vm3, %v4462_v12 }
0x1096   : > { %4007 = vmatprep.subr.bf16.mxu1 %v4462_v12 }
0x109a   : > { %3992 = vmatmul.mubr.msk.bf16.vlgmr.msra.gmra.mrb[44].mxu0 %vm803_vm5, %v2375_v1 }
0x109b   : > { %4003 = vmatprep.mubr.msk.bf16.mxu0 %vm4463_vm3, %v4462_v12 }
0x109c   : > { %3998 = vmatmul.mubr.msk.bf16.vlgmr.msra.gmra.mrb[52].mxu1 %vm803_vm5, %v2426_v2 }
0x109d   : > { %4009 = vmatprep.mubr.msk.bf16.mxu1 %vm4463_vm3, %v4462_v12 }
0x1165   : > { %v5047_v3 = vpop.f32.mrb[40].mxu0 }
0x1166   : > { %v3981_v4 = vpop.f32.mrb[41].mxu0 }
0x1167   : > { %v2321_v6 = vpop.f32.mrb[42].mxu0  ;;  %v5049_v7 = vpop.f32.mrb[48].mxu1 }
0x1168   : > { %v3982_v8 = vpop.f32.mrb[43].mxu0  ;;  %v3987_v14 = vpop.f32.mrb[49].mxu1 }
0x1169   : > { %v2370_v17 = vpop.f32.mrb[50].mxu1 }
0x116a   : > { %v3988_v21 = vpop.f32.mrb[51].mxu1 }
0x116d   : > { %v2418_v22 = vpop.f32.mrb[44].mxu0 }
0x116e   : > { %v2475_v18 = vmul.f32 0.35355338, %v2418_v22  ;;  %v3993_v25 = vpop.f32.mrb[45].mxu0 }
0x116f   : > { %v2421_v27 = vpop.f32.mrb[46].mxu0  ;;  %v2469_v19 = vpop.f32.mrb[52].mxu1 }
0x1170   : > { %v2476_v11 = vmul.f32 0.35355338, %v2469_v19  ;;  %v3994_v31 = vpop.f32.mrb[47].mxu0  ;;  %v3999_v33 = vpop.f32.mrb[53].mxu1  ;;  %v2477_v34 = vadd.f32 %v5005_v30, %v2475_v18 }
0x1171   : > { %v2472_v36 = vpop.f32.mrb[54].mxu1 }
0x1172   : > { %v4000_v37 = vpop.f32.mrb[55].mxu1  ;;  %v2479_v32 = vsel %vm2249_vm9, %v2477_v34, -inf  ;;  %v2478_v38 = vadd.f32 %v5007_v35, %v2476_v11 }
0x1173   : > { %2480 = vmax.xlane.f32.xlu1 %v2479_v32 }
0x1174   : > { %v2482_v39 = vsel %vm2249_vm9, %v2478_v38, -inf }
0x1175   : > { %2483 = vmax.xlane.f32.xlu0 %v2482_v39 }
0x1184   : > { %2551 = vrot.lane.b32.xlu1 %v4983_v20, %s4466_s27 }
0x118b   : > { %2503 = vrot.lane.b32.xlu0 %v4981_v13, %s4466_s27  ;;  %s5304_s27 = smov 16  }
0x1200   : > { %v2481_v41 = vpop.xlane.xlu1 %2480 }
0x1201   : > { %v2485_v16 = vsub.f32 %v2477_v34, %v2481_v41 }
0x1202   : > { %v2484_v43 = vpop.xlane.xlu0 %2483 }
0x1203   : > { %v2487_v23 = vmul.f32 1.442695, %v2485_v16  ;;  %v2486_v44 = vsub.f32 %v2478_v38, %v2484_v43 }
0x1204   : > { %v2552_v42 = vpop.permute.xlu1 %2551 }
0x1205   : > { %4274 = vpow2.f32 %v2487_v23  ;;  %v2489_v45 = vmul.f32 1.442695, %v2486_v44  ;;  %v2557_v5 = vsel %vm2280_vm10, %v2552_v42, 0 }
0x1206   : > { %v2504_v9 = vpop.permute.xlu0 %2503  ;;  %4008 = vmatpush3.bf16.msra.mxu1 %v2557_v5 }
0x1207   : > { %4276 = vpow2.f32 %v2489_v45  ;;  %v2509_v10 = vsel %vm2280_vm10, %v2504_v9, 0  ;;  %4019 = vmatprep.subr.bf16.mxu1 %v4462_v12 }
0x1208   : > { %4002 = vmatpush3.bf16.msra.mxu0 %v2509_v10 }
0x1209   : > { %4013 = vmatprep.subr.bf16.mxu0 %v4462_v12 }
0x120f   : > { %v4275_v46 = vpop.eup %4274 }
0x1210   : > { %v2491_v48 = vsel %vm2249_vm9, %v4275_v46, 0.0 }
0x1211   : > { %v4277_v49 = vpop.eup %4276  ;;  %2492 = vadd.xlane.f32.xlu0 %v2491_v48 }
0x1212   : > { %v2494_v50 = vsel %vm2249_vm9, %v4277_v49, 0.0 }
0x1213   : > { %2495 = vadd.xlane.f32.xlu1 %v2494_v50 }
0x1224   : > { %2601 = vrot.lane.b32.xlu1 %v4981_v13, %s4470_s15 }
0x1227   : > { %2651 = vrot.lane.b32.xlu0 %v4983_v20, %s4470_s15 }
0x1228   : > { %2599 = vrot.lane.b32.xlu1 %v4993_v28, %s4470_s15 }
0x122b   : > { %2649 = vrot.lane.b32.xlu0 %v4995_v29, %s4470_s15 }
0x129e   : > { %v2493_v51 = vpop.xlane.xlu0 %2492 }
0x129f   : > { %4278 = vrcp.f32 %v2493_v51 }
0x12a0   : > { %v2496_v52 = vpop.xlane.xlu1 %2495 }
0x12a1   : > { %4280 = vrcp.f32 %v2496_v52 }
0x12a2   : > { %v2652_v58 = vpop.permute.xlu0 %2651 }
0x12a3   : > { %v2657_v47 = vsel %vm803_vm5, %v2652_v58, 0 }
0x12a4   : > { %v2602_v55 = vpop.permute.xlu1 %2601 }
0x12a5   : > { %v2607_v59 = vsel %vm803_vm5, %v2602_v55, 0 }
0x12a6   : > { %v2650_v62 = vpop.permute.xlu0 %2649 }
0x12a8   : > { %v2600_v61 = vpop.permute.xlu1 %2599 }
0x12a9   : > { %v4279_v53 = vpop.eup %4278 }
0x12aa   : > { %v2499_v26 = vmul.f32 %v4279_v53, %v4275_v46 }
0x12ab   : > { %v4281_v54 = vpop.eup %4280 }
0x12ac   : > { %v2500_v56 = vmul.f32 %v4281_v54, %v4277_v49  ;;  %v2501_v57 = vpack.c.bf16 %v2499_v26, %v2499_v26 }
0x12ae   : > { %4004 = vmatmul.mubr.msk.bf16.vlgmr.msra.gmra.mrb[48].mxu0 %vm2249_vm9, %v2501_v57  ;;  %v2502_v60 = vpack.c.bf16 %v2500_v56, %v2500_v56 }
0x12af   : > { %4014 = vmatpush3.bf16.xpose.msra.mxu0 %v2607_v59  ;;  %4015 = vmatprep.mubr.msk.bf16.mxu0 %vm4463_vm3, %v4462_v12 }
0x12b0   : > { %4010 = vmatmul.mubr.msk.bf16.vlgmr.msra.gmra.mrb[56].mxu1 %vm2249_vm9, %v2502_v60  ;;  %4025 = vmatprep.subr.bf16.mxu0 %v4462_v12 }
0x12b1   : > { %4020 = vmatpush3.bf16.xpose.msra.mxu1 %v2657_v47  ;;  %4021 = vmatprep.mubr.msk.bf16.mxu1 %vm4463_vm3, %v4462_v12 }
0x12b2   : > { %4031 = vmatprep.subr.bf16.mxu1 %v4462_v12 }
0x12b6   : > { %4016 = vmatmul.mubr.msk.bf16.vlgmr.msra.gmra.mrb[52].mxu0 %vm803_vm5, %v2600_v61 }
0x12b7   : > { %4027 = vmatprep.mubr.msk.bf16.mxu0 %vm4463_vm3, %v4462_v12 }
0x12b8   : > { %4022 = vmatmul.mubr.msk.bf16.vlgmr.msra.gmra.mrb[60].mxu1 %vm803_vm5, %v2650_v62 }
0x12b9   : > { %4033 = vmatprep.mubr.msk.bf16.mxu1 %vm4463_vm3, %v4462_v12 }
0x1381   : > { %v5089_v63 = vpop.f32.mrb[48].mxu0 }
0x1382   : > { %v4005_v0 = vpop.f32.mrb[49].mxu0 }
0x1383   : > { %v2548_v1 = vpop.f32.mrb[50].mxu0  ;;  %v5091_v2 = vpop.f32.mrb[56].mxu1 }
0x1384   : > { %v4201_v4 = vpack.i.bf16 %v5091_v2, %v5089_v63  ;;  %v4006_v6 = vpop.f32.mrb[51].mxu0  ;;  %v4011_v8 = vpop.f32.mrb[57].mxu1 }
0x1385   : > { %v2596_v14 = vpop.f32.mrb[58].mxu1 }
0x1386   : > { %v4012_v17 = vpop.f32.mrb[59].mxu1 }
0x1389   : > { %v2643_v21 = vpop.f32.mrb[52].mxu0 }
0x138a   : > { %v2699_v22 = vmul.f32 0.35355338, %v2643_v21  ;;  %v4017_v18 = vpop.f32.mrb[53].mxu0 }
0x138b   : > { %v2646_v25 = vpop.f32.mrb[54].mxu0  ;;  %v2693_v27 = vpop.f32.mrb[60].mxu1 }
0x138c   : > { %v2700_v19 = vmul.f32 0.35355338, %v2693_v27  ;;  %v4018_v11 = vpop.f32.mrb[55].mxu0  ;;  %v4023_v31 = vpop.f32.mrb[61].mxu1  ;;  %v2701_v33 = vadd.f32 %v5005_v30, %v2699_v22 }
0x138d   : > { %v2696_v34 = vpop.f32.mrb[62].mxu1 }
0x138e   : > { %v4024_v36 = vpop.f32.mrb[63].mxu1  ;;  %v2703_v37 = vsel %vm2249_vm9, %v2701_v33, -inf  ;;  %v2702_v32 = vadd.f32 %v5007_v35, %v2700_v19 }
0x138f   : > { %2704 = vmax.xlane.f32.xlu1 %v2703_v37 }
0x1390   : > { %v2706_v38 = vsel %vm2249_vm9, %v2702_v32, -inf }
0x1391   : > { %2707 = vmax.xlane.f32.xlu0 %v2706_v38 }
0x13a0   : > { %2775 = vrot.lane.b32.xlu1 %v4983_v20, %s4469_s14 }
0x13a7   : > { %2727 = vrot.lane.b32.xlu0 %v4981_v13, %s4469_s14  ;;  %s5306_s14 = scalar_lea.vmem %s5267_s7, %s4680_s29 }
0x141c   : > { %v2705_v39 = vpop.xlane.xlu1 %2704 }
0x141d   : > { %v2709_v41 = vsub.f32 %v2701_v33, %v2705_v39 }
0x141e   : > { %v2708_v16 = vpop.xlane.xlu0 %2707 }
0x141f   : > { %v2711_v43 = vmul.f32 1.442695, %v2709_v41  ;;  %v2710_v23 = vsub.f32 %v2702_v32, %v2708_v16 }
0x1420   : > { %v2776_v44 = vpop.permute.xlu1 %2775 }
0x1421   : > { %4282 = vpow2.f32 %v2711_v43  ;;  %v2713_v42 = vmul.f32 1.442695, %v2710_v23  ;;  %v2781_v45 = vsel %vm2280_vm10, %v2776_v44, 0 }
0x1422   : > { %v2728_v5 = vpop.permute.xlu0 %2727  ;;  %4032 = vmatpush3.bf16.msra.mxu1 %v2781_v45 }
0x1423   : > { %4284 = vpow2.f32 %v2713_v42  ;;  %v2733_v9 = vsel %vm2280_vm10, %v2728_v5, 0  ;;  %4043 = vmatprep.subr.bf16.mxu1 %v4462_v12  ;;  %v4222_v5 = vld [vmem:[%s4687_s26 + $0x4] ss:$8 sps:$4 sm:$0xff]  }
0x1424   : > { %4026 = vmatpush3.bf16.msra.mxu0 %v2733_v9 }
0x1425   : > { %4037 = vmatprep.subr.bf16.mxu0 %v4462_v12 }
0x142b   : > { %v4283_v10 = vpop.eup %4282 }
0x142c   : > { %v2715_v46 = vsel %vm2249_vm9, %v4283_v10, 0.0 }
0x142d   : > { %v4285_v48 = vpop.eup %4284  ;;  %2716 = vadd.xlane.f32.xlu0 %v2715_v46 }
0x142e   : > { %v2718_v49 = vsel %vm2249_vm9, %v4285_v48, 0.0 }
0x142f   : > { %2719 = vadd.xlane.f32.xlu1 %v2718_v49 }
0x1440   : > { %2825 = vrot.lane.b32.xlu1 %v4981_v13, %s4473_s22 }
0x1443   : > { %2875 = vrot.lane.b32.xlu0 %v4983_v20, %s4473_s22 }
0x1444   : > { %2823 = vrot.lane.b32.xlu1 %v4993_v28, %s4473_s22 }
0x1447   : > { %2873 = vrot.lane.b32.xlu0 %v4995_v29, %s4473_s22  ;;  %s5307_s22 = sld [smem:[#allocation17_spill]] (!%p3730_p10) }
0x14ba   : > { %v2717_v50 = vpop.xlane.xlu0 %2716 }
0x14bb   : > { %4286 = vrcp.f32 %v2717_v50 }
0x14bc   : > { %v2720_v51 = vpop.xlane.xlu1 %2719 }
0x14bd   : > { %4288 = vrcp.f32 %v2720_v51 }
0x14be   : > { %v2876_v57 = vpop.permute.xlu0 %2875 }
0x14bf   : > { %v2881_v28 = vsel %vm803_vm5, %v2876_v57, 0 }
0x14c0   : > { %v2826_v54 = vpop.permute.xlu1 %2825 }
0x14c1   : > { %v2831_v58 = vsel %vm803_vm5, %v2826_v54, 0 }
0x14c2   : > { %v2874_v60 = vpop.permute.xlu0 %2873 }
0x14c4   : > { %v2824_v29 = vpop.permute.xlu1 %2823 }
0x14c5   : > { %v4287_v52 = vpop.eup %4286 }
0x14c6   : > { %v2723_v53 = vmul.f32 %v4287_v52, %v4283_v10 }
0x14c7   : > { %v4289_v26 = vpop.eup %4288 }
0x14c8   : > { %v2724_v55 = vmul.f32 %v4289_v26, %v4285_v48  ;;  %v2725_v56 = vpack.c.bf16 %v2723_v53, %v2723_v53  ;;  %v4223_v53 = vld [vmem:[%s4687_s26 + $0x14] ss:$8 sps:$4 sm:$0xff]  }
0x14ca   : > { %4028 = vmatmul.mubr.msk.bf16.vlgmr.msra.gmra.mrb[56].mxu0 %vm2249_vm9, %v2725_v56  ;;  %v2726_v59 = vpack.c.bf16 %v2724_v55, %v2724_v55 }
0x14cb   : > { %4038 = vmatpush3.bf16.xpose.msra.mxu0 %v2831_v58  ;;  %4039 = vmatprep.mubr.msk.bf16.mxu0 %vm4463_vm3, %v4462_v12 }
0x14cc   : > { %4034 = vmatmul.mubr.msk.bf16.vlgmr.msra.gmra.mrb[64].mxu1 %vm2249_vm9, %v2726_v59  ;;  %4049 = vmatprep.subr.bf16.mxu0 %v4462_v12 }
0x14cd   : > { %4044 = vmatpush3.bf16.xpose.msra.mxu1 %v2881_v28  ;;  %4045 = vmatprep.mubr.msk.bf16.mxu1 %vm4463_vm3, %v4462_v12 }
0x14ce   : > { %4055 = vmatprep.subr.bf16.mxu1 %v4462_v12 }
0x14d2   : > { %4040 = vmatmul.mubr.msk.bf16.vlgmr.msra.gmra.mrb[60].mxu0 %vm803_vm5, %v2824_v29 }
0x14d3   : > { %4051 = vmatprep.mubr.msk.bf16.mxu0 %vm4463_vm3, %v4462_v12 }
0x14d4   : > { %4046 = vmatmul.mubr.msk.bf16.vlgmr.msra.gmra.mrb[68].mxu1 %vm803_vm5, %v2874_v60 }
0x14d5   : > { %4057 = vmatprep.mubr.msk.bf16.mxu1 %vm4463_vm3, %v4462_v12 }
0x159d   : > { %v2769_v47 = vpop.f32.mrb[56].mxu0 }
0x159e   : > { %v4029_v61 = vpop.f32.mrb[57].mxu0 }
0x159f   : > { %v2772_v62 = vpop.f32.mrb[58].mxu0  ;;  %v2817_v0 = vpop.f32.mrb[64].mxu1 }
0x15a0   : > { %v4206_v1 = vpack.i.bf16 %v2817_v0, %v2769_v47  ;;  %v4030_v6 = vpop.f32.mrb[59].mxu0  ;;  %v4035_v8 = vpop.f32.mrb[65].mxu1 }
0x15a1   : > { %v2820_v14 = vpop.f32.mrb[66].mxu1 }
0x15a2   : > { %v4036_v17 = vpop.f32.mrb[67].mxu1 }
0x15a5   : > { %v2867_v21 = vpop.f32.mrb[60].mxu0 }
0x15a6   : > { %v2923_v22 = vmul.f32 0.35355338, %v2867_v21  ;;  %v4041_v18 = vpop.f32.mrb[61].mxu0 }
0x15a7   : > { %v2870_v25 = vpop.f32.mrb[62].mxu0  ;;  %v2917_v27 = vpop.f32.mrb[68].mxu1 }
0x15a8   : > { %v2924_v19 = vmul.f32 0.35355338, %v2917_v27  ;;  %v4042_v11 = vpop.f32.mrb[63].mxu0  ;;  %v4047_v31 = vpop.f32.mrb[69].mxu1  ;;  %v2925_v33 = vadd.f32 %v5005_v30, %v2923_v22 }
0x15a9   : > { %v2920_v34 = vpop.f32.mrb[70].mxu1 }
0x15aa   : > { %v4048_v36 = vpop.f32.mrb[71].mxu1  ;;  %v2927_v37 = vsel %vm2249_vm9, %v2925_v33, -inf  ;;  %v2926_v32 = vadd.f32 %v5007_v35, %v2924_v19 }
0x15ab   : > { %2928 = vmax.xlane.f32.xlu1 %v2927_v37 }
0x15ac   : > { %v2930_v38 = vsel %vm2249_vm9, %v2926_v32, -inf }
0x15ad   : > { %2931 = vmax.xlane.f32.xlu0 %v2930_v38 }
0x1638   : > { %v2929_v39 = vpop.xlane.xlu1 %2928 }
0x1639   : > { %v2933_v41 = vsub.f32 %v2925_v33, %v2929_v39 }
0x163a   : > { %v2932_v16 = vpop.xlane.xlu0 %2931 }
0x163b   : > { %v2935_v43 = vmul.f32 1.442695, %v2933_v41  ;;  %v2934_v23 = vsub.f32 %v2926_v32, %v2932_v16 }
0x163d   : > { %4290 = vpow2.f32 %v2935_v43  ;;  %v2937_v44 = vmul.f32 1.442695, %v2934_v23 }
0x163f   : > { %4292 = vpow2.f32 %v2937_v44 }
0x1647   : > { %v4291_v30 = vpop.eup %4290 }
0x1648   : > { %v2939_v42 = vsel %vm2249_vm9, %v4291_v30, 0.0 }
0x1649   : > { %v4293_v45 = vpop.eup %4292  ;;  %2940 = vadd.xlane.f32.xlu0 %v2939_v42 }
0x164a   : > { %v2942_v35 = vsel %vm2249_vm9, %v4293_v45, 0.0 }
0x164b   : > { %2943 = vadd.xlane.f32.xlu1 %v2942_v35  ;;  %v4224_v35 = vld [vmem:[%s4702_s13] sm:$0xff]  }
0x165c   : > { %2999 = vrot.lane.b32.xlu1 %v4983_v20, %s4472_s16 }
0x165f   : > { %2951 = vrot.lane.b32.xlu0 %v4981_v13, %s4472_s16 }
0x1660   : > { %3098 = vrot.lane.b32.xlu1 %v4222_v5, %s5302_s18  ;;  %v4225_v5 = vld [vmem:[%s4702_s13 + $0x8] sm:$0xff]  }
0x1663   : > { %4202 = vrot.lane.b32.xlu0 %v4201_v4, %s5303_s0 }
0x1664   : > { %4207 = vrot.lane.b32.xlu1 %v4206_v1, %s5304_s27 }
0x1668   : > { %3100 = vrot.lane.b32.xlu1 %v4223_v53, %s5302_s18 }
0x16d6   : > { %v2941_v9 = vpop.xlane.xlu0 %2940 }
0x16d7   : > { %4294 = vrcp.f32 %v2941_v9  ;;  %v4226_v9 = vld [vmem:[%s4707_s11] sm:$0xff]  }
0x16d8   : > { %v2944_v10 = vpop.xlane.xlu1 %2943 }
0x16d9   : > { %4296 = vrcp.f32 %v2944_v10  ;;  %v4227_v10 = vld [vmem:[%s4707_s11 + $0x8] sm:$0xff]  }
0x16da   : > { %v2952_v46 = vpop.permute.xlu0 %2951 }
0x16db   : > { %v2957_v20 = vsel %vm2280_vm10, %v2952_v46, 0 }
0x16dc   : > { %4050 = vmatpush3.bf16.msra.mxu0 %v2957_v20  ;;  %v3000_v48 = vpop.permute.xlu1 %2999 }
0x16dd   : > { %v3005_v13 = vsel %vm2280_vm10, %v3000_v48, 0  ;;  %4061 = vmatprep.subr.bf16.mxu0 %v4462_v12 }
0x16de   : > { %4056 = vmatpush3.bf16.msra.mxu1 %v3005_v13  ;;  %v4203_v61 = vpop.permute.xlu0 %4202 }
0x16df   : > { %4069 = vmatprep.subr.bf16.mxu1 %v4462_v12  ;;  %v4205_v62 = vunpack.i.h.bf16 %v4203_v61  ;;  %v4204_v0 = vunpack.i.l.bf16 %v4203_v61 }
0x16e0   : > { %v3099_v51 = vpop.permute.xlu1 %3098 }
0x16e1   : > { %v4295_v63 = vpop.eup %4294  ;;  %v3072_v14 = vsel %vm803_vm5, %v5049_v7, %v4205_v62  ;;  %v3071_v17 = vsel %vm803_vm5, %v5047_v3, %v4204_v0 }
0x16e2   : > { %v2947_v2 = vmul.f32 %v4295_v63, %v4291_v30 }
0x16e3   : > { %v4297_v4 = vpop.eup %4296 }
0x16e4   : > { %v2948_v49 = vmul.f32 %v4297_v4, %v4293_v45  ;;  %v2949_v50 = vpack.c.bf16 %v2947_v2, %v2947_v2  ;;  %v4208_v26 = vpop.permute.xlu1 %4207 }
0x16e5   : > { %v4210_v1 = vunpack.i.h.bf16 %v4208_v26  ;;  %v4209_v6 = vunpack.i.l.bf16 %v4208_v26  ;;  %v3717_v26 = vld [vmem:[%s4713_s24 + $0x3] ss:$0 sm:$0xff] }
0x16e6   : > { %4052 = vmatmul.mubr.msk.bf16.vlgmr.msra.gmra.mrb[64].mxu0 %vm2249_vm9, %v2949_v50  ;;  %v2950_v52 = vpack.c.bf16 %v2948_v49, %v2948_v49  ;;  %v3716_v49 = vld [vmem:[%s4713_s24 + $0x2] ss:$0 sm:$0xff] }
0x16e7   : > { %4062 = vmatpush3.bf16.msra.mxu0 %v3099_v51  ;;  %4065 = vmatprep.mubr.msk.bf16.mxu0 %vm4463_vm3, %v4462_v12  ;;  %v3074_v18 = vsel %vm1722_vm7, %v3072_v14, %v4210_v1  ;;  %v3073_v25 = vsel %vm1722_vm7, %v3071_v17, %v4209_v6  ;;  %v3722_v14 = vld [vmem:[%s4713_s24 + $0x6] ss:$0 sm:$0xff] }
0x16e8   : > { %4058 = vmatmul.mubr.msk.bf16.vlgmr.msra.gmra.mrb[72].mxu1 %vm2249_vm9, %v2950_v52  ;;  %4063 = vmatprep.subr.bf16.mxu0 %v4462_v12  ;;  %v3101_v54 = vpop.permute.xlu1 %3100 }
0x16e9   : > { %4073 = vmatprep.mubr.msk.bf16.mxu1 %vm4463_vm3, %v4462_v12  ;;  %4070 = vmatpush3.bf16.msra.mxu1 %v4224_v35  ;;  %v3729_v35 = vld [vmem:[%s4713_s24 + $0x5] ss:$0 sm:$0xff] }
0x16ea   : > { %4071 = vmatprep.subr.bf16.mxu1 %v4462_v12 }
0x16eb   : > { %4064 = vmatpush3.bf16.msra.mxu0 %v3101_v54 }
0x16ec   : > { %4077 = vmatprep.subr.bf16.mxu0 %v4462_v12 }
0x16ed   : > { %4072 = vmatpush3.bf16.msra.mxu1 %v4225_v5 }
0x17b9   : > { %v2993_v55 = vpop.f32.mrb[64].mxu0 }
0x17ba   : > { %v4053_v56 = vpop.f32.mrb[65].mxu0 }
0x17bb   : > { %v2996_v57 = vpop.f32.mrb[66].mxu0  ;;  %v3041_v58 = vpop.f32.mrb[72].mxu1 }
0x17bc   : > { %v4211_v59 = vpack.i.bf16 %v3041_v58, %v2993_v55  ;;  %v4054_v28 = vpop.f32.mrb[67].mxu0  ;;  %v4059_v29 = vpop.f32.mrb[73].mxu1  ;;  %v4228_v58 = vld [vmem:[%s4707_s11 + $0x10] sm:$0xff]  }
0x17bd   : > { %v3044_v60 = vpop.f32.mrb[74].mxu1  ;;  %v3718_v28 = vld [vmem:[%s5306_s14] ss:$0 sm:$0xff] }
0x17be   : > { %v4060_v47 = vpop.f32.mrb[75].mxu1  ;;  %4212 = vrot.lane.b32.xlu0 %v4211_v59, %s5305_s19  ;;  %v4229_v59 = vld [vmem:[%s4707_s11 + $0x18] sm:$0xff]  }
0x17c2   : > { %3104 = vrot.lane.b32.xlu0 %v4959_v24, %s5302_s18 }
0x1830   : > { %v4213_v8 = vpop.permute.xlu0 %4212 }
0x1831   : > { %v4215_v21 = vunpack.i.h.bf16 %v4213_v8  ;;  %v4214_v22 = vunpack.i.l.bf16 %v4213_v8 }
0x1833   : > { %v3076_v24 = vsel %vm1725_vm8, %v3074_v18, %v4215_v21  ;;  %v3075_v27 = vsel %vm1725_vm8, %v3073_v25, %v4214_v22 }
0x1834   : > { %v3077_v19 = vpack.c.bf16 %v3076_v24, %v3075_v27  ;;  %v3105_v7 = vpop.permute.xlu0 %3104 }
0x1836   : > { %4066 = vmatmul.mubr.msk.bf16.vlgmr.msra.gmra.mrb[68].mxu0 %vm753_vm4, %v3077_v19 }
0x1837   : > { %4085 = vmatprep.mubr.msk.bf16.mxu0 %vm4463_vm3, %v4462_v12  ;;  %4078 = vmatpush3.bf16.msra.mxu0 %v4226_v9 }
0x1838   : > { %4079 = vmatprep.subr.bf16.mxu0 %v4462_v12 }
0x183b   : > { %4080 = vmatpush3.bf16.msra.mxu0 %v4227_v10 }
0x183c   : > { %4081 = vmatprep.subr.bf16.mxu0 %v4462_v12 }
0x183f   : > { %4082 = vmatpush3.bf16.msra.mxu0 %v4228_v58 }
0x1840   : > { %4083 = vmatprep.subr.bf16.mxu0 %v4462_v12 }
0x1843   : > { %4084 = vmatpush3.bf16.msra.mxu0 %v4229_v59 }
0x1909   : > { %v3144_v11 = vpop.f32.mrb[68].mxu0 }
0x190a   : > { %v3145_v31 = vadd.f32 %v3144_v11, %v3105_v7  ;;  %v4067_v3 = vpop.f32.mrb[69].mxu0 }
0x190b   : > { %v3147_v33 = vpop.f32.mrb[70].mxu0 }
0x190c   : > { %v3151_v34 = vadd.f32 %v3145_v31, %v4971_v40  ;;  %v3148_v36 = vadd.f32 %v3147_v33, %v3105_v7  ;;  %v4068_v37 = vpop.f32.mrb[71].mxu0 }
0x190e   : > { %v3155_v32 = vsel %vm753_vm4, %v3151_v34, 0.0  ;;  %v3152_v38 = vadd.f32 %v3148_v36, %v4973_v15 }
0x190f   : > { %3156 = vadd.xlane.f32.xlu1 %v3155_v32 }
0x1910   : > { %v3158_v39 = vsel %vm753_vm4, %v3152_v38, 0.0 }
0x1911   : > { %3159 = vadd.xlane.f32.xlu0 %v3158_v39 }
0x199c   : > { %v3157_v41 = vpop.xlane.xlu1 %3156 }
0x199d   : > { %v3161_v16 = vmul.f32 0.03125, %v3157_v41 }
0x199e   : > { %v3160_v43 = vpop.xlane.xlu0 %3159 }
0x199f   : > { %v3163_v23 = vsub.f32 %v3151_v34, %v3161_v16  ;;  %v3162_v44 = vmul.f32 0.03125, %v3160_v43 }
0x19a1   : > { %v3164_v40 = vsub.f32 %v3152_v38, %v3162_v44  ;;  %v3165_v30 = vmul.f32 %v3163_v23, %v3163_v23 }
0x19a3   : > { %v3167_v42 = vsel %vm753_vm4, %v3165_v30, 0.0  ;;  %v3166_v45 = vmul.f32 %v3164_v40, %v3164_v40 }
0x19a4   : > { %3168 = vadd.xlane.f32.xlu0 %v3167_v42  ;;  %v3728_v42 = vld [vmem:[%s4713_s24 + $0x4] ss:$0 sm:$0xff] }
0x19a5   : > { %v3170_v15 = vsel %vm753_vm4, %v3166_v45, 0.0 }
0x19a6   : > { %3171 = vadd.xlane.f32.xlu1 %v3170_v15 }
0x1a31   : > { %v3169_v46 = vpop.xlane.xlu0 %3168 }
0x1a32   : > { %v3173_v20 = vmul.f32 0.03125, %v3169_v46 }
0x1a33   : > { %v3172_v48 = vpop.xlane.xlu1 %3171 }
0x1a34   : > { %v3175_v13 = vadd.f32 1e-05, %v3173_v20  ;;  %v3174_v63 = vmul.f32 0.03125, %v3172_v48  ;;  %v4306_v48 = vld [vmem:[%s5270_s10] sm:$0xff] (!%p3730_p10)  }
0x1a36   : > { %4298 = vrsqrt.f32 %v3175_v13  ;;  %v3176_v2 = vadd.f32 1e-05, %v3174_v63  ;;  %v4481_v13 = vmov (!%p3730_p10), 0.0   ;;  %v4307_v63 = vld [vmem:[%s5270_s10 + $0x8] sm:$0xff] (!%p3730_p10)  }
0x1a37   : > { %4089 = vmatprep.subr.bf16.mxu0 (!%p3730_p10), %v4481_v13 }
0x1a38   : > { %4300 = vrsqrt.f32 %v3176_v2 }
0x1a40   : > { %v4299_v4 = vpop.eup %4298 }
0x1a41   : > { %v3179_v50 = vmul.f32 %v4299_v4, %v3163_v23  ;;  %v3731_v4 = vld [vmem:[%s5307_s22] ss:$0 sm:$0xff] (!%p3730_p10) }
0x1a42   : > { %v4301_v51 = vpop.eup %4300 }
0x1a43   : > { %v3185_v52 = vmul.f32 %v3716_v49, %v3179_v50  ;;  %v3180_v53 = vmul.f32 %v4301_v51, %v3164_v40 }
0x1a45   : > { %v3186_v54 = vmul.f32 %v3716_v49, %v3180_v53  ;;  %v3191_v55 = vadd.f32 %v3717_v26, %v3185_v52 }
0x1a47   : > { %v3192_v56 = vadd.f32 %v3717_v26, %v3186_v54 }
0x1a49   : > { %v3193_v57 = vpack.c.bf16 %v3192_v56, %v3191_v55 }
0x1a4b   : > { %4074 = vmatmul.mubr.msk.bf16.vlgmr.msra.gmra.mrb[76].mxu1 %vm753_vm4, %v3193_v57 }
0x1b1e   : > { %v3254_v29 = vpop.f32.mrb[76].mxu1 }
0x1b1f   : > { %v3255_v60 = vadd.f32 %v3718_v28, %v3254_v29  ;;  %v4075_v47 = vpop.f32.mrb[77].mxu1 }
0x1b20   : > { %v3257_v61 = vpop.f32.mrb[78].mxu1 }
0x1b21   : > { %v3258_v62 = vadd.f32 %v3718_v28, %v3257_v61  ;;  %v4076_v0 = vpop.f32.mrb[79].mxu1  ;;  %v3261_v1 = vmax.f32 %v3255_v60, 0.0 }
0x1b23   : > { %v3262_v6 = vmax.f32 %v3258_v62, 0.0 }
0x1b25   : > { %v3263_v8 = vpack.c.bf16 %v3262_v6, %v3261_v1 }
0x1b27   : > { %4086 = vmatmul.mubr.msk.bf16.vlgmr.msra.gmra.mrb[72].mxu0 %vm3301_vm11, %v3263_v8 }
0x1b28   : > { %4090 = vmatpush3.bf16.msra.mxu0 (!%p3730_p10), %v4306_v48  ;;  %4093 = vmatprep.mubr.msk.bf16.mxu0 (!%p3730_p10), %vm4482_vm12, %v4481_v13 }
0x1b29   : > { %4091 = vmatprep.subr.bf16.mxu0 (!%p3730_p10), %v4481_v13 }
0x1b2c   : > { %4092 = vmatpush3.bf16.msra.mxu0 (!%p3730_p10), %v4307_v63 }
0x1bfa   : > { %v3339_v12 = vpop.f32.mrb[72].mxu0 }
0x1bfb   : > { %v3340_v17 = vadd.f32 %v3722_v14, %v3339_v12  ;;  %v4087_v21 = vpop.f32.mrb[73].mxu0 }
0x1bfc   : > { %v3342_v22 = vpop.f32.mrb[74].mxu0 }
0x1bfd   : > { %v3343_v18 = vadd.f32 %v3722_v14, %v3342_v22  ;;  %v4088_v25 = vpop.f32.mrb[75].mxu0  ;;  %v3346_v24 = vadd.f32 %v3340_v17, %v3191_v55 }
0x1bff   : > { %v3347_v27 = vadd.f32 %v3343_v18, %v3192_v56  ;;  %v3350_v19 = vsel %vm753_vm4, %v3346_v24, 0.0 }
0x1c00   : > { %3351 = vadd.xlane.f32.xlu0 %v3350_v19 }
0x1c01   : > { %v3353_v7 = vsel %vm753_vm4, %v3347_v27, 0.0 }
0x1c02   : > { %3354 = vadd.xlane.f32.xlu1 %v3353_v7 }
0x1c8d   : > { %v3352_v11 = vpop.xlane.xlu0 %3351 }
0x1c8e   : > { %v3356_v31 = vmul.f32 0.03125, %v3352_v11 }
0x1c8f   : > { %v3355_v3 = vpop.xlane.xlu1 %3354 }
0x1c90   : > { %v3358_v33 = vsub.f32 %v3346_v24, %v3356_v31  ;;  %v3357_v34 = vmul.f32 0.03125, %v3355_v3 }
0x1c92   : > { %v3359_v36 = vsub.f32 %v3347_v27, %v3357_v34  ;;  %v3360_v37 = vmul.f32 %v3358_v33, %v3358_v33 }
0x1c94   : > { %v3362_v32 = vsel %vm753_vm4, %v3360_v37, 0.0  ;;  %v3361_v38 = vmul.f32 %v3359_v36, %v3359_v36 }
0x1c95   : > { %3363 = vadd.xlane.f32.xlu0 %v3362_v32 }
0x1c96   : > { %v3365_v39 = vsel %vm753_vm4, %v3361_v38, 0.0 }
0x1c97   : > { %3366 = vadd.xlane.f32.xlu1 %v3365_v39 }
0x1d22   : > { %v3364_v41 = vpop.xlane.xlu0 %3363 }
0x1d23   : > { %v3368_v16 = vmul.f32 0.03125, %v3364_v41 }
0x1d24   : > { %v3367_v43 = vpop.xlane.xlu1 %3366 }
0x1d25   : > { %v3370_v23 = vadd.f32 1e-05, %v3368_v16  ;;  %v3369_v44 = vmul.f32 0.03125, %v3367_v43 }
0x1d27   : > { %4302 = vrsqrt.f32 %v3370_v23  ;;  %v3371_v40 = vadd.f32 1e-05, %v3369_v44 }
0x1d29   : > { %4304 = vrsqrt.f32 %v3371_v40 }
0x1d31   : > { %v4303_v30 = vpop.eup %4302 }
0x1d32   : > { %v3374_v45 = vmul.f32 %v4303_v30, %v3358_v33 }
0x1d33   : > { %v4305_v15 = vpop.eup %4304 }
0x1d34   : > { %v3380_v5 = vmul.f32 %v3728_v42, %v3374_v45  ;;  %v3375_v9 = vmul.f32 %v4305_v15, %v3359_v36  ;;  %3393 = sbr.rel (%p3730_p10) target bundleno = 7701 (0x1e15), region = 88 }
0x1d36   : > { %v3386_v10 = vadd.f32 %v3729_v35, %v3380_v5  ;;  %v3381_v46 = vmul.f32 %v3728_v42, %v3375_v9 }
0x1d38   : > { %3388 = vst.msk [vmem:[#allocation2] sm:$0xff] %vm753_vm4, %v3386_v10  ;;  %v3387_v20 = vadd.f32 %v3729_v35, %v3381_v46 }
0x1d3a   : > { %3389 = vst.msk [vmem:[#allocation2 + $0x8] sm:$0xff] %vm753_vm4, %v3387_v20  ;;  %v3394_v2 = vpack.c.bf16 (!%p3730_p10), %v3387_v20, %v3386_v10 }
0x1d3c   : > { %4094 = vmatmul.mubr.msk.bf16.vlgmr.msra.gmra.mrb[0].mxu0 %vm753_vm4, %v3394_v2 }
0x1e0f   : > { %v3455_v49 = vpop.f32.mrb[0].mxu0 }
0x1e10   : > { %v3456_v50 = vadd.f32 %v3731_v4, %v3455_v49  ;;  %v4095_v51 = vpop.f32.mrb[1].mxu0 }
0x1e11   : > { %v3458_v52 = vpop.f32.mrb[2].mxu0 }
0x1e12   : > { %3462 = vst [vmem:[#allocation10] sm:$0xff] %v3456_v50  ;;  %v3459_v53 = vadd.f32 %v3731_v4, %v3458_v52  ;;  %v4096_v26 = vpop.f32.mrb[3].mxu0 }
0x1e14   : > { %3463 = vst [vmem:[#allocation10 + $0x8] sm:$0xff] %v3459_v53 }
0x1e15 PF: > { %s5308_s17 = sld [smem:[#allocation15_spill]]  ;;  %s4483_s23 = smov [#allocation10]  }
0x1e16   : > { %s3473_s25 = sshll.u32 %s4483_s23, 4  ;;  %s3474_s25 = int_to_ptr.vmem [resolvable:$true] %s3473_s25 }
0x1e17   : > { %s4392_s20 = scalar_lea.vmem %s3474_s25, 256  ;;  %p4399_p0 = scmp.lt.s32.totalorder %s3474_s25, %s3474_s25 }
0x1e18   : > { %p4393_p12 = scmp.ne.s32.totalorder %s3474_s25, %s4392_s20  ;;  %p4400_p1 = scmp.lt.s32.totalorder %s4392_s20, %s4392_s20 }
0x1e1a   : > { %p4401_p4 = por %p4400_p1, %p4399_p0 }
0x1e1b   : > { %s5309_s28 = sadd.s32 4294967295, %s5308_s17  }
0x1e1c   : > { %p5224_p11 = scmp.eq.s32.totalorder %s5309_s28, 1 }
0x1e1e   : > { %p4394_p13 = pnand %p4393_p12, %p5224_p11 }
0x1e20   : > { %p4395_p6 = pneg %p4394_p13 }
0x1e22   : > { %p4402_p7 = pnand %p4401_p4, %p4395_p6 }
0x1e24   : > { %4405 = shalt.err (!%p4402_p7)
}
0x1e25   : > { %s5311_s27 = sld [smem:[#allocation18_spill]] }
0x1e2b   : > { %s4406_s19 = scalar_lea.hbm %s5311_s27, 256 }
0x1e2c   : > { %p4407_p9 = scmp.ne.s32.totalorder %s5311_s27, %s4406_s19  ;;  %p4412_p2 = scmp.lt.u32.totalorder %s4406_s19, %s5311_s27 }
0x1e2e   : > { %p4408_p3 = pnand %p4407_p9, %p5224_p11 }
0x1e30   : > { %p4409_p8 = pneg %p4408_p3 }
0x1e32   : > { %p4414_p5 = pnand %p4412_p2, %p4409_p8 }
0x1e34   : > { %4417 = shalt.err (!%p4414_p5)
}
0x1e35   : > { %s4484_s11 = smov 128   ;;  %s5312_s24 = smov 8  }
0x1e36   : > { %4110 = dma.vmem_to_hbm [thread:$0]  (%p5224_p11), %s3474_s25, 256, %s5311_s27, [#allocation6], %s4484_s11, %s4484_s11, %s5312_s24  }
0x1e37   : > { %4439 = dma.done.wait (%p5224_p11), [#allocation6], 256  }
0x1e38   : > { %4441 = vsyncadd (%p5224_p11), [#allocation6], 4294967040 }
0x1e39 PF: > { %s5313_s16 = sld [smem:[#allocation15_spill]]  ;;  %s5314_s21 = sld [smem:[#allocation14_spill]] }
0x1e3a   : > { %s5315_s22 = smov %s5317_s30 }
0x1e3f   : > { %s25_s23 = sadd.s32 1, %s5313_s16  }
0x1e40   : > { %p22_p10 = scmp.ge.s32.totalorder %s25_s23, 4  }
0x1e42   :  { %24 = sbr.rel (!%p22_p10) target bundleno = 8 (0x8), region = 138 }
0x1e49   :  { %3489 = vsyncpa [#allocation5], 1 }
0x1e4a   :  { %3491 = vsyncpa [#allocation5 + $0x1], 1 }
0x1e4b   :  { %3492 = vsyncpa [#allocation8], 1 }
0x1e4c   :  { %3493 = vsyncpa [#allocation6], 1 }
0x1e4d   :  { %3495 = vsyncpa [#allocation6 + $0x1], 1 }

</bundles_post_ra>
